<compile_context>
chip_gen: v7x
topology: tpu7x:2x2x1
jax: 0.10.0
libtpu: 0.0.40
codegen_flags: <defaults>
</compile_context>

<pallas_src>
import functools

import jax
import jax.numpy as jnp
from jax.experimental import pallas as pl
from jax.experimental.pallas import tpu as pltpu

N_EMBD = 384
HIDDEN = 4 * N_EMBD
DROPOUT_P = 0.2

# Row-tile size.  128 fills a v5e MXU pass; use 256 on v6e/v7x for big M.
TM_DEFAULT = 128


def _ffn_kernel(x_ref, w1_ref, b1_ref, w2_ref, b2_ref, *rest, dropout_p: float):
    # x_ref: (TM, C) bf16       w1_ref: (C, H) bf16   b1_ref: (1, H) f32
    # w2_ref: (H, C) bf16       b2_ref: (1, C) f32    o_ref:  (TM, C) f32
    # optional u_ref: (TM, C) f32 uniforms in [0,1) (training only)
    if dropout_p > 0.0:
        u_ref, o_ref = rest
    else:
        (o_ref,) = rest

    x = x_ref[...]

    # Linear 1 + ReLU (bf16 MXU matmul, f32 accumulation).
    h = jnp.dot(x, w1_ref[...], preferred_element_type=jnp.float32) + b1_ref[...]
    h = jnp.maximum(h, 0.0)

    # Linear 2 (cast ReLU output back to bf16 for the MXU, accumulate in f32).
    y = jnp.dot(h.astype(jnp.bfloat16), w2_ref[...],
                preferred_element_type=jnp.float32) + b2_ref[...]

    if dropout_p > 0.0:
        # Inverted dropout: keep with prob (1-p), rescale kept values by 1/(1-p).
        keep = u_ref[...] >= jnp.float32(dropout_p)
        y = jnp.where(keep, y, 0.0) * jnp.float32(1.0 / (1.0 - dropout_p))

    o_ref[...] = y.astype(o_ref.dtype)


def feed_forward(x, w1, b1, w2, b2, *, key=None, training: bool = True,
                 dropout_p: float = DROPOUT_P, tm: int = TM_DEFAULT):
    """x: (B, T, C) float32 -> (B, T, C) float32."""
    B, T, C = x.shape
    H = w1.shape[1]
    M = B * T
    Mp = pl.cdiv(M, tm) * tm                      # pad rows up to a tile multiple

    x2d = x.reshape(M, C).astype(jnp.bfloat16)
    if Mp != M:
        x2d = jnp.pad(x2d, ((0, Mp - M), (0, 0)))

    w1b = w1.astype(jnp.bfloat16)
    w2b = w2.astype(jnp.bfloat16)
    b1f = b1.astype(jnp.float32)
    b2f = b2.astype(jnp.float32)

    use_dropout = training and dropout_p > 0.0

    # x / out (and uniforms) are tiled along M and pipelined; weights/biases use
    # a constant index_map so they are DMA'd once and reused across grid steps.
    in_specs = [
        pl.BlockSpec((tm, C), lambda i: (i, 0)),   # x tile
        pl.BlockSpec((C, H), lambda i: (0, 0)),    # w1 (resident)
        pl.BlockSpec((1, H), lambda i: (0, 0)),    # b1 (resident)
        pl.BlockSpec((H, C), lambda i: (0, 0)),    # w2 (resident)
        pl.BlockSpec((1, C), lambda i: (0, 0)),    # b2 (resident)
    ]
    args = [x2d, w1b, b1f, w2b, b2f]

    if use_dropout:
        if key is None:
            key = jax.random.PRNGKey(0)
        # Host-side randomness (the TPU on-chip PRNG has no interpret lowering);
        # one uniform per output element, streamed in tile-by-tile.
        u = jax.random.uniform(key, (Mp, C), dtype=jnp.float32)
        in_specs.append(pl.BlockSpec((tm, C), lambda i: (i, 0)))
        args.append(u)

    kernel = functools.partial(_ffn_kernel,
                               dropout_p=dropout_p if use_dropout else 0.0)

    out2d = pl.pallas_call(
        kernel,
        out_shape=jax.ShapeDtypeStruct((Mp, C), jnp.float32),
        grid=(Mp // tm,),
        in_specs=in_specs,
        out_specs=pl.BlockSpec((tm, C), lambda i: (i, 0)),
        compiler_params=pltpu.CompilerParams(
            dimension_semantics=("parallel",)),    # shards M tiles across TCs (v7x)
    )(*args)

    return out2d[:M].reshape(B, T, C)


def _init_params(key, n_embd):
    """Deterministic parameter init (shapes match the nn.Linear layers)."""
    k1, k2, k3, k4 = jax.random.split(key, 4)
    hidden = 4 * n_embd
    # PyTorch Linear default init: U(-1/sqrt(fan_in), 1/sqrt(fan_in)).
    lim1 = 1.0 / (n_embd ** 0.5)
    lim2 = 1.0 / (hidden ** 0.5)
    w1 = jax.random.uniform(k1, (n_embd, hidden), jnp.float32, -lim1, lim1)
    b1 = jax.random.uniform(k2, (1, hidden), jnp.float32, -lim1, lim1)
    w2 = jax.random.uniform(k3, (hidden, n_embd), jnp.float32, -lim2, lim2)
    b2 = jax.random.uniform(k4, (1, n_embd), jnp.float32, -lim2, lim2)
    return w1, b1, w2, b2


if __name__ == "__main__":
    key = jax.random.PRNGKey(0)
    k_x, k_p, k_d = jax.random.split(key, 3)

    B, T, C = 2, 8, N_EMBD            # batch=2, seq=8, n_embd=384
    x = jax.random.normal(k_x, (B, T, C), dtype=jnp.float32)
    w1, b1, w2, b2 = _init_params(k_p, C)

    # Training-mode forward (dropout active), like PyTorch's default .train().
    y_train = feed_forward(x, w1, b1, w2, b2, key=k_d, training=True)
    jax.block_until_ready(y_train)
    # Sanity: roughly dropout_p fraction of outputs are zeroed.
    zero_frac = float(jnp.mean(y_train == 0.0))
    assert 0.1 < zero_frac < 0.3, f"dropout zero fraction off: {zero_frac}"

    # Eval-mode forward (dropout = identity) — check against a pure-JAX
    # reference using the same bf16-operand / f32-accumulation recipe.
    y_eval = feed_forward(x, w1, b1, w2, b2, training=False)
    jax.block_until_ready(y_eval)
    xb = x.reshape(-1, C).astype(jnp.bfloat16)
    h_ref = jnp.maximum(
        jnp.dot(xb, w1.astype(jnp.bfloat16), preferred_element_type=jnp.float32) + b1,
        0.0)
    ref = jnp.dot(h_ref.astype(jnp.bfloat16), w2.astype(jnp.bfloat16),
                  preferred_element_type=jnp.float32) + b2
    assert jnp.allclose(y_eval.reshape(-1, C), ref, atol=2e-2, rtol=2e-2), \
        "mismatch vs reference"

    assert y_train.shape == (B, T, C) and y_eval.shape == (B, T, C)
    print("KERNEL_OK")
</pallas_src>

<mosaic_0001>
module attributes {stable_mosaic.version = 11 : i64} {
  func.func @_ffn_kernel(%arg0: i32, %arg1: memref<128x384xbf16, #tpu.memory_space<vmem>>, %arg2: memref<384x1536xbf16, #tpu.memory_space<vmem>>, %arg3: memref<1x1536xf32, #tpu.memory_space<vmem>>, %arg4: memref<1536x384xbf16, #tpu.memory_space<vmem>>, %arg5: memref<1x384xf32, #tpu.memory_space<vmem>>, %arg6: memref<128x384xf32, #tpu.memory_space<vmem>>, %arg7: memref<128x384xf32, #tpu.memory_space<vmem>>) attributes {dimension_semantics = [#tpu.dimension_semantics<parallel>], iteration_bounds = array<i64: 1>, scalar_prefetch = 0 : i64, scratch_operands = 0 : i64, tpu.core_type = #tpu.core_type<tc>, window_params = [{transform_indices = @transform_0, window_bounds = array<i64: 128, 384>}, {pipeline_mode = #tpu.pipeline_mode<synchronous>, transform_indices = @transform_1, window_bounds = array<i64: 384, 1536>}, {pipeline_mode = #tpu.pipeline_mode<synchronous>, transform_indices = @transform_2, window_bounds = array<i64: 1, 1536>}, {pipeline_mode = #tpu.pipeline_mode<synchronous>, transform_indices = @transform_3, window_bounds = array<i64: 1536, 384>}, {pipeline_mode = #tpu.pipeline_mode<synchronous>, transform_indices = @transform_4, window_bounds = array<i64: 1, 384>}, {transform_indices = @transform_5, window_bounds = array<i64: 128, 384>}, {transform_indices = @transform_6, window_bounds = array<i64: 128, 384>}]} {
    %c0 = arith.constant 0 : index
    %c0_0 = arith.constant 0 : index
    %0 = vector.load %arg1[%c0, %c0_0] : memref<128x384xbf16, #tpu.memory_space<vmem>>, vector<128x384xbf16>
    %c0_1 = arith.constant 0 : index
    %c0_2 = arith.constant 0 : index
    %1 = vector.load %arg2[%c0_1, %c0_2] : memref<384x1536xbf16, #tpu.memory_space<vmem>>, vector<384x1536xbf16>
    %cst = arith.constant dense<0.000000e+00> : vector<128x1536xf32>
    %2 = tpu.matmul %0, %1, %cst {dimension_numbers = #tpu.dot_dimension_numbers<[1], [0], [0], [1], [0, 0, 1, 1], [], []>} : vector<128x384xbf16>, vector<384x1536xbf16>, vector<128x1536xf32> -> vector<128x1536xf32>
    %c0_3 = arith.constant 0 : index
    %c0_4 = arith.constant 0 : index
    %3 = vector.load %arg3[%c0_3, %c0_4] : memref<1x1536xf32, #tpu.memory_space<vmem>>, vector<1x1536xf32>
    %4 = vector.broadcast %3 : vector<1x1536xf32> to vector<128x1536xf32>
    %5 = arith.addf %2, %4 : vector<128x1536xf32>
    %cst_5 = arith.constant 0.000000e+00 : f32
    %6 = vector.broadcast %cst_5 : f32 to vector<128x1536xf32>
    %7 = arith.maximumf %5, %6 : vector<128x1536xf32>
    %8 = arith.truncf %7 : vector<128x1536xf32> to vector<128x1536xbf16>
    %c0_6 = arith.constant 0 : index
    %c0_7 = arith.constant 0 : index
    %9 = vector.load %arg4[%c0_6, %c0_7] : memref<1536x384xbf16, #tpu.memory_space<vmem>>, vector<1536x384xbf16>
    %cst_8 = arith.constant dense<0.000000e+00> : vector<128x384xf32>
    %10 = tpu.matmul %8, %9, %cst_8 {dimension_numbers = #tpu.dot_dimension_numbers<[1], [0], [0], [1], [0, 0, 1, 1], [], []>} : vector<128x1536xbf16>, vector<1536x384xbf16>, vector<128x384xf32> -> vector<128x384xf32>
    %c0_9 = arith.constant 0 : index
    %c0_10 = arith.constant 0 : index
    %11 = vector.load %arg5[%c0_9, %c0_10] : memref<1x384xf32, #tpu.memory_space<vmem>>, vector<1x384xf32>
    %12 = vector.broadcast %11 : vector<1x384xf32> to vector<128x384xf32>
    %13 = arith.addf %10, %12 : vector<128x384xf32>
    %c0_11 = arith.constant 0 : index
    %c0_12 = arith.constant 0 : index
    %14 = vector.load %arg6[%c0_11, %c0_12] : memref<128x384xf32, #tpu.memory_space<vmem>>, vector<128x384xf32>
    %cst_13 = arith.constant 2.000000e-01 : f32
    %15 = vector.broadcast %cst_13 : f32 to vector<128x384xf32>
    %16 = arith.cmpf oge, %14, %15 : vector<128x384xf32>
    %cst_14 = arith.constant 0.000000e+00 : f32
    %17 = vector.broadcast %cst_14 : f32 to vector<128x384xf32>
    %18 = arith.select %16, %13, %17 : vector<128x384xi1>, vector<128x384xf32>
    %cst_15 = arith.constant 1.250000e+00 : f32
    %19 = vector.broadcast %cst_15 : f32 to vector<128x384xf32>
    %20 = arith.mulf %18, %19 : vector<128x384xf32>
    %c0_16 = arith.constant 0 : index
    %c0_17 = arith.constant 0 : index
    %21 = vector.load %arg7[%c0_16, %c0_17] : memref<128x384xf32, #tpu.memory_space<vmem>>, vector<128x384xf32>
    tpu.vector_store %arg7[%c0_16, %c0_17], %20 {strides = array<i32>} : memref<128x384xf32, #tpu.memory_space<vmem>>, vector<128x384xf32>,
    return
  }
  func.func @transform_0(%arg0: i32) -> (i32, i32) {
    %c0_i32 = arith.constant 0 : i32
    %c0_i32_0 = arith.constant 0 : i32
    return %arg0, %c0_i32 : i32, i32
  }
  func.func @transform_1(%arg0: i32) -> (i32, i32) {
    %c0_i32 = arith.constant 0 : i32
    %c0_i32_0 = arith.constant 0 : i32
    %c0_i32_1 = arith.constant 0 : i32
    return %c0_i32, %c0_i32_0 : i32, i32
  }
  func.func @transform_2(%arg0: i32) -> (i32, i32) {
    %c0_i32 = arith.constant 0 : i32
    %c0_i32_0 = arith.constant 0 : i32
    %c0_i32_1 = arith.constant 0 : i32
    return %c0_i32, %c0_i32_0 : i32, i32
  }
  func.func @transform_3(%arg0: i32) -> (i32, i32) {
    %c0_i32 = arith.constant 0 : i32
    %c0_i32_0 = arith.constant 0 : i32
    %c0_i32_1 = arith.constant 0 : i32
    return %c0_i32, %c0_i32_0 : i32, i32
  }
  func.func @transform_4(%arg0: i32) -> (i32, i32) {
    %c0_i32 = arith.constant 0 : i32
    %c0_i32_0 = arith.constant 0 : i32
    %c0_i32_1 = arith.constant 0 : i32
    return %c0_i32, %c0_i32_0 : i32, i32
  }
  func.func @transform_5(%arg0: i32) -> (i32, i32) {
    %c0_i32 = arith.constant 0 : i32
    %c0_i32_0 = arith.constant 0 : i32
    return %arg0, %c0_i32 : i32, i32
  }
  func.func @transform_6(%arg0: i32) -> (i32, i32) {
    %c0_i32 = arith.constant 0 : i32
    %c0_i32_0 = arith.constant 0 : i32
    return %arg0, %c0_i32 : i32, i32
  }
}

</mosaic_0001>

<bundles_post_ra>
// kernel: tpu_custom_call.1
= control target key start
LH: loop header
LB: loop body
LE: loop exit
PB: predicated region body
PF: predicated region fallthrough
CT: control target
= control target key end

     0   :  { %11 = vsyncpa [#allocation3], 0  ;;  %s10971_s0 = inlined_call_operand.hbm [shape: bf16[128,384], index: 0, kind: input, shape index: {}]   ;;  %s10972_s1 = inlined_call_operand.hbm [shape: bf16[384,1536], index: 1, kind: input, shape index: {}]   ;;  %s10973_s2 = inlined_call_operand.hbm [shape: f32[1,1536], index: 2, kind: input, shape index: {}]   ;;  %s10974_s3 = inlined_call_operand.hbm [shape: bf16[1536,384], index: 3, kind: input, shape index: {}]   ;;  %s10975_s4 = inlined_call_operand.hbm [shape: f32[1,384], index: 4, kind: input, shape index: {}]   ;;  %s10976_s5 = inlined_call_operand.hbm [shape: f32[128,384], index: 5, kind: input, shape index: {}]   ;;  %s10977_s6 = inlined_call_operand.hbm [shape: f32[128,384], index: 6, kind: output, shape index: {}]  }
   0x1   :  { %12 = vsyncpa [#allocation6], 0 }
   0x2   :  { %13 = vsyncpa [#allocation9], 0 }
   0x3   :  { %14 = vsyncpa [#allocation12], 0 }
   0x4   :  { %15 = vsyncpa [#allocation4], 0  ;;  %s9786_s21 = smov [#allocation5]   ;;  %s9622_s25 = scalar_lea.hbm %s10972_s1, 36864 }
   0x5   :  { %s33_s22 = sshll.u32 %s9786_s21, 4  ;;  %p9623_p0 = scmp.ne.s32.totalorder %s10972_s1, %s9622_s25  ;;  %s34_s22 = int_to_ptr.vmem [resolvable:$true] %s33_s22 }
   0x6   :  { %p9626_p1 = scmp.lt.u32.totalorder %s9622_s25, %s10972_s1 }
   0x8   :  { %p9628_p2 = pnand %p9626_p1, %p9623_p0 }
   0xa   :  { %9631 = shalt.err (!%p9628_p2)
}
   0xb   :  { %s9632_s30 = scalar_lea.vmem %s34_s22, 36864  ;;  %p9637_p4 = scmp.lt.s32.totalorder %s34_s22, %s34_s22 }
   0xc   :  { %p9633_p3 = scmp.ne.s32.totalorder %s34_s22, %s9632_s30  ;;  %p9638_p5 = scmp.lt.s32.totalorder %s9632_s30, %s9632_s30 }
   0xe   :  { %p9639_p6 = por %p9638_p5, %p9637_p4 }
  0x10   :  { %p9640_p7 = pnand %p9639_p6, %p9633_p3 }
  0x12   :  { %9643 = shalt.err (!%p9640_p7)
}
  0x13   :  { %s9787_s7 = smov 768   ;;  %s9788_s8 = smov 48  }
  0x14   :  { %39 = dma.hbm_to_vmem [thread:$0]  %s10972_s1, 36864, %s34_s22, [#allocation6], %s9787_s7, %s9787_s7, %s9788_s8  }
  0x15   :  { %s9789_s11 = smov [#allocation8]   ;;  %s9790_s13 = smov [#allocation2]  }
  0x16   :  { %s55_s12 = sshll.u32 %s9789_s11, 4  ;;  %s21_s14 = sshll.u32 %s9790_s13, 4  ;;  %s56_s12 = int_to_ptr.vmem [resolvable:$true] %s55_s12  ;;  %s22_s14 = int_to_ptr.vmem [resolvable:$true] %s21_s14 }
  0x17   :  { %s9644_s17 = scalar_lea.hbm %s10974_s3, 36864 }
  0x18   :  { %p9645_p8 = scmp.ne.s32.totalorder %s10974_s3, %s9644_s17  ;;  %p9648_p9 = scmp.lt.u32.totalorder %s9644_s17, %s10974_s3 }
  0x1a   :  { %p9650_p10 = pnand %p9648_p9, %p9645_p8 }
  0x1c   :  { %9653 = shalt.err (!%p9650_p10)
}
  0x1d   :  { %s9654_s1 = scalar_lea.vmem %s56_s12, 36864  ;;  %p9659_p12 = scmp.lt.s32.totalorder %s56_s12, %s56_s12 }
  0x1e   :  { %p9655_p11 = scmp.ne.s32.totalorder %s56_s12, %s9654_s1  ;;  %p9660_p13 = scmp.lt.s32.totalorder %s9654_s1, %s9654_s1 }
  0x20   :  { %p9661_p0 = por %p9660_p13, %p9659_p12 }
  0x22   :  { %p9662_p1 = pnand %p9661_p0, %p9655_p11 }
  0x24   :  { %9665 = shalt.err (!%p9662_p1)
}
  0x25   :  { %s9791_s22 = smov 192   ;;  %s9792_s23 = smov 12  }
  0x26   :  { %61 = dma.hbm_to_vmem [thread:$0]  %s10974_s3, 36864, %s56_s12, [#allocation9], %s9791_s22, %s9791_s22, %s9792_s23  }
  0x27   :  { %s9666_s28 = scalar_lea.hbm %s10971_s0, 3072 }
  0x28   :  { %p9667_p2 = scmp.ne.s32.totalorder %s10971_s0, %s9666_s28  ;;  %p9670_p3 = scmp.lt.u32.totalorder %s9666_s28, %s10971_s0 }
  0x2a   :  { %p9672_p4 = pnand %p9670_p3, %p9667_p2 }
  0x2c   :  { %9675 = shalt.err (!%p9672_p4)
}
  0x2d   :  { %s9676_s9 = scalar_lea.vmem %s22_s14, 3072  ;;  %p9681_p6 = scmp.lt.s32.totalorder %s22_s14, %s22_s14 }
  0x2e   :  { %p9677_p5 = scmp.ne.s32.totalorder %s22_s14, %s9676_s9  ;;  %p9682_p7 = scmp.lt.s32.totalorder %s9676_s9, %s9676_s9 }
  0x30   :  { %p9683_p8 = por %p9682_p7, %p9681_p6 }
  0x32   :  { %p9684_p9 = pnand %p9683_p8, %p9677_p5 }
  0x34   :  { %9687 = shalt.err (!%p9684_p9)
}
  0x35   :  { %27 = dma.hbm_to_vmem [thread:$0]  %s10971_s0, 3072, %s22_s14, [#allocation3], %s9791_s22, %s9791_s22, %s9792_s23  }
  0x36   :  { %s9793_s11 = smov [#allocation7]   ;;  %s9794_s13 = smov [#allocation10]  }
  0x37   :  { %s46_s12 = sshll.u32 %s9793_s11, 4  ;;  %s68_s15 = sshll.u32 %s9794_s13, 4  ;;  %s47_s12 = int_to_ptr.vmem [resolvable:$true] %s46_s12  ;;  %s69_s15 = int_to_ptr.vmem [resolvable:$true] %s68_s15 }
  0x38   :  { %s9688_s18 = scalar_lea.hbm %s10973_s2, 192 }
  0x39   :  { %p9689_p10 = scmp.ne.s32.totalorder %s10973_s2, %s9688_s18  ;;  %p9692_p11 = scmp.lt.u32.totalorder %s9688_s18, %s10973_s2 }
  0x3b   :  { %p9694_p12 = pnand %p9692_p11, %p9689_p10 }
  0x3d   :  { %9697 = shalt.err (!%p9694_p12)
}
  0x3e   :  { %s9698_s0 = scalar_lea.vmem %s47_s12, 192  ;;  %p9703_p0 = scmp.lt.s32.totalorder %s47_s12, %s47_s12 }
  0x3f   :  { %p9699_p13 = scmp.ne.s32.totalorder %s47_s12, %s9698_s0  ;;  %p9704_p1 = scmp.lt.s32.totalorder %s9698_s0, %s9698_s0 }
  0x41   :  { %p9705_p2 = por %p9704_p1, %p9703_p0 }
  0x43   :  { %p9706_p3 = pnand %p9705_p2, %p9699_p13 }
  0x45   :  { %9709 = shalt.err (!%p9706_p3)
}
  0x46   :  { %49 = dma.hbm_to_vmem [thread:$0]  %s10973_s2, 192, %s47_s12, [#allocation6]  }
  0x47   :  { %s9710_s25 = scalar_lea.hbm %s10975_s4, 48 }
  0x48   :  { %p9711_p4 = scmp.ne.s32.totalorder %s10975_s4, %s9710_s25  ;;  %p9714_p5 = scmp.lt.u32.totalorder %s9710_s25, %s10975_s4 }
  0x4a   :  { %p9716_p6 = pnand %p9714_p5, %p9711_p4 }
  0x4c   :  { %9719 = shalt.err (!%p9716_p6)
}
  0x4d   :  { %s9720_s30 = scalar_lea.vmem %s69_s15, 48  ;;  %s9724_s7 = scalar_lea.vmem %s69_s15, 64 }
  0x4e   :  { %p9721_p7 = scmp.ne.s32.totalorder %s69_s15, %s9720_s30  ;;  %p9725_p8 = scmp.lt.s32.totalorder %s69_s15, %s69_s15 }
  0x4f   :  { %p9726_p9 = scmp.lt.s32.totalorder %s9724_s7, %s9720_s30 }
  0x51   :  { %p9727_p10 = por %p9726_p9, %p9725_p8 }
  0x53   :  { %p9728_p11 = pnand %p9727_p10, %p9721_p7 }
  0x55   :  { %9731 = shalt.err (!%p9728_p11)
}
  0x56   :  { %71 = dma.hbm_to_vmem [thread:$0]  %s10975_s4, 48, %s69_s15, [#allocation9]  }
  0x57   :  { %s9795_s9 = smov [#allocation11]   ;;  %s9732_s12 = scalar_lea.hbm %s10976_s5, 6144 }
  0x58   :  { %s77_s3 = sshll.u32 %s9795_s9, 4  ;;  %p9733_p12 = scmp.ne.s32.totalorder %s10976_s5, %s9732_s12  ;;  %s78_s3 = int_to_ptr.vmem [resolvable:$true] %s77_s3 }
  0x59   :  { %p9736_p13 = scmp.lt.u32.totalorder %s9732_s12, %s10976_s5 }
  0x5b   :  { %p9738_p0 = pnand %p9736_p13, %p9733_p12 }
  0x5d   :  { %9741 = shalt.err (!%p9738_p0)
}
  0x5e   :  { %s9742_s19 = scalar_lea.vmem %s78_s3, 6144  ;;  %p9747_p2 = scmp.lt.s32.totalorder %s78_s3, %s78_s3 }
  0x5f   :  { %p9743_p1 = scmp.ne.s32.totalorder %s78_s3, %s9742_s19  ;;  %p9748_p3 = scmp.lt.s32.totalorder %s9742_s19, %s9742_s19 }
  0x61   :  { %p9749_p4 = por %p9748_p3, %p9747_p2 }
  0x63   :  { %p9750_p5 = pnand %p9749_p4, %p9743_p1 }
  0x65   :  { %9753 = shalt.err (!%p9750_p5)
}
  0x66   :  { %s9796_s4 = smov 384   ;;  %s9797_s15 = smov 24  }
  0x67   :  { %83 = dma.hbm_to_vmem [thread:$0]  %s10976_s5, 6144, %s78_s3, [#allocation12], %s9796_s4, %s9796_s4, %s9797_s15  }
  0x68   :  { %9776 = dma.done.wait [#allocation3], 3072  }
  0x69   :  { %9777 = vsyncadd [#allocation3], 4294964224 }
  0x6a   :  { %9778 = dma.done.wait [#allocation6], 37056  }
  0x6b   :  { %9779 = vsyncadd [#allocation6], 4294930240 }
  0x6c   :  { %9780 = dma.done.wait [#allocation9], 36912  }
  0x6d   :  { %9781 = vsyncadd [#allocation9], 4294930384 }
  0x6e   :  { %9782 = dma.done.wait [#allocation12], 6144  }
  0x6f   :  { %9783 = vsyncadd [#allocation12], 4294961152  ;;  %v8730_v0 = vld [vmem:[#allocation5 + $0x4] ss:$48 sps:$4 sm:$0xff]   ;;  %v8732_v1 = vld [vmem:[#allocation5 + $0xc] ss:$48 sps:$4 sm:$0xff]  }
  0x70   :  { %2055 = vmatprep.subr.bf16.mxu0 %v8730_v0  ;;  %v8734_v2 = vld [vmem:[#allocation5] ss:$48 sps:$4 sm:$0xff]   ;;  %v8735_v3 = vld [vmem:[#allocation5 + $0x8] ss:$48 sps:$4 sm:$0xff]   ;;  %2281 = vmatprep.subr.bf16.mxu1 %v8732_v1  ;;  %v8736_v4 = vld [vmem:[#allocation5 + $0x64] ss:$48 sps:$4 sm:$0xff]  }
  0x71   :  { %2056 = vmatpush1.bf16.msra.mxu0 %v8734_v2  ;;  %2282 = vmatpush1.bf16.msra.mxu1 %v8735_v3  ;;  %v8738_v5 = vld [vmem:[#allocation5 + $0x6c] ss:$48 sps:$4 sm:$0xff]   ;;  %v8740_v6 = vld [vmem:[#allocation5 + $0x60] ss:$48 sps:$4 sm:$0xff]   ;;  %v8741_v7 = vld [vmem:[#allocation5 + $0x68] ss:$48 sps:$4 sm:$0xff]  }
  0x72   :  { %2057 = vmatprep.subr.bf16.mxu0 %v8736_v4  ;;  %2283 = vmatprep.subr.bf16.mxu1 %v8738_v5  ;;  %v8742_v8 = vld [vmem:[#allocation5 + $0xc4] ss:$48 sps:$4 sm:$0xff]   ;;  %v8744_v9 = vld [vmem:[#allocation5 + $0xcc] ss:$48 sps:$4 sm:$0xff]   ;;  %v8746_v10 = vld [vmem:[#allocation5 + $0xc0] ss:$48 sps:$4 sm:$0xff]  }
  0x73   :  { %v8747_v11 = vld [vmem:[#allocation5 + $0xc8] ss:$48 sps:$4 sm:$0xff]   ;;  %v8748_v12 = vld [vmem:[#allocation5 + $0x124] ss:$48 sps:$4 sm:$0xff]   ;;  %v8750_v13 = vld [vmem:[#allocation5 + $0x12c] ss:$48 sps:$4 sm:$0xff]  }
  0x74   :  { %v8752_v14 = vld [vmem:[#allocation5 + $0x120] ss:$48 sps:$4 sm:$0xff]   ;;  %v8753_v15 = vld [vmem:[#allocation5 + $0x128] ss:$48 sps:$4 sm:$0xff]   ;;  %v8754_v16 = vld [vmem:[#allocation5 + $0x184] ss:$48 sps:$4 sm:$0xff]  }
  0x75   :  { %2058 = vmatpush1.bf16.msra.mxu0 %v8740_v6  ;;  %2284 = vmatpush1.bf16.msra.mxu1 %v8741_v7  ;;  %v8756_v17 = vld [vmem:[#allocation5 + $0x18c] ss:$48 sps:$4 sm:$0xff]   ;;  %v8758_v18 = vld [vmem:[#allocation5 + $0x180] ss:$48 sps:$4 sm:$0xff]   ;;  %v8759_v19 = vld [vmem:[#allocation5 + $0x188] ss:$48 sps:$4 sm:$0xff]  }
  0x76   :  { %2059 = vmatprep.subr.bf16.mxu0 %v8742_v8  ;;  %2285 = vmatprep.subr.bf16.mxu1 %v8744_v9  ;;  %v8760_v20 = vld [vmem:[#allocation5 + $0x1e4] ss:$48 sps:$4 sm:$0xff]   ;;  %v8762_v21 = vld [vmem:[#allocation5 + $0x1ec] ss:$48 sps:$4 sm:$0xff]   ;;  %v8764_v22 = vld [vmem:[#allocation5 + $0x1e0] ss:$48 sps:$4 sm:$0xff]  }
  0x77   :  { %v8765_v23 = vld [vmem:[#allocation5 + $0x1e8] ss:$48 sps:$4 sm:$0xff]   ;;  %v8766_v24 = vld [vmem:[#allocation5 + $0x244] ss:$48 sps:$4 sm:$0xff]   ;;  %v8768_v25 = vld [vmem:[#allocation5 + $0x24c] ss:$48 sps:$4 sm:$0xff]  }
  0x78   :  { %v8770_v26 = vld [vmem:[#allocation5 + $0x240] ss:$48 sps:$4 sm:$0xff]   ;;  %v8771_v27 = vld [vmem:[#allocation5 + $0x248] ss:$48 sps:$4 sm:$0xff]   ;;  %v8772_v28 = vld [vmem:[#allocation5 + $0x2a4] ss:$48 sps:$4 sm:$0xff]  }
  0x79   :  { %2060 = vmatpush1.bf16.msra.mxu0 %v8746_v10  ;;  %2286 = vmatpush1.bf16.msra.mxu1 %v8747_v11  ;;  %v8774_v29 = vld [vmem:[#allocation5 + $0x2ac] ss:$48 sps:$4 sm:$0xff]   ;;  %v8776_v30 = vld [vmem:[#allocation5 + $0x2a0] ss:$48 sps:$4 sm:$0xff]   ;;  %v8777_v31 = vld [vmem:[#allocation5 + $0x2a8] ss:$48 sps:$4 sm:$0xff]  }
  0x7a   :  { %2061 = vmatprep.subr.bf16.mxu0 %v8748_v12  ;;  %2287 = vmatprep.subr.bf16.mxu1 %v8750_v13  ;;  %v8778_v32 = vld [vmem:[#allocation5 + $0x304] ss:$48 sps:$4 sm:$0xff]   ;;  %v8780_v33 = vld [vmem:[#allocation5 + $0x30c] ss:$48 sps:$4 sm:$0xff]   ;;  %v8782_v34 = vld [vmem:[#allocation5 + $0x300] ss:$48 sps:$4 sm:$0xff]  }
  0x7b   :  { %v8783_v35 = vld [vmem:[#allocation5 + $0x308] ss:$48 sps:$4 sm:$0xff]   ;;  %v8784_v36 = vld [vmem:[#allocation5 + $0x364] ss:$48 sps:$4 sm:$0xff]   ;;  %v8786_v37 = vld [vmem:[#allocation5 + $0x36c] ss:$48 sps:$4 sm:$0xff]  }
  0x7c   :  { %v8788_v38 = vld [vmem:[#allocation5 + $0x360] ss:$48 sps:$4 sm:$0xff]   ;;  %v8789_v39 = vld [vmem:[#allocation5 + $0x368] ss:$48 sps:$4 sm:$0xff]   ;;  %v8790_v40 = vld [vmem:[#allocation5 + $0x3c4] ss:$48 sps:$4 sm:$0xff]  }
  0x7d   :  { %2062 = vmatpush1.bf16.msra.mxu0 %v8752_v14  ;;  %2288 = vmatpush1.bf16.msra.mxu1 %v8753_v15  ;;  %v8792_v41 = vld [vmem:[#allocation5 + $0x3cc] ss:$48 sps:$4 sm:$0xff]   ;;  %v8794_v42 = vld [vmem:[#allocation5 + $0x3c0] ss:$48 sps:$4 sm:$0xff]   ;;  %v8795_v43 = vld [vmem:[#allocation5 + $0x3c8] ss:$48 sps:$4 sm:$0xff]  }
  0x7e   :  { %2063 = vmatprep.subr.bf16.mxu0 %v8754_v16  ;;  %2289 = vmatprep.subr.bf16.mxu1 %v8756_v17  ;;  %v8796_v44 = vld [vmem:[#allocation5 + $0x424] ss:$48 sps:$4 sm:$0xff]   ;;  %v8798_v45 = vld [vmem:[#allocation5 + $0x42c] ss:$48 sps:$4 sm:$0xff]   ;;  %v8800_v46 = vld [vmem:[#allocation5 + $0x420] ss:$48 sps:$4 sm:$0xff]  }
  0x7f   :  { %v8801_v47 = vld [vmem:[#allocation5 + $0x428] ss:$48 sps:$4 sm:$0xff]   ;;  %v8826_v48 = vld [vmem:[#allocation2 + $0x4] ss:$12 sps:$4 sm:$0xff]   ;;  %v8804_v50 = vld [vmem:[#allocation5 + $0x48c] ss:$48 sps:$4 sm:$0xff]  }
  0x80   :  { %v8802_v49 = vld [vmem:[#allocation5 + $0x484] ss:$48 sps:$4 sm:$0xff]   ;;  %2087 = vmatprep.mubr.bf16.mxu0 %v8826_v48  ;;  %2313 = vmatprep.mubr.bf16.mxu1 %v8826_v48  ;;  %v8806_v51 = vld [vmem:[#allocation5 + $0x480] ss:$48 sps:$4 sm:$0xff]   ;;  %v8807_v52 = vld [vmem:[#allocation5 + $0x488] ss:$48 sps:$4 sm:$0xff]  }
  0x81   :  { %2064 = vmatpush1.bf16.msra.mxu0 %v8758_v18  ;;  %2290 = vmatpush1.bf16.msra.mxu1 %v8759_v19  ;;  %v8808_v53 = vld [vmem:[#allocation5 + $0x4e4] ss:$48 sps:$4 sm:$0xff]   ;;  %v8810_v54 = vld [vmem:[#allocation5 + $0x4ec] ss:$48 sps:$4 sm:$0xff]   ;;  %v8812_v55 = vld [vmem:[#allocation5 + $0x4e0] ss:$48 sps:$4 sm:$0xff]  }
  0x82   :  { %2065 = vmatprep.subr.bf16.mxu0 %v8760_v20  ;;  %2291 = vmatprep.subr.bf16.mxu1 %v8762_v21  ;;  %v8813_v56 = vld [vmem:[#allocation5 + $0x4e8] ss:$48 sps:$4 sm:$0xff]   ;;  %v8814_v57 = vld [vmem:[#allocation5 + $0x544] ss:$48 sps:$4 sm:$0xff]   ;;  %v8816_v58 = vld [vmem:[#allocation5 + $0x54c] ss:$48 sps:$4 sm:$0xff]  }
  0x83   :  { %v8818_v59 = vld [vmem:[#allocation5 + $0x540] ss:$48 sps:$4 sm:$0xff]   ;;  %v8819_v60 = vld [vmem:[#allocation5 + $0x548] ss:$48 sps:$4 sm:$0xff]   ;;  %v8820_v61 = vld [vmem:[#allocation5 + $0x5a4] ss:$48 sps:$4 sm:$0xff]  }
  0x84   :  { %v8822_v62 = vld [vmem:[#allocation5 + $0x5ac] ss:$48 sps:$4 sm:$0xff]   ;;  %v8824_v63 = vld [vmem:[#allocation5 + $0x5a0] ss:$48 sps:$4 sm:$0xff]   ;;  %v8825_v0 = vld [vmem:[#allocation5 + $0x5a8] ss:$48 sps:$4 sm:$0xff]  }
  0x85   :  { %2066 = vmatpush1.bf16.msra.mxu0 %v8764_v22  ;;  %2292 = vmatpush1.bf16.msra.mxu1 %v8765_v23  ;;  %v8831_v1 = vld [vmem:[#allocation5 + $0x60c] ss:$48 sps:$4 sm:$0xff]   ;;  %v8834_v2 = vld [vmem:[#allocation5 + $0x604] ss:$48 sps:$4 sm:$0xff]   ;;  %v8829_v4 = vld [vmem:[#allocation5 + $0x608] ss:$48 sps:$4 sm:$0xff]  }
  0x86   :  { %2067 = vmatprep.subr.bf16.mxu0 %v8766_v24  ;;  %2293 = vmatprep.subr.bf16.mxu1 %v8768_v25  ;;  %v9910_v3 = vld [vmem:[#allocation2] ss:$12 sps:$4 sm:$0xff]   ;;  %v9912_v6 = vld [vmem:[#allocation2 + $0x1c] ss:$12 sps:$4 sm:$0xff]   ;;  %v8843_v8 = vld [vmem:[#allocation5 + $0x664] ss:$48 sps:$4 sm:$0xff]  }
  0x87   :  { %v8832_v5 = vld [vmem:[#allocation5 + $0x600] ss:$48 sps:$4 sm:$0xff]   ;;  %v8840_v7 = vld [vmem:[#allocation5 + $0x66c] ss:$48 sps:$4 sm:$0xff]   ;;  %v8838_v9 = vld [vmem:[#allocation5 + $0x668] ss:$48 sps:$4 sm:$0xff]  }
  0x88   :  { %v8841_v10 = vld [vmem:[#allocation5 + $0x660] ss:$48 sps:$4 sm:$0xff]   ;;  %v8849_v11 = vld [vmem:[#allocation5 + $0x6cc] ss:$48 sps:$4 sm:$0xff]   ;;  %v8852_v12 = vld [vmem:[#allocation5 + $0x6c4] ss:$48 sps:$4 sm:$0xff]  }
  0x89   :  { %2068 = vmatpush1.bf16.msra.mxu0 %v8770_v26  ;;  %2294 = vmatpush1.bf16.msra.mxu1 %v8771_v27  ;;  %v9918_v13 = vld [vmem:[#allocation2 + $0x18] ss:$12 sps:$4 sm:$0xff]   ;;  %v9920_v14 = vld [vmem:[#allocation2 + $0x34] ss:$12 sps:$4 sm:$0xff]   ;;  %v8858_v17 = vld [vmem:[#allocation5 + $0x72c] ss:$48 sps:$4 sm:$0xff]  }
  0x8a   :  { %2069 = vmatprep.subr.bf16.mxu0 %v8772_v28  ;;  %2295 = vmatprep.subr.bf16.mxu1 %v8774_v29  ;;  %v8847_v15 = vld [vmem:[#allocation5 + $0x6c8] ss:$48 sps:$4 sm:$0xff]   ;;  %v8850_v16 = vld [vmem:[#allocation5 + $0x6c0] ss:$48 sps:$4 sm:$0xff]   ;;  %v8861_v18 = vld [vmem:[#allocation5 + $0x724] ss:$48 sps:$4 sm:$0xff]  }
  0x8b   :  { %v8856_v19 = vld [vmem:[#allocation5 + $0x728] ss:$48 sps:$4 sm:$0xff]   ;;  %v8859_v20 = vld [vmem:[#allocation5 + $0x720] ss:$48 sps:$4 sm:$0xff]   ;;  %v8867_v21 = vld [vmem:[#allocation5 + $0x78c] ss:$48 sps:$4 sm:$0xff]  }
  0x8c   :  { %v8870_v22 = vld [vmem:[#allocation5 + $0x784] ss:$48 sps:$4 sm:$0xff]   ;;  %v9926_v23 = vld [vmem:[#allocation2 + $0x30] ss:$12 sps:$4 sm:$0xff]   ;;  %v9928_v24 = vld [vmem:[#allocation2 + $0x4c] ss:$12 sps:$4 sm:$0xff]  }
  0x8d   :  { %2070 = vmatpush1.bf16.msra.mxu0 %v8776_v30  ;;  %2296 = vmatpush1.bf16.msra.mxu1 %v8777_v31  ;;  %v8865_v25 = vld [vmem:[#allocation5 + $0x788] ss:$48 sps:$4 sm:$0xff]   ;;  %v8868_v26 = vld [vmem:[#allocation5 + $0x780] ss:$48 sps:$4 sm:$0xff]   ;;  %v8876_v27 = vld [vmem:[#allocation5 + $0x7ec] ss:$48 sps:$4 sm:$0xff]  }
  0x8e   :  { %2071 = vmatprep.subr.bf16.mxu0 %v8778_v32  ;;  %2297 = vmatprep.subr.bf16.mxu1 %v8780_v33  ;;  %v8879_v28 = vld [vmem:[#allocation5 + $0x7e4] ss:$48 sps:$4 sm:$0xff]   ;;  %v8874_v29 = vld [vmem:[#allocation5 + $0x7e8] ss:$48 sps:$4 sm:$0xff]   ;;  %v8877_v30 = vld [vmem:[#allocation5 + $0x7e0] ss:$48 sps:$4 sm:$0xff]  }
  0x8f   :  { %v8885_v31 = vld [vmem:[#allocation5 + $0x84c] ss:$48 sps:$4 sm:$0xff]   ;;  %v8888_v32 = vld [vmem:[#allocation5 + $0x844] ss:$48 sps:$4 sm:$0xff]   ;;  %s9799_s5 = smov [#allocation13]  }
  0x90   :  { %v8855_v33 = vld [vmem:[#allocation2 + $0x48] ss:$12 sps:$4 sm:$0xff]   ;;  %v8889_v48 = vld [vmem:[#allocation2 + $0xac] ss:$12 sps:$4 sm:$0xff]   ;;  %s7141_s1 = sshll.u32 %s9799_s5, 4  ;;  %s7142_s1 = int_to_ptr.vmem [resolvable:$true] %s7141_s1 }
  0x91   :  { %2072 = vmatpush1.bf16.msra.mxu0 %v8782_v34  ;;  %2298 = vmatpush1.bf16.msra.mxu1 %v8783_v35  ;;  %v8862_v34 = vld [vmem:[#allocation2 + $0x64] ss:$12 sps:$4 sm:$0xff]   ;;  %v8883_v35 = vld [vmem:[#allocation5 + $0x848] ss:$48 sps:$4 sm:$0xff]   ;;  %s9754_s0 = scalar_lea.vmem %s7142_s1, 6144  ;;  %p9759_p7 = scmp.lt.s32.totalorder %s7142_s1, %s7142_s1 }
  0x92   :  { %2073 = vmatprep.subr.bf16.mxu0 %v8784_v36  ;;  %2299 = vmatprep.subr.bf16.mxu1 %v8786_v37  ;;  %v8886_v36 = vld [vmem:[#allocation5 + $0x840] ss:$48 sps:$4 sm:$0xff]   ;;  %v8894_v37 = vld [vmem:[#allocation5 + $0x8ac] ss:$48 sps:$4 sm:$0xff]   ;;  %p9755_p6 = scmp.ne.s32.totalorder %s7142_s1, %s9754_s0  ;;  %p9760_p8 = scmp.lt.s32.totalorder %s9754_s0, %s9754_s0 }
  0x94   :  { %p9761_p9 = por %p9760_p8, %p9759_p7 }
  0x95   :  { %2074 = vmatpush1.bf16.msra.mxu0 %v8788_v38  ;;  %2300 = vmatpush1.bf16.msra.mxu1 %v8789_v39  ;;  %v8897_v38 = vld [vmem:[#allocation5 + $0x8a4] ss:$48 sps:$4 sm:$0xff]   ;;  %v8892_v39 = vld [vmem:[#allocation5 + $0x8a8] ss:$48 sps:$4 sm:$0xff]  }
  0x96   :  { %2075 = vmatprep.subr.bf16.mxu0 %v8790_v40  ;;  %2301 = vmatprep.subr.bf16.mxu1 %v8792_v41  ;;  %v8895_v40 = vld [vmem:[#allocation5 + $0x8a0] ss:$48 sps:$4 sm:$0xff]   ;;  %v8901_v41 = vld [vmem:[#allocation5 + $0x14] ss:$48 sps:$4 sm:$0xff]   ;;  %p9762_p10 = pnand %p9761_p9, %p9755_p6 }
  0x99   :  { %2076 = vmatpush1.bf16.msra.mxu0 %v8794_v42  ;;  %2302 = vmatpush1.bf16.msra.mxu1 %v8795_v43  ;;  %v8904_v42 = vld [vmem:[#allocation5 + $0x1c] ss:$48 sps:$4 sm:$0xff]  }
  0x9a   :  { %2077 = vmatprep.subr.bf16.mxu0 %v8796_v44  ;;  %2303 = vmatprep.subr.bf16.mxu1 %v8798_v45  ;;  %v8864_v43 = vld [vmem:[#allocation2 + $0x60] ss:$12 sps:$4 sm:$0xff]   ;;  %v8871_v44 = vld [vmem:[#allocation2 + $0x7c] ss:$12 sps:$4 sm:$0xff]   ;;  %v8873_v45 = vld [vmem:[#allocation2 + $0x78] ss:$12 sps:$4 sm:$0xff]  }
  0x9d   :  { %2078 = vmatpush1.bf16.msra.mxu0 %v8800_v46  ;;  %2304 = vmatpush1.bf16.msra.mxu1 %v8801_v47  ;;  %v8880_v46 = vld [vmem:[#allocation2 + $0x94] ss:$12 sps:$4 sm:$0xff]   ;;  %v8882_v47 = vld [vmem:[#allocation2 + $0x90] ss:$12 sps:$4 sm:$0xff]  }
  0x9e   :  { %2079 = vmatprep.subr.bf16.mxu0 %v8802_v49  ;;  %2305 = vmatprep.subr.bf16.mxu1 %v8804_v50  ;;  %v8891_v49 = vld [vmem:[#allocation2 + $0xa8] ss:$12 sps:$4 sm:$0xff]   ;;  %v9798_v50 = vmov 0  }
  0xa1   :  { %2080 = vmatpush1.bf16.msra.mxu0 %v8806_v51  ;;  %2306 = vmatpush1.bf16.msra.mxu1 %v8807_v52  ;;  %v8898_v51 = vld [vmem:[#allocation2 + $0x8] ss:$12 sps:$4 sm:$0xff]   ;;  %v8899_v52 = vld [vmem:[#allocation5 + $0x10] ss:$48 sps:$4 sm:$0xff]  }
  0xa2   :  { %2081 = vmatprep.subr.bf16.mxu0 %v8808_v53  ;;  %2307 = vmatprep.subr.bf16.mxu1 %v8810_v54  ;;  %v8902_v53 = vld [vmem:[#allocation5 + $0x18] ss:$48 sps:$4 sm:$0xff]   ;;  %v8907_v54 = vld [vmem:[#allocation5 + $0x74] ss:$48 sps:$4 sm:$0xff]  }
  0xa5   :  { %2082 = vmatpush1.bf16.msra.mxu0 %v8812_v55  ;;  %2308 = vmatpush1.bf16.msra.mxu1 %v8813_v56  ;;  %v8910_v55 = vld [vmem:[#allocation5 + $0x7c] ss:$48 sps:$4 sm:$0xff]   ;;  %v8905_v56 = vld [vmem:[#allocation5 + $0x70] ss:$48 sps:$4 sm:$0xff]  }
  0xa6   :  { %2083 = vmatprep.subr.bf16.mxu0 %v8814_v57  ;;  %2309 = vmatprep.subr.bf16.mxu1 %v8816_v58  ;;  %v8908_v57 = vld [vmem:[#allocation5 + $0x78] ss:$48 sps:$4 sm:$0xff]   ;;  %v8914_v58 = vld [vmem:[#allocation5 + $0xd4] ss:$48 sps:$4 sm:$0xff]  }
  0xa9   :  { %2084 = vmatpush1.bf16.msra.mxu0 %v8818_v59  ;;  %2310 = vmatpush1.bf16.msra.mxu1 %v8819_v60  ;;  %v8917_v59 = vld [vmem:[#allocation5 + $0xdc] ss:$48 sps:$4 sm:$0xff]  }
  0xaa   :  { %2085 = vmatprep.subr.bf16.mxu0 %v8820_v61  ;;  %2311 = vmatprep.subr.bf16.mxu1 %v8822_v62  ;;  %v8911_v60 = vld [vmem:[#allocation2 + $0x20] ss:$12 sps:$4 sm:$0xff]   ;;  %v8915_v62 = vld [vmem:[#allocation5 + $0xd8] ss:$48 sps:$4 sm:$0xff]  }
  0xab   :  { %v8912_v61 = vld [vmem:[#allocation5 + $0xd0] ss:$48 sps:$4 sm:$0xff]  }
  0xad   :  { %2086 = vmatpush1.bf16.msra.mxu0 %v8824_v63  ;;  %2312 = vmatpush1.bf16.msra.mxu1 %v8825_v0  ;;  %v8920_v63 = vld [vmem:[#allocation5 + $0x134] ss:$48 sps:$4 sm:$0xff]   ;;  %v8923_v0 = vld [vmem:[#allocation5 + $0x13c] ss:$48 sps:$4 sm:$0xff]  }
  0xae   :  { %2394 = vmatprep.subr.bf16.mxu1 %v8831_v1  ;;  %2168 = vmatprep.subr.bf16.mxu0 %v8834_v2  ;;  %v8918_v1 = vld [vmem:[#allocation5 + $0x130] ss:$48 sps:$4 sm:$0xff]   ;;  %v8921_v2 = vld [vmem:[#allocation5 + $0x138] ss:$48 sps:$4 sm:$0xff]  }
  0xb0   :  { %2088 = vmatmul.mubr.bf16.vlgmr.msra.gmra.mrb[0].mxu0 %v9910_v3  ;;  %2314 = vmatmul.mubr.bf16.vlgmr.msra.gmra.mrb[0].mxu1 %v9910_v3 }
  0xb1   :  { %2395 = vmatpush1.bf16.msra.mxu1 %v8829_v4  ;;  %2169 = vmatpush1.bf16.msra.mxu0 %v8832_v5  ;;  %v8927_v4 = vld [vmem:[#allocation5 + $0x194] ss:$48 sps:$4 sm:$0xff]   ;;  %v8930_v5 = vld [vmem:[#allocation5 + $0x19c] ss:$48 sps:$4 sm:$0xff]  }
  0xb2   :  { %2097 = vmatprep.mubr.bf16.mxu0 %v9912_v6  ;;  %2323 = vmatprep.mubr.bf16.mxu1 %v9912_v6 }
  0xb3   :  { %2396 = vmatprep.subr.bf16.mxu1 %v8840_v7  ;;  %2170 = vmatprep.subr.bf16.mxu0 %v8843_v8  ;;  %v8924_v7 = vld [vmem:[#allocation2 + $0x38] ss:$12 sps:$4 sm:$0xff]   ;;  %v8925_v8 = vld [vmem:[#allocation5 + $0x190] ss:$48 sps:$4 sm:$0xff]  }
  0xb5   :  { %2397 = vmatpush1.bf16.msra.mxu1 %v8838_v9  ;;  %2171 = vmatpush1.bf16.msra.mxu0 %v8841_v10  ;;  %v8928_v9 = vld [vmem:[#allocation5 + $0x198] ss:$48 sps:$4 sm:$0xff]   ;;  %v8933_v10 = vld [vmem:[#allocation5 + $0x1f4] ss:$48 sps:$4 sm:$0xff]  }
  0xb6   :  { %2398 = vmatprep.subr.bf16.mxu1 %v8849_v11  ;;  %2172 = vmatprep.subr.bf16.mxu0 %v8852_v12  ;;  %v8936_v11 = vld [vmem:[#allocation5 + $0x1fc] ss:$48 sps:$4 sm:$0xff]   ;;  %v8931_v12 = vld [vmem:[#allocation5 + $0x1f0] ss:$48 sps:$4 sm:$0xff]  }
  0xb8   :  { %2098 = vmatmul.mubr.bf16.gmra.mrb[4].mxu0 %v9918_v13  ;;  %2324 = vmatmul.mubr.bf16.gmra.mrb[4].mxu1 %v9918_v13 }
  0xb9   :  { %2107 = vmatprep.mubr.bf16.mxu0 %v9920_v14  ;;  %2333 = vmatprep.mubr.bf16.mxu1 %v9920_v14 }
  0xba   :  { %2399 = vmatpush1.bf16.msra.mxu1 %v8847_v15  ;;  %2173 = vmatpush1.bf16.msra.mxu0 %v8850_v16  ;;  %v8934_v15 = vld [vmem:[#allocation5 + $0x1f8] ss:$48 sps:$4 sm:$0xff]   ;;  %v8940_v16 = vld [vmem:[#allocation5 + $0x254] ss:$48 sps:$4 sm:$0xff]  }
  0xbb   :  { %2400 = vmatprep.subr.bf16.mxu1 %v8858_v17  ;;  %2174 = vmatprep.subr.bf16.mxu0 %v8861_v18  ;;  %v8943_v17 = vld [vmem:[#allocation5 + $0x25c] ss:$48 sps:$4 sm:$0xff]  }
  0xbc   :  { %v8937_v18 = vld [vmem:[#allocation2 + $0x50] ss:$12 sps:$4 sm:$0xff]  }
  0xbe   :  { %2401 = vmatpush1.bf16.msra.mxu1 %v8856_v19  ;;  %2175 = vmatpush1.bf16.msra.mxu0 %v8859_v20  ;;  %v8938_v19 = vld [vmem:[#allocation5 + $0x250] ss:$48 sps:$4 sm:$0xff]   ;;  %v8941_v20 = vld [vmem:[#allocation5 + $0x258] ss:$48 sps:$4 sm:$0xff]  }
  0xbf   :  { %2402 = vmatprep.subr.bf16.mxu1 %v8867_v21  ;;  %2176 = vmatprep.subr.bf16.mxu0 %v8870_v22  ;;  %v8946_v21 = vld [vmem:[#allocation5 + $0x2b4] ss:$48 sps:$4 sm:$0xff]   ;;  %v8949_v22 = vld [vmem:[#allocation5 + $0x2bc] ss:$48 sps:$4 sm:$0xff]  }
  0xc0   :  { %2108 = vmatmul.mubr.bf16.gmra.mrb[8].mxu0 %v9926_v23  ;;  %2334 = vmatmul.mubr.bf16.gmra.mrb[8].mxu1 %v9926_v23 }
  0xc1   :  { %2117 = vmatprep.mubr.bf16.mxu0 %v9928_v24  ;;  %2343 = vmatprep.mubr.bf16.mxu1 %v9928_v24 }
  0xc2   :  { %2403 = vmatpush1.bf16.msra.mxu1 %v8865_v25  ;;  %2177 = vmatpush1.bf16.msra.mxu0 %v8868_v26  ;;  %v8944_v25 = vld [vmem:[#allocation5 + $0x2b0] ss:$48 sps:$4 sm:$0xff]   ;;  %v8947_v26 = vld [vmem:[#allocation5 + $0x2b8] ss:$48 sps:$4 sm:$0xff]  }
  0xc3   :  { %2404 = vmatprep.subr.bf16.mxu1 %v8876_v27  ;;  %2178 = vmatprep.subr.bf16.mxu0 %v8879_v28  ;;  %v8953_v27 = vld [vmem:[#allocation5 + $0x314] ss:$48 sps:$4 sm:$0xff]   ;;  %v8956_v28 = vld [vmem:[#allocation5 + $0x31c] ss:$48 sps:$4 sm:$0xff]  }
  0xc6   :  { %2405 = vmatpush1.bf16.msra.mxu1 %v8874_v29  ;;  %2179 = vmatpush1.bf16.msra.mxu0 %v8877_v30  ;;  %v8950_v29 = vld [vmem:[#allocation2 + $0x68] ss:$12 sps:$4 sm:$0xff]   ;;  %v8951_v30 = vld [vmem:[#allocation5 + $0x310] ss:$48 sps:$4 sm:$0xff]  }
  0xc7   :  { %2406 = vmatprep.subr.bf16.mxu1 %v8885_v31  ;;  %2180 = vmatprep.subr.bf16.mxu0 %v8888_v32  ;;  %v8954_v31 = vld [vmem:[#allocation5 + $0x318] ss:$48 sps:$4 sm:$0xff]   ;;  %v8959_v32 = vld [vmem:[#allocation5 + $0x374] ss:$48 sps:$4 sm:$0xff]  }
  0xc8   :  { %2118 = vmatmul.mubr.bf16.gmra.mrb[12].mxu0 %v8855_v33  ;;  %2344 = vmatmul.mubr.bf16.gmra.mrb[12].mxu1 %v8855_v33  ;;  %v8962_v33 = vld [vmem:[#allocation5 + $0x37c] ss:$48 sps:$4 sm:$0xff]  }
  0xc9   :  { %2127 = vmatprep.mubr.bf16.mxu0 %v8862_v34  ;;  %2353 = vmatprep.mubr.bf16.mxu1 %v8862_v34  ;;  %v8957_v34 = vld [vmem:[#allocation5 + $0x370] ss:$48 sps:$4 sm:$0xff]  }
  0xca   :  { %2407 = vmatpush1.bf16.msra.mxu1 %v8883_v35  ;;  %2181 = vmatpush1.bf16.msra.mxu0 %v8886_v36  ;;  %v8960_v35 = vld [vmem:[#allocation5 + $0x378] ss:$48 sps:$4 sm:$0xff]   ;;  %v8966_v36 = vld [vmem:[#allocation5 + $0x3d4] ss:$48 sps:$4 sm:$0xff]  }
  0xcb   :  { %2408 = vmatprep.subr.bf16.mxu1 %v8894_v37  ;;  %2182 = vmatprep.subr.bf16.mxu0 %v8897_v38  ;;  %v8969_v37 = vld [vmem:[#allocation5 + $0x3dc] ss:$48 sps:$4 sm:$0xff]  }
  0xcc   :  { %v8963_v38 = vld [vmem:[#allocation2 + $0x80] ss:$12 sps:$4 sm:$0xff]  }
  0xce   :  { %2409 = vmatpush1.bf16.msra.mxu1 %v8892_v39  ;;  %2183 = vmatpush1.bf16.msra.mxu0 %v8895_v40  ;;  %v8964_v39 = vld [vmem:[#allocation5 + $0x3d0] ss:$48 sps:$4 sm:$0xff]   ;;  %v8967_v40 = vld [vmem:[#allocation5 + $0x3d8] ss:$48 sps:$4 sm:$0xff]  }
  0xcf   :  { %2507 = vmatprep.subr.bf16.mxu0 %v8901_v41  ;;  %2733 = vmatprep.subr.bf16.mxu1 %v8904_v42  ;;  %v8972_v41 = vld [vmem:[#allocation5 + $0x434] ss:$48 sps:$4 sm:$0xff]   ;;  %v8975_v42 = vld [vmem:[#allocation5 + $0x43c] ss:$48 sps:$4 sm:$0xff]  }
  0xd0   :  { %2128 = vmatmul.mubr.bf16.gmra.mrb[16].mxu0 %v8864_v43  ;;  %2354 = vmatmul.mubr.bf16.gmra.mrb[16].mxu1 %v8864_v43  ;;  %v8970_v43 = vld [vmem:[#allocation5 + $0x430] ss:$48 sps:$4 sm:$0xff]  }
  0xd1   :  { %2137 = vmatprep.mubr.bf16.mxu0 %v8871_v44  ;;  %2363 = vmatprep.mubr.bf16.mxu1 %v8871_v44  ;;  %v8973_v44 = vld [vmem:[#allocation5 + $0x438] ss:$48 sps:$4 sm:$0xff]  }
  0xd8   :  { %2138 = vmatmul.mubr.bf16.gmra.mrb[20].mxu0 %v8873_v45  ;;  %2364 = vmatmul.mubr.bf16.gmra.mrb[20].mxu1 %v8873_v45  ;;  %v8979_v45 = vld [vmem:[#allocation5 + $0x494] ss:$48 sps:$4 sm:$0xff]  }
  0xd9   :  { %2147 = vmatprep.mubr.bf16.mxu0 %v8880_v46  ;;  %2373 = vmatprep.mubr.bf16.mxu1 %v8880_v46  ;;  %v8982_v46 = vld [vmem:[#allocation5 + $0x49c] ss:$48 sps:$4 sm:$0xff]  }
  0xe0   :  { %2148 = vmatmul.mubr.bf16.gmra.mrb[24].mxu0 %v8882_v47  ;;  %2374 = vmatmul.mubr.bf16.gmra.mrb[24].mxu1 %v8882_v47  ;;  %v8976_v47 = vld [vmem:[#allocation2 + $0x98] ss:$12 sps:$4 sm:$0xff]  }
  0xe1   :  { %2157 = vmatprep.mubr.bf16.mxu0 %v8889_v48  ;;  %2383 = vmatprep.mubr.bf16.mxu1 %v8889_v48  ;;  %v8977_v48 = vld [vmem:[#allocation5 + $0x490] ss:$48 sps:$4 sm:$0xff]  }
  0xe8   :  { %2158 = vmatmul.mubr.bf16.gmra.mrb[28].mxu0 %v8891_v49  ;;  %2384 = vmatmul.mubr.bf16.gmra.mrb[28].mxu1 %v8891_v49  ;;  %v8980_v49 = vld [vmem:[#allocation5 + $0x498] ss:$48 sps:$4 sm:$0xff]  }
  0xe9   :  { %2200 = vmatprep.mubr.bf16.mxu0 %v9798_v50  ;;  %2426 = vmatprep.mubr.bf16.mxu1 %v9798_v50 }
  0xf0   :  { %2201 = vmatmul.mubr.bf16.vlgmr.msra.gmra.mrb[0].mxu0 %v8898_v51  ;;  %2427 = vmatmul.mubr.bf16.vlgmr.msra.gmra.mrb[0].mxu1 %v8898_v51  ;;  %v8985_v51 = vld [vmem:[#allocation5 + $0x4f4] ss:$48 sps:$4 sm:$0xff]  }
  0xf1   :  { %2508 = vmatpush1.bf16.msra.mxu0 %v8899_v52  ;;  %2734 = vmatpush1.bf16.msra.mxu1 %v8902_v53  ;;  %v8988_v52 = vld [vmem:[#allocation5 + $0x4fc] ss:$48 sps:$4 sm:$0xff]   ;;  %v8983_v53 = vld [vmem:[#allocation5 + $0x4f0] ss:$48 sps:$4 sm:$0xff]  }
  0xf2   :  { %2509 = vmatprep.subr.bf16.mxu0 %v8907_v54  ;;  %2735 = vmatprep.subr.bf16.mxu1 %v8910_v55  ;;  %v8986_v54 = vld [vmem:[#allocation5 + $0x4f8] ss:$48 sps:$4 sm:$0xff]   ;;  %v8992_v55 = vld [vmem:[#allocation5 + $0x554] ss:$48 sps:$4 sm:$0xff]  }
  0xf3   :  { %2210 = vmatprep.mubr.bf16.mxu0 %v9798_v50  ;;  %2436 = vmatprep.mubr.bf16.mxu1 %v9798_v50 }
  0xf5   :  { %2510 = vmatpush1.bf16.msra.mxu0 %v8905_v56  ;;  %2736 = vmatpush1.bf16.msra.mxu1 %v8908_v57  ;;  %v8995_v56 = vld [vmem:[#allocation5 + $0x55c] ss:$48 sps:$4 sm:$0xff]  }
  0xf6   :  { %2511 = vmatprep.subr.bf16.mxu0 %v8914_v58  ;;  %2737 = vmatprep.subr.bf16.mxu1 %v8917_v59  ;;  %v8989_v57 = vld [vmem:[#allocation2 + $0xb0] ss:$12 sps:$4 sm:$0xff]   ;;  %v8993_v59 = vld [vmem:[#allocation5 + $0x558] ss:$48 sps:$4 sm:$0xff]  }
  0xf7   :  { %v8990_v58 = vld [vmem:[#allocation5 + $0x550] ss:$48 sps:$4 sm:$0xff]  }
  0xf8   :  { %2211 = vmatmul.mubr.bf16.gmra.mrb[4].mxu0 %v8911_v60  ;;  %2437 = vmatmul.mubr.bf16.gmra.mrb[4].mxu1 %v8911_v60  ;;  %v8998_v60 = vld [vmem:[#allocation5 + $0x5b4] ss:$48 sps:$4 sm:$0xff]  }
  0xf9   :  { %2512 = vmatpush1.bf16.msra.mxu0 %v8912_v61  ;;  %2738 = vmatpush1.bf16.msra.mxu1 %v8915_v62  ;;  %v9001_v61 = vld [vmem:[#allocation5 + $0x5bc] ss:$48 sps:$4 sm:$0xff]   ;;  %v8996_v62 = vld [vmem:[#allocation5 + $0x5b0] ss:$48 sps:$4 sm:$0xff]  }
  0xfa   :  { %2513 = vmatprep.subr.bf16.mxu0 %v8920_v63  ;;  %2739 = vmatprep.subr.bf16.mxu1 %v8923_v0  ;;  %v8999_v63 = vld [vmem:[#allocation5 + $0x5b8] ss:$48 sps:$4 sm:$0xff]   ;;  %v9004_v0 = vld [vmem:[#allocation5 + $0x61c] ss:$48 sps:$4 sm:$0xff]  }
  0xfb   :  { %2220 = vmatprep.mubr.bf16.mxu0 %v9798_v50  ;;  %2446 = vmatprep.mubr.bf16.mxu1 %v9798_v50 }
  0xfd   :  { %2514 = vmatpush1.bf16.msra.mxu0 %v8918_v1  ;;  %2740 = vmatpush1.bf16.msra.mxu1 %v8921_v2  ;;  %v9007_v1 = vld [vmem:[#allocation5 + $0x614] ss:$48 sps:$4 sm:$0xff]  }
  0xfe   :  { %2515 = vmatprep.subr.bf16.mxu0 %v8927_v4  ;;  %2741 = vmatprep.subr.bf16.mxu1 %v8930_v5  ;;  %v9578_v2 = vld [vmem:[#allocation2 + $0x4] ss:$12 sps:$4 sm:$0xff]   ;;  %v9002_v4 = vld [vmem:[#allocation5 + $0x618] ss:$48 sps:$4 sm:$0xff]  }
  0xff   :  { %v9005_v5 = vld [vmem:[#allocation5 + $0x610] ss:$48 sps:$4 sm:$0xff]  }
 0x100   :  { %2221 = vmatmul.mubr.bf16.gmra.mrb[8].mxu0 %v8924_v7  ;;  %2447 = vmatmul.mubr.bf16.gmra.mrb[8].mxu1 %v8924_v7  ;;  %v9010_v7 = vld [vmem:[#allocation5 + $0x67c] ss:$48 sps:$4 sm:$0xff]  }
 0x101   :  { %2516 = vmatpush1.bf16.msra.mxu0 %v8925_v8  ;;  %2742 = vmatpush1.bf16.msra.mxu1 %v8928_v9  ;;  %v9013_v8 = vld [vmem:[#allocation5 + $0x674] ss:$48 sps:$4 sm:$0xff]   ;;  %v9008_v9 = vld [vmem:[#allocation5 + $0x678] ss:$48 sps:$4 sm:$0xff]  }
 0x102   :  { %2517 = vmatprep.subr.bf16.mxu0 %v8933_v10  ;;  %2743 = vmatprep.subr.bf16.mxu1 %v8936_v11  ;;  %v9011_v10 = vld [vmem:[#allocation5 + $0x670] ss:$48 sps:$4 sm:$0xff]   ;;  %v9016_v11 = vld [vmem:[#allocation5 + $0x6dc] ss:$48 sps:$4 sm:$0xff]  }
 0x103   :  { %2230 = vmatprep.mubr.bf16.mxu0 %v9798_v50  ;;  %2456 = vmatprep.mubr.bf16.mxu1 %v9798_v50 }
 0x105   :  { %2518 = vmatpush1.bf16.msra.mxu0 %v8931_v12  ;;  %2744 = vmatpush1.bf16.msra.mxu1 %v8934_v15  ;;  %v9019_v12 = vld [vmem:[#allocation5 + $0x6d4] ss:$48 sps:$4 sm:$0xff]   ;;  %v9014_v15 = vld [vmem:[#allocation5 + $0x6d8] ss:$48 sps:$4 sm:$0xff]  }
 0x106   :  { %2519 = vmatprep.subr.bf16.mxu0 %v8940_v16  ;;  %2745 = vmatprep.subr.bf16.mxu1 %v8943_v17  ;;  %v9017_v16 = vld [vmem:[#allocation5 + $0x6d0] ss:$48 sps:$4 sm:$0xff]   ;;  %v9022_v17 = vld [vmem:[#allocation5 + $0x73c] ss:$48 sps:$4 sm:$0xff]  }
 0x108   :  { %2231 = vmatmul.mubr.bf16.gmra.mrb[12].mxu0 %v8937_v18  ;;  %2457 = vmatmul.mubr.bf16.gmra.mrb[12].mxu1 %v8937_v18  ;;  %v9025_v18 = vld [vmem:[#allocation5 + $0x734] ss:$48 sps:$4 sm:$0xff]  }
 0x109   :  { %2520 = vmatpush1.bf16.msra.mxu0 %v8938_v19  ;;  %2746 = vmatpush1.bf16.msra.mxu1 %v8941_v20  ;;  %v9023_v19 = vld [vmem:[#allocation5 + $0x730] ss:$48 sps:$4 sm:$0xff]   ;;  %v9031_v20 = vld [vmem:[#allocation5 + $0x794] ss:$48 sps:$4 sm:$0xff]  }
 0x10a   :  { %2521 = vmatprep.subr.bf16.mxu0 %v8946_v21  ;;  %2747 = vmatprep.subr.bf16.mxu1 %v8949_v22  ;;  %v9026_v21 = vld [vmem:[#allocation5 + $0x798] ss:$48 sps:$4 sm:$0xff]   ;;  %v9029_v22 = vld [vmem:[#allocation5 + $0x790] ss:$48 sps:$4 sm:$0xff]  }
 0x10b   :  { %2240 = vmatprep.mubr.bf16.mxu0 %v9798_v50  ;;  %2466 = vmatprep.mubr.bf16.mxu1 %v9798_v50 }
 0x10d   :  { %2522 = vmatpush1.bf16.msra.mxu0 %v8944_v25  ;;  %2748 = vmatpush1.bf16.msra.mxu1 %v8947_v26  ;;  %v9034_v25 = vld [vmem:[#allocation5 + $0x7fc] ss:$48 sps:$4 sm:$0xff]   ;;  %v9037_v26 = vld [vmem:[#allocation5 + $0x7f4] ss:$48 sps:$4 sm:$0xff]  }
 0x10e   :  { %2523 = vmatprep.subr.bf16.mxu0 %v8953_v27  ;;  %2749 = vmatprep.subr.bf16.mxu1 %v8956_v28  ;;  %v9035_v27 = vld [vmem:[#allocation5 + $0x7f0] ss:$48 sps:$4 sm:$0xff]   ;;  %v9040_v28 = vld [vmem:[#allocation5 + $0x85c] ss:$48 sps:$4 sm:$0xff]  }
 0x110   :  { %2241 = vmatmul.mubr.bf16.gmra.mrb[16].mxu0 %v8950_v29  ;;  %2467 = vmatmul.mubr.bf16.gmra.mrb[16].mxu1 %v8950_v29  ;;  %v9043_v29 = vld [vmem:[#allocation5 + $0x854] ss:$48 sps:$4 sm:$0xff]  }
 0x111   :  { %2524 = vmatpush1.bf16.msra.mxu0 %v8951_v30  ;;  %2750 = vmatpush1.bf16.msra.mxu1 %v8954_v31  ;;  %v9038_v30 = vld [vmem:[#allocation5 + $0x858] ss:$48 sps:$4 sm:$0xff]   ;;  %v9041_v31 = vld [vmem:[#allocation5 + $0x850] ss:$48 sps:$4 sm:$0xff]  }
 0x112   :  { %2525 = vmatprep.subr.bf16.mxu0 %v8959_v32  ;;  %2751 = vmatprep.subr.bf16.mxu1 %v8962_v33  ;;  %v9046_v32 = vld [vmem:[#allocation5 + $0x8bc] ss:$48 sps:$4 sm:$0xff]   ;;  %v9049_v33 = vld [vmem:[#allocation5 + $0x8b4] ss:$48 sps:$4 sm:$0xff]  }
 0x113   :  { %2250 = vmatprep.mubr.bf16.mxu0 %v9798_v50  ;;  %2476 = vmatprep.mubr.bf16.mxu1 %v9798_v50 }
 0x115   :  { %2526 = vmatpush1.bf16.msra.mxu0 %v8957_v34  ;;  %2752 = vmatpush1.bf16.msra.mxu1 %v8960_v35  ;;  %v9047_v34 = vld [vmem:[#allocation5 + $0x8b0] ss:$48 sps:$4 sm:$0xff]  }
 0x116   :  { %2527 = vmatprep.subr.bf16.mxu0 %v8966_v36  ;;  %2753 = vmatprep.subr.bf16.mxu1 %v8969_v37  ;;  %v9581_v35 = vld [vmem:[#allocation2 + $0x64] ss:$12 sps:$4 sm:$0xff]   ;;  %v9055_v37 = vld [vmem:[#allocation5 + $0x2c] ss:$48 sps:$4 sm:$0xff]  }
 0x117   :  { %v9052_v36 = vld [vmem:[#allocation5 + $0x24] ss:$48 sps:$4 sm:$0xff]  }
 0x118   :  { %2251 = vmatmul.mubr.bf16.gmra.mrb[20].mxu0 %v8963_v38  ;;  %2477 = vmatmul.mubr.bf16.gmra.mrb[20].mxu1 %v8963_v38  ;;  %v9582_v38 = vld [vmem:[#allocation2 + $0x60] ss:$12 sps:$4 sm:$0xff]  }
 0x119   :  { %2528 = vmatpush1.bf16.msra.mxu0 %v8964_v39  ;;  %2754 = vmatpush1.bf16.msra.mxu1 %v8967_v40  ;;  %v9583_v39 = vld [vmem:[#allocation2 + $0x7c] ss:$12 sps:$4 sm:$0xff]   ;;  %v9584_v40 = vld [vmem:[#allocation2 + $0x78] ss:$12 sps:$4 sm:$0xff]  }
 0x11a   :  { %2529 = vmatprep.subr.bf16.mxu0 %v8972_v41  ;;  %2755 = vmatprep.subr.bf16.mxu1 %v8975_v42  ;;  %v9585_v41 = vld [vmem:[#allocation2 + $0x94] ss:$12 sps:$4 sm:$0xff]   ;;  %v9586_v42 = vld [vmem:[#allocation2 + $0x90] ss:$12 sps:$4 sm:$0xff]  }
 0x11b   :  { %2260 = vmatprep.mubr.bf16.mxu0 %v9798_v50  ;;  %2486 = vmatprep.mubr.bf16.mxu1 %v9798_v50 }
 0x11d   :  { %2530 = vmatpush1.bf16.msra.mxu0 %v8970_v43  ;;  %2756 = vmatpush1.bf16.msra.mxu1 %v8973_v44  ;;  %v9587_v43 = vld [vmem:[#allocation2 + $0xac] ss:$12 sps:$4 sm:$0xff]   ;;  %v9588_v44 = vld [vmem:[#allocation2 + $0xa8] ss:$12 sps:$4 sm:$0xff]  }
 0x11e   :  { %2531 = vmatprep.subr.bf16.mxu0 %v8979_v45  ;;  %2757 = vmatprep.subr.bf16.mxu1 %v8982_v46  ;;  %v9050_v45 = vld [vmem:[#allocation5 + $0x20] ss:$48 sps:$4 sm:$0xff]   ;;  %v9053_v46 = vld [vmem:[#allocation5 + $0x28] ss:$48 sps:$4 sm:$0xff]  }
 0x120   :  { %2261 = vmatmul.mubr.bf16.gmra.mrb[24].mxu0 %v8976_v47  ;;  %2487 = vmatmul.mubr.bf16.gmra.mrb[24].mxu1 %v8976_v47  ;;  %v9058_v47 = vld [vmem:[#allocation5 + $0x84] ss:$48 sps:$4 sm:$0xff]  }
 0x121   :  { %2532 = vmatpush1.bf16.msra.mxu0 %v8977_v48  ;;  %2758 = vmatpush1.bf16.msra.mxu1 %v8980_v49  ;;  %v9061_v48 = vld [vmem:[#allocation5 + $0x8c] ss:$48 sps:$4 sm:$0xff]   ;;  %v9056_v49 = vld [vmem:[#allocation5 + $0x80] ss:$48 sps:$4 sm:$0xff]  }
 0x122   :  { %2533 = vmatprep.subr.bf16.mxu0 %v8985_v51  ;;  %2759 = vmatprep.subr.bf16.mxu1 %v8988_v52  ;;  %v9059_v51 = vld [vmem:[#allocation5 + $0x88] ss:$48 sps:$4 sm:$0xff]  }
 0x123   :  { %2270 = vmatprep.mubr.bf16.mxu0 %v9798_v50  ;;  %2496 = vmatprep.mubr.bf16.mxu1 %v9798_v50  ;;  %v9589_v52 = vld [vmem:[#allocation2 + $0x8] ss:$12 sps:$4 sm:$0xff]  }
 0x125   :  { %2534 = vmatpush1.bf16.msra.mxu0 %v8983_v53  ;;  %2760 = vmatpush1.bf16.msra.mxu1 %v8986_v54  ;;  %v9064_v53 = vld [vmem:[#allocation5 + $0xe4] ss:$48 sps:$4 sm:$0xff]   ;;  %v9067_v54 = vld [vmem:[#allocation5 + $0xec] ss:$48 sps:$4 sm:$0xff]  }
 0x126   :  { %2535 = vmatprep.subr.bf16.mxu0 %v8992_v55  ;;  %2761 = vmatprep.subr.bf16.mxu1 %v8995_v56  ;;  %v9062_v55 = vld [vmem:[#allocation5 + $0xe0] ss:$48 sps:$4 sm:$0xff]   ;;  %v9065_v56 = vld [vmem:[#allocation5 + $0xe8] ss:$48 sps:$4 sm:$0xff]  }
 0x128   :  { %2271 = vmatmul.mubr.bf16.gmra.mrb[28].mxu0 %v8989_v57  ;;  %2497 = vmatmul.mubr.bf16.gmra.mrb[28].mxu1 %v8989_v57  ;;  %v9070_v57 = vld [vmem:[#allocation5 + $0x144] ss:$48 sps:$4 sm:$0xff]  }
 0x129   :  { %2536 = vmatpush1.bf16.msra.mxu0 %v8990_v58  ;;  %2762 = vmatpush1.bf16.msra.mxu1 %v8993_v59  ;;  %v9073_v58 = vld [vmem:[#allocation5 + $0x14c] ss:$48 sps:$4 sm:$0xff]   ;;  %v9068_v59 = vld [vmem:[#allocation5 + $0x140] ss:$48 sps:$4 sm:$0xff]  }
 0x12a   :  { %2537 = vmatprep.subr.bf16.mxu0 %v8998_v60  ;;  %2763 = vmatprep.subr.bf16.mxu1 %v9001_v61  ;;  %v9071_v60 = vld [vmem:[#allocation5 + $0x148] ss:$48 sps:$4 sm:$0xff]   ;;  %v9590_v61 = vld [vmem:[#allocation2 + $0x20] ss:$12 sps:$4 sm:$0xff]  }
 0x12b   :  { %2539 = vmatprep.mubr.bf16.mxu0 %v9578_v2  ;;  %2765 = vmatprep.mubr.bf16.mxu1 %v9578_v2  ;;  %v9082_v2 = vld [vmem:[#allocation5 + $0x204] ss:$48 sps:$4 sm:$0xff]  }
 0x12d   :  { %2538 = vmatpush1.bf16.msra.mxu0 %v8996_v62  ;;  %2764 = vmatpush1.bf16.msra.mxu1 %v8999_v63  ;;  %v9076_v62 = vld [vmem:[#allocation5 + $0x1a4] ss:$48 sps:$4 sm:$0xff]   ;;  %v9079_v63 = vld [vmem:[#allocation5 + $0x1ac] ss:$48 sps:$4 sm:$0xff]  }
 0x12e   :  { %2846 = vmatprep.subr.bf16.mxu1 %v9004_v0  ;;  %2620 = vmatprep.subr.bf16.mxu0 %v9007_v1  ;;  %v9074_v0 = vld [vmem:[#allocation5 + $0x1a0] ss:$48 sps:$4 sm:$0xff]   ;;  %v9077_v1 = vld [vmem:[#allocation5 + $0x1a8] ss:$48 sps:$4 sm:$0xff]  }
 0x130   :  { %2540 = vmatmul.mubr.bf16.vlgmr.msra.gmra.mrb[32].mxu0 %v9910_v3  ;;  %2766 = vmatmul.mubr.bf16.vlgmr.msra.gmra.mrb[32].mxu1 %v9910_v3  ;;  %v9020_v3 = vld [vmem:[#allocation5 + $0x738] ss:$48 sps:$4 sm:$0xff]  }
 0x131   :  { %2847 = vmatpush1.bf16.msra.mxu1 %v9002_v4  ;;  %2621 = vmatpush1.bf16.msra.mxu0 %v9005_v5  ;;  %v9085_v4 = vld [vmem:[#allocation5 + $0x20c] ss:$48 sps:$4 sm:$0xff]   ;;  %v9080_v5 = vld [vmem:[#allocation5 + $0x200] ss:$48 sps:$4 sm:$0xff]  }
 0x132   :  { %2549 = vmatprep.mubr.bf16.mxu0 %v9912_v6  ;;  %2775 = vmatprep.mubr.bf16.mxu1 %v9912_v6  ;;  %v9028_v6 = vld [vmem:[#allocation5 + $0x79c] ss:$48 sps:$4 sm:$0xff]  }
 0x133   :  { %2848 = vmatprep.subr.bf16.mxu1 %v9010_v7  ;;  %2622 = vmatprep.subr.bf16.mxu0 %v9013_v8  ;;  %v9083_v7 = vld [vmem:[#allocation5 + $0x208] ss:$48 sps:$4 sm:$0xff]  }
 0x134   :  { %v9591_v8 = vld [vmem:[#allocation2 + $0x38] ss:$12 sps:$4 sm:$0xff]  }
 0x135   :  { %2849 = vmatpush1.bf16.msra.mxu1 %v9008_v9  ;;  %2623 = vmatpush1.bf16.msra.mxu0 %v9011_v10  ;;  %v9088_v9 = vld [vmem:[#allocation5 + $0x264] ss:$48 sps:$4 sm:$0xff]   ;;  %v9091_v10 = vld [vmem:[#allocation5 + $0x26c] ss:$48 sps:$4 sm:$0xff]  }
 0x136   :  { %2850 = vmatprep.subr.bf16.mxu1 %v9016_v11  ;;  %2624 = vmatprep.subr.bf16.mxu0 %v9019_v12  ;;  %v9086_v11 = vld [vmem:[#allocation5 + $0x260] ss:$48 sps:$4 sm:$0xff]   ;;  %v9089_v12 = vld [vmem:[#allocation5 + $0x268] ss:$48 sps:$4 sm:$0xff]  }
 0x138   :  { %2550 = vmatmul.mubr.bf16.gmra.mrb[36].mxu0 %v9918_v13  ;;  %2776 = vmatmul.mubr.bf16.gmra.mrb[36].mxu1 %v9918_v13  ;;  %v9032_v13 = vld [vmem:[#allocation5 + $0x7f8] ss:$48 sps:$4 sm:$0xff]  }
 0x139   :  { %2559 = vmatprep.mubr.bf16.mxu0 %v9920_v14  ;;  %2785 = vmatprep.mubr.bf16.mxu1 %v9920_v14  ;;  %v9579_v14 = vld [vmem:[#allocation2 + $0x4c] ss:$12 sps:$4 sm:$0xff]  }
 0x13a   :  { %2851 = vmatpush1.bf16.msra.mxu1 %v9014_v15  ;;  %2625 = vmatpush1.bf16.msra.mxu0 %v9017_v16  ;;  %v9094_v15 = vld [vmem:[#allocation5 + $0x2c4] ss:$48 sps:$4 sm:$0xff]   ;;  %v9097_v16 = vld [vmem:[#allocation5 + $0x2cc] ss:$48 sps:$4 sm:$0xff]  }
 0x13b   :  { %2852 = vmatprep.subr.bf16.mxu1 %v9022_v17  ;;  %2626 = vmatprep.subr.bf16.mxu0 %v9025_v18  ;;  %v9592_v17 = vld [vmem:[#allocation2 + $0x50] ss:$12 sps:$4 sm:$0xff]  }
 0x13c   :  { %v9092_v18 = vld [vmem:[#allocation5 + $0x2c0] ss:$48 sps:$4 sm:$0xff]  }
 0x13e   :  { %2853 = vmatpush1.bf16.msra.mxu1 %v9020_v3  ;;  %2627 = vmatpush1.bf16.msra.mxu0 %v9023_v19  ;;  %v9095_v3 = vld [vmem:[#allocation5 + $0x2c8] ss:$48 sps:$4 sm:$0xff]   ;;  %v9100_v19 = vld [vmem:[#allocation5 + $0x324] ss:$48 sps:$4 sm:$0xff]  }
 0x13f   :  { %2854 = vmatprep.subr.bf16.mxu1 %v9028_v6  ;;  %2628 = vmatprep.subr.bf16.mxu0 %v9031_v20  ;;  %v9103_v6 = vld [vmem:[#allocation5 + $0x32c] ss:$48 sps:$4 sm:$0xff]   ;;  %v9098_v20 = vld [vmem:[#allocation5 + $0x320] ss:$48 sps:$4 sm:$0xff]  }
 0x140   :  { %2560 = vmatmul.mubr.bf16.gmra.mrb[40].mxu0 %v9926_v23  ;;  %2786 = vmatmul.mubr.bf16.gmra.mrb[40].mxu1 %v9926_v23  ;;  %v9580_v23 = vld [vmem:[#allocation2 + $0x48] ss:$12 sps:$4 sm:$0xff]  }
 0x141   :  { %2569 = vmatprep.mubr.bf16.mxu0 %v9928_v24  ;;  %2795 = vmatprep.mubr.bf16.mxu1 %v9579_v14  ;;  %v9044_v24 = vld [vmem:[#allocation5 + $0x8b8] ss:$48 sps:$4 sm:$0xff]  }
 0x142   :  { %2855 = vmatpush1.bf16.msra.mxu1 %v9026_v21  ;;  %2629 = vmatpush1.bf16.msra.mxu0 %v9029_v22  ;;  %v9101_v21 = vld [vmem:[#allocation5 + $0x328] ss:$48 sps:$4 sm:$0xff]   ;;  %v9106_v22 = vld [vmem:[#allocation5 + $0x384] ss:$48 sps:$4 sm:$0xff]  }
 0x143   :  { %2856 = vmatprep.subr.bf16.mxu1 %v9034_v25  ;;  %2630 = vmatprep.subr.bf16.mxu0 %v9037_v26  ;;  %v9109_v25 = vld [vmem:[#allocation5 + $0x38c] ss:$48 sps:$4 sm:$0xff]   ;;  %v9593_v26 = vld [vmem:[#allocation2 + $0x68] ss:$12 sps:$4 sm:$0xff]  }
 0x144   :  { %v9107_v14 = vld [vmem:[#allocation5 + $0x388] ss:$48 sps:$4 sm:$0xff]  }
 0x146   :  { %2857 = vmatpush1.bf16.msra.mxu1 %v9032_v13  ;;  %2631 = vmatpush1.bf16.msra.mxu0 %v9035_v27  ;;  %v9104_v13 = vld [vmem:[#allocation5 + $0x380] ss:$48 sps:$4 sm:$0xff]   ;;  %v9112_v27 = vld [vmem:[#allocation5 + $0x3e4] ss:$48 sps:$4 sm:$0xff]  }
 0x147   :  { %2858 = vmatprep.subr.bf16.mxu1 %v9040_v28  ;;  %2632 = vmatprep.subr.bf16.mxu0 %v9043_v29  ;;  %v9115_v28 = vld [vmem:[#allocation5 + $0x3ec] ss:$48 sps:$4 sm:$0xff]   ;;  %v9110_v29 = vld [vmem:[#allocation5 + $0x3e0] ss:$48 sps:$4 sm:$0xff]  }
 0x148   :  { %2570 = vmatmul.mubr.bf16.gmra.mrb[44].mxu0 %v9580_v23  ;;  %2796 = vmatmul.mubr.bf16.gmra.mrb[44].mxu1 %v9580_v23  ;;  %v9116_v23 = vld [vmem:[#allocation5 + $0x440] ss:$48 sps:$4 sm:$0xff]  }
 0x149   :  { %2579 = vmatprep.mubr.bf16.mxu0 %v9581_v35  ;;  %2805 = vmatprep.mubr.bf16.mxu1 %v9581_v35  ;;  %v9127_v35 = vld [vmem:[#allocation5 + $0x4ac] ss:$48 sps:$4 sm:$0xff]  }
 0x14a   :  { %2859 = vmatpush1.bf16.msra.mxu1 %v9038_v30  ;;  %2633 = vmatpush1.bf16.msra.mxu0 %v9041_v31  ;;  %v9113_v30 = vld [vmem:[#allocation5 + $0x3e8] ss:$48 sps:$4 sm:$0xff]   ;;  %v9118_v31 = vld [vmem:[#allocation5 + $0x444] ss:$48 sps:$4 sm:$0xff]  }
 0x14b   :  { %2860 = vmatprep.subr.bf16.mxu1 %v9046_v32  ;;  %2634 = vmatprep.subr.bf16.mxu0 %v9049_v33  ;;  %v9121_v32 = vld [vmem:[#allocation5 + $0x44c] ss:$48 sps:$4 sm:$0xff]  }
 0x14c   :  { %v9594_v33 = vld [vmem:[#allocation2 + $0x80] ss:$12 sps:$4 sm:$0xff]  }
 0x14e   :  { %2861 = vmatpush1.bf16.msra.mxu1 %v9044_v24  ;;  %2635 = vmatpush1.bf16.msra.mxu0 %v9047_v34  ;;  %v9119_v24 = vld [vmem:[#allocation5 + $0x448] ss:$48 sps:$4 sm:$0xff]   ;;  %v9124_v34 = vld [vmem:[#allocation5 + $0x4a4] ss:$48 sps:$4 sm:$0xff]  }
 0x14f   :  { %2959 = vmatprep.subr.bf16.mxu0 %v9052_v36  ;;  %3185 = vmatprep.subr.bf16.mxu1 %v9055_v37  ;;  %v9122_v36 = vld [vmem:[#allocation5 + $0x4a0] ss:$48 sps:$4 sm:$0xff]   ;;  %v9125_v37 = vld [vmem:[#allocation5 + $0x4a8] ss:$48 sps:$4 sm:$0xff]  }
 0x150   :  { %2580 = vmatmul.mubr.bf16.gmra.mrb[48].mxu0 %v9582_v38  ;;  %2806 = vmatmul.mubr.bf16.gmra.mrb[48].mxu1 %v9582_v38  ;;  %v9130_v38 = vld [vmem:[#allocation5 + $0x504] ss:$48 sps:$4 sm:$0xff]  }
 0x151   :  { %2589 = vmatprep.mubr.bf16.mxu0 %v9583_v39  ;;  %2815 = vmatprep.mubr.bf16.mxu1 %v9583_v39  ;;  %v9133_v39 = vld [vmem:[#allocation5 + $0x50c] ss:$48 sps:$4 sm:$0xff]  }
 0x158   :  { %2590 = vmatmul.mubr.bf16.gmra.mrb[52].mxu0 %v9584_v40  ;;  %2816 = vmatmul.mubr.bf16.gmra.mrb[52].mxu1 %v9584_v40  ;;  %v9595_v40 = vld [vmem:[#allocation2 + $0x98] ss:$12 sps:$4 sm:$0xff]  }
 0x159   :  { %2599 = vmatprep.mubr.bf16.mxu0 %v9585_v41  ;;  %2825 = vmatprep.mubr.bf16.mxu1 %v9585_v41  ;;  %v9128_v41 = vld [vmem:[#allocation5 + $0x500] ss:$48 sps:$4 sm:$0xff]  }
 0x160   :  { %2600 = vmatmul.mubr.bf16.gmra.mrb[56].mxu0 %v9586_v42  ;;  %2826 = vmatmul.mubr.bf16.gmra.mrb[56].mxu1 %v9586_v42  ;;  %v9131_v42 = vld [vmem:[#allocation5 + $0x508] ss:$48 sps:$4 sm:$0xff]  }
 0x161   :  { %2609 = vmatprep.mubr.bf16.mxu0 %v9587_v43  ;;  %2835 = vmatprep.mubr.bf16.mxu1 %v9587_v43  ;;  %v9136_v43 = vld [vmem:[#allocation5 + $0x564] ss:$48 sps:$4 sm:$0xff]  }
 0x168   :  { %2610 = vmatmul.mubr.bf16.gmra.mrb[60].mxu0 %v9588_v44  ;;  %2836 = vmatmul.mubr.bf16.gmra.mrb[60].mxu1 %v9588_v44  ;;  %v9139_v44 = vld [vmem:[#allocation5 + $0x56c] ss:$48 sps:$4 sm:$0xff]  }
 0x169   :  { %2652 = vmatprep.mubr.bf16.mxu0 %v9798_v50  ;;  %2878 = vmatprep.mubr.bf16.mxu1 %v9798_v50 }
 0x170   :  { %2653 = vmatmul.mubr.bf16.vlgmr.msra.gmra.mrb[32].mxu0 %v9589_v52  ;;  %2879 = vmatmul.mubr.bf16.vlgmr.msra.gmra.mrb[32].mxu1 %v9589_v52  ;;  %v9143_v52 = vld [vmem:[#allocation5 + $0x5c8] ss:$48 sps:$4 sm:$0xff]  }
 0x171   :  { %2960 = vmatpush1.bf16.msra.mxu0 %v9050_v45  ;;  %3186 = vmatpush1.bf16.msra.mxu1 %v9053_v46  ;;  %v9134_v45 = vld [vmem:[#allocation5 + $0x560] ss:$48 sps:$4 sm:$0xff]   ;;  %v9137_v46 = vld [vmem:[#allocation5 + $0x568] ss:$48 sps:$4 sm:$0xff]  }
 0x172   :  { %2961 = vmatprep.subr.bf16.mxu0 %v9058_v47  ;;  %3187 = vmatprep.subr.bf16.mxu1 %v9061_v48  ;;  %v9142_v47 = vld [vmem:[#allocation5 + $0x5c4] ss:$48 sps:$4 sm:$0xff]   ;;  %v9145_v48 = vld [vmem:[#allocation5 + $0x5cc] ss:$48 sps:$4 sm:$0xff]  }
 0x173   :  { %2662 = vmatprep.mubr.bf16.mxu0 %v9798_v50  ;;  %2888 = vmatprep.mubr.bf16.mxu1 %v9798_v50 }
 0x175   :  { %2962 = vmatpush1.bf16.msra.mxu0 %v9056_v49  ;;  %3188 = vmatpush1.bf16.msra.mxu1 %v9059_v51  ;;  %v9596_v49 = vld [vmem:[#allocation2 + $0xb0] ss:$12 sps:$4 sm:$0xff]  }
 0x176   :  { %2963 = vmatprep.subr.bf16.mxu0 %v9064_v53  ;;  %3189 = vmatprep.subr.bf16.mxu1 %v9067_v54  ;;  %v9140_v51 = vld [vmem:[#allocation5 + $0x5c0] ss:$48 sps:$4 sm:$0xff]   ;;  %v9148_v53 = vld [vmem:[#allocation5 + $0x62c] ss:$48 sps:$4 sm:$0xff]   ;;  %v9151_v54 = vld [vmem:[#allocation5 + $0x624] ss:$48 sps:$4 sm:$0xff]  }
 0x178   :  { %2663 = vmatmul.mubr.bf16.gmra.mrb[36].mxu0 %v9590_v61  ;;  %2889 = vmatmul.mubr.bf16.gmra.mrb[36].mxu1 %v9590_v61  ;;  %v9152_v61 = vld [vmem:[#allocation5 + $0x688] ss:$48 sps:$4 sm:$0xff]  }
 0x179   :  { %2964 = vmatpush1.bf16.msra.mxu0 %v9062_v55  ;;  %3190 = vmatpush1.bf16.msra.mxu1 %v9065_v56  ;;  %v9597_v55 = vld [vmem:[#allocation2 + $0x4] ss:$12 sps:$4 sm:$0xff]   ;;  %v9146_v56 = vld [vmem:[#allocation5 + $0x628] ss:$48 sps:$4 sm:$0xff]  }
 0x17a   :  { %2965 = vmatprep.subr.bf16.mxu0 %v9070_v57  ;;  %3191 = vmatprep.subr.bf16.mxu1 %v9073_v58  ;;  %v9149_v57 = vld [vmem:[#allocation5 + $0x620] ss:$48 sps:$4 sm:$0xff]   ;;  %v9154_v58 = vld [vmem:[#allocation5 + $0x68c] ss:$48 sps:$4 sm:$0xff]  }
 0x17b   :  { %2672 = vmatprep.mubr.bf16.mxu0 %v9798_v50  ;;  %2898 = vmatprep.mubr.bf16.mxu1 %v9798_v50 }
 0x17d   :  { %2966 = vmatpush1.bf16.msra.mxu0 %v9068_v59  ;;  %3192 = vmatpush1.bf16.msra.mxu1 %v9071_v60  ;;  %v9157_v59 = vld [vmem:[#allocation5 + $0x684] ss:$48 sps:$4 sm:$0xff]   ;;  %v9598_v60 = vld [vmem:[#allocation2] ss:$12 sps:$4 sm:$0xff]  }
 0x17e   :  { %2967 = vmatprep.subr.bf16.mxu0 %v9076_v62  ;;  %3193 = vmatprep.subr.bf16.mxu1 %v9079_v63  ;;  %v9155_v62 = vld [vmem:[#allocation5 + $0x680] ss:$48 sps:$4 sm:$0xff]   ;;  %v9599_v63 = vld [vmem:[#allocation2 + $0x1c] ss:$12 sps:$4 sm:$0xff]  }
 0x180   :  { %2673 = vmatmul.mubr.bf16.gmra.mrb[40].mxu0 %v9591_v8  ;;  %2899 = vmatmul.mubr.bf16.gmra.mrb[40].mxu1 %v9591_v8 }
 0x181   :  { %2968 = vmatpush1.bf16.msra.mxu0 %v9074_v0  ;;  %3194 = vmatpush1.bf16.msra.mxu1 %v9077_v1  ;;  %v9160_v0 = vld [vmem:[#allocation5 + $0x6ec] ss:$48 sps:$4 sm:$0xff]   ;;  %v9163_v1 = vld [vmem:[#allocation5 + $0x6e4] ss:$48 sps:$4 sm:$0xff]  }
 0x182   :  { %2969 = vmatprep.subr.bf16.mxu0 %v9082_v2  ;;  %3195 = vmatprep.subr.bf16.mxu1 %v9085_v4  ;;  %v427_v2 = vlaneseq  ;;  %v9158_v4 = vld [vmem:[#allocation5 + $0x6e8] ss:$48 sps:$4 sm:$0xff]  }
 0x183   :  { %2682 = vmatprep.mubr.bf16.mxu0 %v9798_v50  ;;  %2908 = vmatprep.mubr.bf16.mxu1 %v9798_v50 }
 0x184   :  { %v9977_v8 = vshrl.u32 %v427_v2, 7 }
 0x185   :  { %2970 = vmatpush1.bf16.msra.mxu0 %v9080_v5  ;;  %3196 = vmatpush1.bf16.msra.mxu1 %v9083_v7  ;;  %v9161_v5 = vld [vmem:[#allocation5 + $0x6e0] ss:$48 sps:$4 sm:$0xff]   ;;  %v9166_v7 = vld [vmem:[#allocation5 + $0x74c] ss:$48 sps:$4 sm:$0xff]  }
 0x186   :  { %2971 = vmatprep.subr.bf16.mxu0 %v9088_v9  ;;  %3197 = vmatprep.subr.bf16.mxu1 %v9091_v10  ;;  %v9169_v9 = vld [vmem:[#allocation5 + $0x744] ss:$48 sps:$4 sm:$0xff]  }
 0x187   :  { %v9600_v10 = vld [vmem:[#allocation2 + $0x18] ss:$12 sps:$4 sm:$0xff]  }
 0x188   :  { %2683 = vmatmul.mubr.bf16.gmra.mrb[44].mxu0 %v9592_v17  ;;  %2909 = vmatmul.mubr.bf16.gmra.mrb[44].mxu1 %v9592_v17  ;;  %v9175_v17 = vld [vmem:[#allocation5 + $0x7a4] ss:$48 sps:$4 sm:$0xff]  }
 0x189   :  { %2972 = vmatpush1.bf16.msra.mxu0 %v9086_v11  ;;  %3198 = vmatpush1.bf16.msra.mxu1 %v9089_v12  ;;  %v9164_v11 = vld [vmem:[#allocation5 + $0x748] ss:$48 sps:$4 sm:$0xff]   ;;  %v9601_v12 = vld [vmem:[#allocation2 + $0x34] ss:$12 sps:$4 sm:$0xff]  }
 0x18a   :  { %2973 = vmatprep.subr.bf16.mxu0 %v9094_v15  ;;  %3199 = vmatprep.subr.bf16.mxu1 %v9097_v16  ;;  %v9167_v15 = vld [vmem:[#allocation5 + $0x740] ss:$48 sps:$4 sm:$0xff]   ;;  %v9172_v16 = vld [vmem:[#allocation5 + $0x7ac] ss:$48 sps:$4 sm:$0xff]  }
 0x18b   :  { %2692 = vmatprep.mubr.bf16.mxu0 %v9798_v50  ;;  %2918 = vmatprep.mubr.bf16.mxu1 %v9798_v50 }
 0x18d   :  { %2974 = vmatpush1.bf16.msra.mxu0 %v9092_v18  ;;  %3200 = vmatpush1.bf16.msra.mxu1 %v9095_v3  ;;  %v423_v18 = vld [vmem:[#allocation7] sm:$0xff]  ;;  %v9980_v3 = vsub.s32 0, %v9977_v8 }
 0x18e   :  { %2975 = vmatprep.subr.bf16.mxu0 %v9100_v19  ;;  %3201 = vmatprep.subr.bf16.mxu1 %v9103_v6  ;;  %v9983_v19 = vsub.s32 2, %v9977_v8  ;;  %v9986_v6 = vsub.s32 1, %v9977_v8 }
 0x190   :  { %2693 = vmatmul.mubr.bf16.gmra.mrb[48].mxu0 %v9593_v26  ;;  %2919 = vmatmul.mubr.bf16.gmra.mrb[48].mxu1 %v9593_v26  ;;  %v9181_v26 = vld [vmem:[#allocation5 + $0x804] ss:$48 sps:$4 sm:$0xff]  }
 0x191   :  { %2976 = vmatpush1.bf16.msra.mxu0 %v9098_v20  ;;  %3202 = vmatpush1.bf16.msra.mxu1 %v9101_v21  ;;  %v10978_v20 = vsub.s32 3, %v9977_v8  ;;  %v9170_v21 = vld [vmem:[#allocation5 + $0x7a8] ss:$48 sps:$4 sm:$0xff]  }
 0x192   :  { %2977 = vmatprep.subr.bf16.mxu0 %v9106_v22  ;;  %3203 = vmatprep.subr.bf16.mxu1 %v9109_v25  ;;  %v9173_v22 = vld [vmem:[#allocation5 + $0x7a0] ss:$48 sps:$4 sm:$0xff]   ;;  %v9178_v25 = vld [vmem:[#allocation5 + $0x80c] ss:$48 sps:$4 sm:$0xff]  }
 0x193   :  { %2702 = vmatprep.mubr.bf16.mxu0 %v9798_v50  ;;  %2928 = vmatprep.mubr.bf16.mxu1 %v9798_v50 }
 0x195   :  { %2978 = vmatpush1.bf16.msra.mxu0 %v9104_v13  ;;  %3204 = vmatpush1.bf16.msra.mxu1 %v9107_v14  ;;  %v9602_v13 = vld [vmem:[#allocation2 + $0x30] ss:$12 sps:$4 sm:$0xff]   ;;  %v9990_v14 = vrot.slane %v423_v18, %v9980_v3 }
 0x196   :  { %2979 = vmatprep.subr.bf16.mxu0 %v9112_v27  ;;  %3205 = vmatprep.subr.bf16.mxu1 %v9115_v28  ;;  %v9993_v27 = vrot.slane %v423_v18, %v9983_v19  ;;  %v9996_v28 = vrot.slane %v423_v18, %v9986_v6 }
 0x198   :  { %2703 = vmatmul.mubr.bf16.gmra.mrb[52].mxu0 %v9594_v33  ;;  %2929 = vmatmul.mubr.bf16.gmra.mrb[52].mxu1 %v9594_v33  ;;  %v9184_v33 = vld [vmem:[#allocation5 + $0x86c] ss:$48 sps:$4 sm:$0xff]  }
 0x199   :  { %2980 = vmatpush1.bf16.msra.mxu0 %v9110_v29  ;;  %3206 = vmatpush1.bf16.msra.mxu1 %v9113_v30  ;;  %v10000_v29 = vrot.slane %v423_v18, %v10978_v20  ;;  %v9603_v30 = vld [vmem:[#allocation2 + $0x4c] ss:$12 sps:$4 sm:$0xff]  }
 0x19a   :  { %2981 = vmatprep.subr.bf16.mxu0 %v9118_v31  ;;  %3207 = vmatprep.subr.bf16.mxu1 %v9121_v32  ;;  %v9176_v31 = vld [vmem:[#allocation5 + $0x808] ss:$48 sps:$4 sm:$0xff]   ;;  %v9179_v32 = vld [vmem:[#allocation5 + $0x800] ss:$48 sps:$4 sm:$0xff]  }
 0x19b   :  { %2712 = vmatprep.mubr.bf16.mxu0 %v9798_v50  ;;  %2938 = vmatprep.mubr.bf16.mxu1 %v9798_v50 }
 0x19d   :  { %2982 = vmatpush1.bf16.msra.mxu0 %v9116_v23  ;;  %3208 = vmatpush1.bf16.msra.mxu1 %v9119_v24 }
 0x19e   :  { %2983 = vmatprep.subr.bf16.mxu0 %v9124_v34  ;;  %3209 = vmatprep.subr.bf16.mxu1 %v9127_v35  ;;  %v9187_v34 = vld [vmem:[#allocation5 + $0x864] ss:$48 sps:$4 sm:$0xff]  }
 0x1a0   :  { %2713 = vmatmul.mubr.bf16.gmra.mrb[56].mxu0 %v9595_v40  ;;  %2939 = vmatmul.mubr.bf16.gmra.mrb[56].mxu1 %v9595_v40  ;;  %v9185_v40 = vld [vmem:[#allocation5 + $0x860] ss:$48 sps:$4 sm:$0xff]  }
 0x1a1   :  { %2984 = vmatpush1.bf16.msra.mxu0 %v9122_v36  ;;  %3210 = vmatpush1.bf16.msra.mxu1 %v9125_v37 }
 0x1a2   :  { %2985 = vmatprep.subr.bf16.mxu0 %v9130_v38  ;;  %3211 = vmatprep.subr.bf16.mxu1 %v9133_v39  ;;  %v9182_v39 = vld [vmem:[#allocation5 + $0x868] ss:$48 sps:$4 sm:$0xff]  }
 0x1a3   :  { %2722 = vmatprep.mubr.bf16.mxu0 %v9798_v50  ;;  %2948 = vmatprep.mubr.bf16.mxu1 %v9798_v50 }
 0x1a5   :  { %2986 = vmatpush1.bf16.msra.mxu0 %v9128_v41  ;;  %3212 = vmatpush1.bf16.msra.mxu1 %v9131_v42 }
 0x1a6   :  { %2987 = vmatprep.subr.bf16.mxu0 %v9136_v43  ;;  %3213 = vmatprep.subr.bf16.mxu1 %v9139_v44 }
 0x1a8   :  { %2723 = vmatmul.mubr.bf16.gmra.mrb[60].mxu0 %v9596_v49  ;;  %2949 = vmatmul.mubr.bf16.gmra.mrb[60].mxu1 %v9596_v49  ;;  %v9190_v49 = vld [vmem:[#allocation5 + $0x8cc] ss:$48 sps:$4 sm:$0xff]  }
 0x1a9   :  { %2988 = vmatpush1.bf16.msra.mxu0 %v9134_v45  ;;  %3214 = vmatpush1.bf16.msra.mxu1 %v9137_v46 }
 0x1aa   :  { %2989 = vmatprep.subr.bf16.mxu0 %v9142_v47  ;;  %3215 = vmatprep.subr.bf16.mxu1 %v9145_v48 }
 0x1ab   :  { %2991 = vmatprep.mubr.bf16.mxu0 %v9597_v55  ;;  %3217 = vmatprep.mubr.bf16.mxu1 %v9597_v55  ;;  %v9193_v55 = vld [vmem:[#allocation5 + $0x8c4] ss:$48 sps:$4 sm:$0xff]  }
 0x1ad   :  { %2990 = vmatpush1.bf16.msra.mxu0 %v9140_v51  ;;  %3216 = vmatpush1.bf16.msra.mxu1 %v9143_v52 }
 0x1ae   :  { %3298 = vmatprep.subr.bf16.mxu1 %v9148_v53  ;;  %3072 = vmatprep.subr.bf16.mxu0 %v9151_v54 }
 0x1b0   :  { %2992 = vmatmul.mubr.bf16.vlgmr.msra.gmra.mrb[64].mxu0 %v9598_v60  ;;  %3218 = vmatmul.mubr.bf16.vlgmr.msra.gmra.mrb[64].mxu1 %v9598_v60  ;;  %v9604_v60 = vld [vmem:[#allocation2 + $0x48] ss:$12 sps:$4 sm:$0xff]  }
 0x1b1   :  { %3299 = vmatpush1.bf16.msra.mxu1 %v9146_v56  ;;  %3073 = vmatpush1.bf16.msra.mxu0 %v9149_v57 }
 0x1b2   :  { %3001 = vmatprep.mubr.bf16.mxu0 %v9599_v63  ;;  %3227 = vmatprep.mubr.bf16.mxu1 %v9599_v63 }
 0x1b3   :  { %3300 = vmatprep.subr.bf16.mxu1 %v9154_v58  ;;  %3074 = vmatprep.subr.bf16.mxu0 %v9157_v59 }
 0x1b5   :  { %3301 = vmatpush1.bf16.msra.mxu1 %v9152_v61  ;;  %3075 = vmatpush1.bf16.msra.mxu0 %v9155_v62  ;;  %v9188_v61 = vld [vmem:[#allocation5 + $0x8c8] ss:$48 sps:$4 sm:$0xff]   ;;  %v9191_v62 = vld [vmem:[#allocation5 + $0x8c0] ss:$48 sps:$4 sm:$0xff]  }
 0x1b6   :  { %3302 = vmatprep.subr.bf16.mxu1 %v9160_v0  ;;  %3076 = vmatprep.subr.bf16.mxu0 %v9163_v1  ;;  %v9605_v1 = vld [vmem:[#allocation2 + $0x64] ss:$12 sps:$4 sm:$0xff]  }
 0x1b8   :  { %3002 = vmatmul.mubr.bf16.gmra.mrb[68].mxu0 %v9600_v10  ;;  %3228 = vmatmul.mubr.bf16.gmra.mrb[68].mxu1 %v9600_v10  ;;  %v9196_v10 = vld [vmem:[#allocation8 + $0x4] ss:$12 sps:$4 sm:$0xff]  }
 0x1b9   :  { %3011 = vmatprep.mubr.bf16.mxu0 %v9601_v12  ;;  %3237 = vmatprep.mubr.bf16.mxu1 %v9601_v12 }
 0x1ba   :  { %3303 = vmatpush1.bf16.msra.mxu1 %v9158_v4  ;;  %3077 = vmatpush1.bf16.msra.mxu0 %v9161_v5 }
 0x1bb   :  { %3304 = vmatprep.subr.bf16.mxu1 %v9166_v7  ;;  %3078 = vmatprep.subr.bf16.mxu0 %v9169_v9 }
 0x1be   :  { %3305 = vmatpush1.bf16.msra.mxu1 %v9164_v11  ;;  %3079 = vmatpush1.bf16.msra.mxu0 %v9167_v15  ;;  %v9197_v11 = vld [vmem:[#allocation8 + $0xc8] ss:$12 sps:$4 sm:$0xff]  }
 0x1bf   :  { %3306 = vmatprep.subr.bf16.mxu1 %v9172_v16  ;;  %3080 = vmatprep.subr.bf16.mxu0 %v9175_v17 }
 0x1c0   :  { %3012 = vmatmul.mubr.bf16.gmra.mrb[72].mxu0 %v9602_v13  ;;  %3238 = vmatmul.mubr.bf16.gmra.mrb[72].mxu1 %v9602_v13 }
 0x1c1   :  { %3021 = vmatprep.mubr.bf16.mxu0 %v9603_v30  ;;  %3247 = vmatprep.mubr.bf16.mxu1 %v9603_v30 }
 0x1c2   :  { %3307 = vmatpush1.bf16.msra.mxu1 %v9170_v21  ;;  %3081 = vmatpush1.bf16.msra.mxu0 %v9173_v22 }
 0x1c3   :  { %v2202_v23 = vpop.f32.mrb[0].mxu0  ;;  %v2428_v24 = vpop.f32.mrb[0].mxu1  ;;  %3308 = vmatprep.subr.bf16.mxu1 %v9178_v25  ;;  %3082 = vmatprep.subr.bf16.mxu0 %v9181_v26 }
 0x1c4   :  { %v8140_v35 = vadd.f32 %v2202_v23, %v9990_v14  ;;  %v8172_v36 = vadd.f32 %v2428_v24, %v9993_v27  ;;  %v2204_v37 = vpop.f32.mrb[1].mxu0  ;;  %v2430_v38 = vpop.f32.mrb[1].mxu1 }
 0x1c5   :  { %v8141_v41 = vadd.f32 %v2204_v37, %v9996_v28  ;;  %v8173_v42 = vadd.f32 %v2430_v38, %v10000_v29  ;;  %v2206_v43 = vpop.f32.mrb[2].mxu0  ;;  %v2432_v44 = vpop.f32.mrb[2].mxu1 }
 0x1c6   :  { %v8142_v45 = vadd.f32 %v2206_v43, %v9990_v14  ;;  %v8174_v46 = vadd.f32 %v2432_v44, %v9993_v27  ;;  %v2208_v47 = vpop.f32.mrb[3].mxu0  ;;  %v2434_v48 = vpop.f32.mrb[3].mxu1  ;;  %3309 = vmatpush1.bf16.msra.mxu1 %v9176_v31  ;;  %3083 = vmatpush1.bf16.msra.mxu0 %v9179_v32  ;;  %v3411_v51 = vmax.f32 %v8140_v35, 0.0  ;;  %v3413_v52 = vmax.f32 %v8172_v36, 0.0 }
 0x1c7   :  { %v8143_v53 = vadd.f32 %v2208_v47, %v9996_v28  ;;  %v8175_v54 = vadd.f32 %v2434_v48, %v10000_v29  ;;  %3310 = vmatprep.subr.bf16.mxu1 %v9184_v33  ;;  %3084 = vmatprep.subr.bf16.mxu0 %v9187_v34  ;;  %v3412_v56 = vmax.f32 %v8141_v41, 0.0  ;;  %v3414_v57 = vmax.f32 %v8173_v42, 0.0  ;;  %v9607_v42 = vld [vmem:[#allocation2 + $0x7c] ss:$12 sps:$4 sm:$0xff]  }
 0x1c8   :  { %v3423_v58 = vmax.f32 %v8142_v45, 0.0  ;;  %v3425_v59 = vmax.f32 %v8174_v46, 0.0  ;;  %3022 = vmatmul.mubr.bf16.gmra.mrb[76].mxu0 %v9604_v60  ;;  %3248 = vmatmul.mubr.bf16.gmra.mrb[76].mxu1 %v9604_v60 }
 0x1c9   :  { %v3424_v63 = vmax.f32 %v8143_v53, 0.0  ;;  %v3426_v0 = vmax.f32 %v8175_v54, 0.0  ;;  %3031 = vmatprep.mubr.bf16.mxu0 %v9605_v1  ;;  %3257 = vmatprep.mubr.bf16.mxu1 %v9605_v1 }
 0x1ca   :  { %v10010_v2 = vpack.c.bf16 %v3423_v58, %v3411_v51  ;;  %v10012_v4 = vpack.c.bf16 %v3425_v59, %v3413_v52  ;;  %3311 = vmatpush1.bf16.msra.mxu1 %v9182_v39  ;;  %3085 = vmatpush1.bf16.msra.mxu0 %v9185_v40  ;;  %v9606_v39 = vld [vmem:[#allocation2 + $0x60] ss:$12 sps:$4 sm:$0xff]  }
 0x1cb   :  { %v10014_v5 = vpack.c.bf16 %v3424_v63, %v3412_v56  ;;  %v2212_v7 = vpop.f32.mrb[4].mxu0  ;;  %v2438_v9 = vpop.f32.mrb[4].mxu1  ;;  %3312 = vmatprep.subr.bf16.mxu1 %v9190_v49  ;;  %3086 = vmatprep.subr.bf16.mxu0 %v9193_v55  ;;  %v10016_v12 = vpack.c.bf16 %v3426_v0, %v3414_v57 }
 0x1cc   :  { %v8144_v15 = vadd.f32 %v2212_v7, %v9990_v14  ;;  %v8176_v16 = vadd.f32 %v2438_v9, %v9993_v27  ;;  %v2214_v17 = vpop.f32.mrb[5].mxu0  ;;  %v2440_v18 = vpop.f32.mrb[5].mxu1 }
 0x1cd   :  { %v8145_v21 = vadd.f32 %v2214_v17, %v9996_v28  ;;  %v8177_v22 = vadd.f32 %v2440_v18, %v10000_v29  ;;  %v2216_v25 = vpop.f32.mrb[6].mxu0  ;;  %v2442_v26 = vpop.f32.mrb[6].mxu1  ;;  %v9609_v18 = vld [vmem:[#allocation2 + $0x94] ss:$12 sps:$4 sm:$0xff]  }
 0x1ce   :  { %v8146_v13 = vadd.f32 %v2216_v25, %v9990_v14  ;;  %v8178_v30 = vadd.f32 %v2442_v26, %v9993_v27  ;;  %v2218_v31 = vpop.f32.mrb[7].mxu0  ;;  %v2444_v32 = vpop.f32.mrb[7].mxu1  ;;  %3313 = vmatpush1.bf16.msra.mxu1 %v9188_v61  ;;  %3087 = vmatpush1.bf16.msra.mxu0 %v9191_v62  ;;  %v3435_v33 = vmax.f32 %v8144_v15, 0.0  ;;  %v3437_v23 = vmax.f32 %v8176_v16, 0.0  ;;  %v9608_v15 = vld [vmem:[#allocation2 + $0x78] ss:$12 sps:$4 sm:$0xff]  }
 0x1cf   :  { %v8147_v24 = vadd.f32 %v2218_v31, %v9996_v28  ;;  %v8179_v34 = vadd.f32 %v2444_v32, %v10000_v29  ;;  %5636 = vmatprep.subr.bf16.mxu0 %v9196_v10  ;;  %7756 = vmatprep.subr.bf16.mxu1 %v9197_v11  ;;  %v3436_v35 = vmax.f32 %v8145_v21, 0.0  ;;  %v3438_v36 = vmax.f32 %v8177_v22, 0.0 }
 0x1d0   :  { %v3447_v37 = vmax.f32 %v8146_v13, 0.0  ;;  %v3449_v38 = vmax.f32 %v8178_v30, 0.0  ;;  %3032 = vmatmul.mubr.bf16.gmra.mrb[80].mxu0 %v9606_v39  ;;  %3258 = vmatmul.mubr.bf16.gmra.mrb[80].mxu1 %v9606_v39 }
 0x1d1   :  { %v3448_v40 = vmax.f32 %v8147_v24, 0.0  ;;  %v3450_v41 = vmax.f32 %v8179_v34, 0.0  ;;  %3041 = vmatprep.mubr.bf16.mxu0 %v9607_v42  ;;  %3267 = vmatprep.mubr.bf16.mxu1 %v9607_v42 }
 0x1d2   :  { %v10026_v43 = vpack.c.bf16 %v3447_v37, %v3435_v33  ;;  %v10028_v44 = vpack.c.bf16 %v3449_v38, %v3437_v23 }
 0x1d3   :  { %v10030_v45 = vpack.c.bf16 %v3448_v40, %v3436_v35  ;;  %v2222_v46 = vpop.f32.mrb[8].mxu0  ;;  %v2448_v47 = vpop.f32.mrb[8].mxu1  ;;  %v10032_v48 = vpack.c.bf16 %v3450_v41, %v3438_v36 }
 0x1d4   :  { %v8148_v49 = vadd.f32 %v2222_v46, %v9990_v14  ;;  %v8180_v51 = vadd.f32 %v2448_v47, %v9993_v27  ;;  %v2224_v52 = vpop.f32.mrb[9].mxu0  ;;  %v2450_v53 = vpop.f32.mrb[9].mxu1 }
 0x1d5   :  { %v8149_v54 = vadd.f32 %v2224_v52, %v9996_v28  ;;  %v8181_v55 = vadd.f32 %v2450_v53, %v10000_v29  ;;  %v2226_v56 = vpop.f32.mrb[10].mxu0  ;;  %v2452_v57 = vpop.f32.mrb[10].mxu1 }
 0x1d6   :  { %v8150_v58 = vadd.f32 %v2226_v56, %v9990_v14  ;;  %v8182_v59 = vadd.f32 %v2452_v57, %v9993_v27  ;;  %v2228_v60 = vpop.f32.mrb[11].mxu0  ;;  %v2454_v61 = vpop.f32.mrb[11].mxu1  ;;  %v3459_v62 = vmax.f32 %v8148_v49, 0.0  ;;  %v3461_v63 = vmax.f32 %v8180_v51, 0.0  ;;  %v9611_v57 = vld [vmem:[#allocation2 + $0xac] ss:$12 sps:$4 sm:$0xff]  }
 0x1d7   :  { %v8151_v0 = vadd.f32 %v2228_v60, %v9996_v28  ;;  %v8183_v1 = vadd.f32 %v2454_v61, %v10000_v29  ;;  %v3460_v7 = vmax.f32 %v8149_v54, 0.0  ;;  %v3462_v9 = vmax.f32 %v8181_v55, 0.0  ;;  %v9610_v54 = vld [vmem:[#allocation2 + $0x90] ss:$12 sps:$4 sm:$0xff]  }
 0x1d8   :  { %v3471_v10 = vmax.f32 %v8150_v58, 0.0  ;;  %v3473_v11 = vmax.f32 %v8182_v59, 0.0  ;;  %3042 = vmatmul.mubr.bf16.gmra.mrb[84].mxu0 %v9608_v15  ;;  %3268 = vmatmul.mubr.bf16.gmra.mrb[84].mxu1 %v9608_v15 }
 0x1d9   :  { %v3472_v16 = vmax.f32 %v8151_v0, 0.0  ;;  %v3474_v17 = vmax.f32 %v8183_v1, 0.0  ;;  %3051 = vmatprep.mubr.bf16.mxu0 %v9609_v18  ;;  %3277 = vmatprep.mubr.bf16.mxu1 %v9609_v18 }
 0x1da   :  { %v10042_v21 = vpack.c.bf16 %v3471_v10, %v3459_v62  ;;  %v10044_v22 = vpack.c.bf16 %v3473_v11, %v3461_v63 }
 0x1db   :  { %v10046_v25 = vpack.c.bf16 %v3472_v16, %v3460_v7  ;;  %v2232_v26 = vpop.f32.mrb[12].mxu0  ;;  %v2458_v13 = vpop.f32.mrb[12].mxu1  ;;  %v10048_v30 = vpack.c.bf16 %v3474_v17, %v3462_v9 }
 0x1dc   :  { %v8152_v31 = vadd.f32 %v2232_v26, %v9990_v14  ;;  %v8184_v32 = vadd.f32 %v2458_v13, %v9993_v27  ;;  %v2234_v33 = vpop.f32.mrb[13].mxu0  ;;  %v2460_v23 = vpop.f32.mrb[13].mxu1 }
 0x1dd   :  { %v8153_v24 = vadd.f32 %v2234_v33, %v9996_v28  ;;  %v8185_v34 = vadd.f32 %v2460_v23, %v10000_v29  ;;  %v2236_v35 = vpop.f32.mrb[14].mxu0  ;;  %v2462_v36 = vpop.f32.mrb[14].mxu1 }
 0x1de   :  { %v8154_v37 = vadd.f32 %v2236_v35, %v9990_v14  ;;  %v8186_v38 = vadd.f32 %v2462_v36, %v9993_v27  ;;  %v2238_v39 = vpop.f32.mrb[15].mxu0  ;;  %v2464_v40 = vpop.f32.mrb[15].mxu1  ;;  %v3483_v41 = vmax.f32 %v8152_v31, 0.0  ;;  %v3485_v42 = vmax.f32 %v8184_v32, 0.0  ;;  %v9612_v35 = vld [vmem:[#allocation2 + $0xa8] ss:$12 sps:$4 sm:$0xff]  }
 0x1df   :  { %v8155_v46 = vadd.f32 %v2238_v39, %v9996_v28  ;;  %v8187_v47 = vadd.f32 %v2464_v40, %v10000_v29  ;;  %v3484_v49 = vmax.f32 %v8153_v24, 0.0  ;;  %v3486_v51 = vmax.f32 %v8185_v34, 0.0 }
 0x1e0   :  { %v3495_v52 = vmax.f32 %v8154_v37, 0.0  ;;  %v3497_v53 = vmax.f32 %v8186_v38, 0.0  ;;  %3052 = vmatmul.mubr.bf16.gmra.mrb[88].mxu0 %v9610_v54  ;;  %3278 = vmatmul.mubr.bf16.gmra.mrb[88].mxu1 %v9610_v54 }
 0x1e1   :  { %v3496_v55 = vmax.f32 %v8155_v46, 0.0  ;;  %v3498_v56 = vmax.f32 %v8187_v47, 0.0  ;;  %3061 = vmatprep.mubr.bf16.mxu0 %v9611_v57  ;;  %3287 = vmatprep.mubr.bf16.mxu1 %v9611_v57 }
 0x1e2   :  { %v10058_v58 = vpack.c.bf16 %v3495_v52, %v3483_v41  ;;  %v10060_v59 = vpack.c.bf16 %v3497_v53, %v3485_v42 }
 0x1e3   :  { %v10062_v60 = vpack.c.bf16 %v3496_v55, %v3484_v49  ;;  %v2242_v61 = vpop.f32.mrb[16].mxu0  ;;  %v2468_v62 = vpop.f32.mrb[16].mxu1  ;;  %v10064_v63 = vpack.c.bf16 %v3498_v56, %v3486_v51 }
 0x1e4   :  { %v8156_v0 = vadd.f32 %v2242_v61, %v9990_v14  ;;  %v8188_v1 = vadd.f32 %v2468_v62, %v9993_v27  ;;  %v2244_v7 = vpop.f32.mrb[17].mxu0  ;;  %v2470_v9 = vpop.f32.mrb[17].mxu1  ;;  %v9194_v62 = vld [vmem:[#allocation8] ss:$12 sps:$4 sm:$0xff]  }
 0x1e5   :  { %v8157_v10 = vadd.f32 %v2244_v7, %v9996_v28  ;;  %v8189_v11 = vadd.f32 %v2470_v9, %v10000_v29  ;;  %v2246_v15 = vpop.f32.mrb[18].mxu0  ;;  %v2472_v16 = vpop.f32.mrb[18].mxu1 }
 0x1e6   :  { %v8158_v17 = vadd.f32 %v2246_v15, %v9990_v14  ;;  %v8190_v18 = vadd.f32 %v2472_v16, %v9993_v27  ;;  %v2248_v26 = vpop.f32.mrb[19].mxu0  ;;  %v2474_v13 = vpop.f32.mrb[19].mxu1  ;;  %v3507_v33 = vmax.f32 %v8156_v0, 0.0  ;;  %v3509_v23 = vmax.f32 %v8188_v1, 0.0  ;;  %v9198_v0 = vld [vmem:[#allocation8 + $0x8] ss:$12 sps:$4 sm:$0xff]  }
 0x1e7   :  { %v8159_v31 = vadd.f32 %v2248_v26, %v9996_v28  ;;  %v8191_v32 = vadd.f32 %v2474_v13, %v10000_v29  ;;  %v3508_v36 = vmax.f32 %v8157_v10, 0.0  ;;  %v3510_v37 = vmax.f32 %v8189_v11, 0.0  ;;  %v9201_v11 = vld [vmem:[#allocation8 + $0x1c] ss:$12 sps:$4 sm:$0xff]  }
 0x1e8   :  { %v3519_v24 = vmax.f32 %v8158_v17, 0.0  ;;  %v3521_v34 = vmax.f32 %v8190_v18, 0.0  ;;  %3062 = vmatmul.mubr.bf16.gmra.mrb[92].mxu0 %v9612_v35  ;;  %3288 = vmatmul.mubr.bf16.gmra.mrb[92].mxu1 %v9612_v35  ;;  %v9205_v17 = vld [vmem:[#allocation8 + $0xe0] ss:$12 sps:$4 sm:$0xff]  }
 0x1e9   :  { %v3520_v38 = vmax.f32 %v8159_v31, 0.0  ;;  %v3522_v39 = vmax.f32 %v8191_v32, 0.0  ;;  %3104 = vmatprep.mubr.bf16.mxu0 %v9798_v50  ;;  %3330 = vmatprep.mubr.bf16.mxu1 %v9798_v50  ;;  %v9613_v32 = vld [vmem:[#allocation2 + $0x8] ss:$12 sps:$4 sm:$0xff]  }
 0x1ea   :  { %v10076_v40 = vpack.c.bf16 %v3519_v24, %v3507_v33  ;;  %v10078_v41 = vpack.c.bf16 %v3521_v34, %v3509_v23  ;;  %v9199_v33 = vld [vmem:[#allocation8 + $0x18] ss:$12 sps:$4 sm:$0xff]  }
 0x1eb   :  { %v10080_v42 = vpack.c.bf16 %v3520_v38, %v3508_v36  ;;  %v2252_v46 = vpop.f32.mrb[20].mxu0  ;;  %v2478_v47 = vpop.f32.mrb[20].mxu1  ;;  %v10082_v49 = vpack.c.bf16 %v3522_v39, %v3510_v37  ;;  %v9206_v36 = vld [vmem:[#allocation8 + $0x20] ss:$12 sps:$4 sm:$0xff]   ;;  %v9213_v39 = vld [vmem:[#allocation8 + $0xf8] ss:$12 sps:$4 sm:$0xff]  }
 0x1ec   :  { %v8160_v51 = vadd.f32 %v2252_v46, %v9990_v14  ;;  %v8192_v52 = vadd.f32 %v2478_v47, %v9993_v27  ;;  %v2254_v53 = vpop.f32.mrb[21].mxu0  ;;  %v2480_v54 = vpop.f32.mrb[21].mxu1  ;;  %v9204_v38 = vld [vmem:[#allocation8 + $0x34] ss:$12 sps:$4 sm:$0xff]  }
 0x1ed   :  { %v8161_v55 = vadd.f32 %v2254_v53, %v9996_v28  ;;  %v8193_v56 = vadd.f32 %v2480_v54, %v10000_v29  ;;  %v2256_v57 = vpop.f32.mrb[22].mxu0  ;;  %v2482_v61 = vpop.f32.mrb[22].mxu1 }
 0x1ee   :  { %v8162_v1 = vadd.f32 %v2256_v57, %v9990_v14  ;;  %v8194_v7 = vadd.f32 %v2482_v61, %v9993_v27  ;;  %v2258_v9 = vpop.f32.mrb[23].mxu0  ;;  %v2484_v10 = vpop.f32.mrb[23].mxu1  ;;  %v3531_v18 = vmax.f32 %v8160_v51, 0.0  ;;  %v3533_v26 = vmax.f32 %v8192_v52, 0.0 }
 0x1ef   :  { %v8163_v15 = vadd.f32 %v2258_v9, %v9996_v28  ;;  %v8195_v16 = vadd.f32 %v2484_v10, %v10000_v29  ;;  %v3532_v23 = vmax.f32 %v8161_v55, 0.0  ;;  %v3534_v24 = vmax.f32 %v8193_v56, 0.0 }
 0x1f0   :  { %v3543_v13 = vmax.f32 %v8162_v1, 0.0  ;;  %v3545_v31 = vmax.f32 %v8194_v7, 0.0  ;;  %3105 = vmatmul.mubr.bf16.vlgmr.msra.gmra.mrb[64].mxu0 %v9613_v32  ;;  %3331 = vmatmul.mubr.bf16.vlgmr.msra.gmra.mrb[64].mxu1 %v9613_v32  ;;  %v9202_v7 = vld [vmem:[#allocation8 + $0x30] ss:$12 sps:$4 sm:$0xff]  }
 0x1f1   :  { %v3544_v34 = vmax.f32 %v8163_v15, 0.0  ;;  %v3546_v35 = vmax.f32 %v8195_v16, 0.0  ;;  %5637 = vmatpush1.bf16.msra.mxu0 %v9194_v62  ;;  %7757 = vmatpush3.bf16.msra.mxu1 %v9198_v0  ;;  %v9209_v16 = vld [vmem:[#allocation8 + $0x4c] ss:$12 sps:$4 sm:$0xff]  }
 0x1f2   :  { %v10092_v37 = vpack.c.bf16 %v3543_v13, %v3531_v18  ;;  %5638 = vmatprep.subr.bf16.mxu0 %v9201_v11  ;;  %3114 = vmatprep.mubr.bf16.mxu0 %v9798_v50  ;;  %v10095_v46 = vpack.c.bf16 %v3545_v31, %v3533_v26  ;;  %v9214_v26 = vld [vmem:[#allocation8 + $0x38] ss:$12 sps:$4 sm:$0xff]  }
 0x1f3   :  { %v10097_v47 = vpack.c.bf16 %v3544_v34, %v3532_v23  ;;  %v2262_v51 = vpop.f32.mrb[24].mxu0  ;;  %v2488_v52 = vpop.f32.mrb[24].mxu1  ;;  %3340 = vmatprep.mubr.bf16.mxu1 %v9798_v50  ;;  %7758 = vmatprep.subr.bf16.mxu1 %v9205_v17  ;;  %v10100_v53 = vpack.c.bf16 %v3546_v35, %v3534_v24  ;;  %v9614_v23 = vld [vmem:[#allocation2 + $0x20] ss:$12 sps:$4 sm:$0xff]   ;;  %v9221_v24 = vld [vmem:[#allocation8 + $0x110] ss:$12 sps:$4 sm:$0xff]  }
 0x1f4   :  { %v8164_v54 = vadd.f32 %v2262_v51, %v9990_v14  ;;  %v8196_v55 = vadd.f32 %v2488_v52, %v9993_v27  ;;  %v2264_v56 = vpop.f32.mrb[25].mxu0  ;;  %v2490_v57 = vpop.f32.mrb[25].mxu1  ;;  %v9212_v52 = vld [vmem:[#allocation8 + $0x64] ss:$12 sps:$4 sm:$0xff]  }
 0x1f5   :  { %v8165_v61 = vadd.f32 %v2264_v56, %v9996_v28  ;;  %v8197_v62 = vadd.f32 %v2490_v57, %v10000_v29  ;;  %v2266_v0 = vpop.f32.mrb[26].mxu0  ;;  %v2492_v1 = vpop.f32.mrb[26].mxu1  ;;  %5639 = vmatpush1.bf16.msra.mxu0 %v9199_v33  ;;  %7759 = vmatpush3.bf16.msra.mxu1 %v9206_v36 }
 0x1f6   :  { %v8166_v9 = vadd.f32 %v2266_v0, %v9990_v14  ;;  %v8198_v10 = vadd.f32 %v2492_v1, %v9993_v27  ;;  %v2268_v11 = vpop.f32.mrb[27].mxu0  ;;  %v2494_v15 = vpop.f32.mrb[27].mxu1  ;;  %5640 = vmatprep.subr.bf16.mxu0 %v9204_v38  ;;  %7760 = vmatprep.subr.bf16.mxu1 %v9213_v39  ;;  %v3555_v13 = vmax.f32 %v8164_v54, 0.0  ;;  %v3557_v31 = vmax.f32 %v8196_v55, 0.0  ;;  %v9207_v38 = vld [vmem:[#allocation8 + $0x48] ss:$12 sps:$4 sm:$0xff]  }
 0x1f7   :  { %v8167_v17 = vadd.f32 %v2268_v11, %v9996_v28  ;;  %v8199_v18 = vadd.f32 %v2494_v15, %v10000_v29  ;;  %v3556_v34 = vmax.f32 %v8165_v61, 0.0  ;;  %v3558_v35 = vmax.f32 %v8197_v62, 0.0  ;;  %v9222_v61 = vld [vmem:[#allocation8 + $0x50] ss:$12 sps:$4 sm:$0xff]  }
 0x1f8   :  { %v3567_v32 = vmax.f32 %v8166_v9, 0.0  ;;  %v3569_v33 = vmax.f32 %v8198_v10, 0.0  ;;  %3115 = vmatmul.mubr.bf16.gmra.mrb[68].mxu0 %v9614_v23  ;;  %3341 = vmatmul.mubr.bf16.gmra.mrb[68].mxu1 %v9614_v23 }
 0x1f9   :  { %v3568_v36 = vmax.f32 %v8167_v17, 0.0  ;;  %v3570_v51 = vmax.f32 %v8199_v18, 0.0  ;;  %5641 = vmatpush1.bf16.msra.mxu0 %v9202_v7  ;;  %3124 = vmatprep.mubr.bf16.mxu0 %v9798_v50  ;;  %v9210_v17 = vld [vmem:[#allocation8 + $0x60] ss:$12 sps:$4 sm:$0xff]  }
 0x1fa   :  { %v10111_v39 = vpack.c.bf16 %v3567_v32, %v3555_v13  ;;  %5642 = vmatprep.subr.bf16.mxu0 %v9209_v16  ;;  %3350 = vmatprep.mubr.bf16.mxu1 %v9798_v50  ;;  %v10114_v54 = vpack.c.bf16 %v3569_v33, %v3557_v31  ;;  %v9217_v32 = vld [vmem:[#allocation8 + $0x7c] ss:$12 sps:$4 sm:$0xff]  }
 0x1fb   :  { %v10116_v55 = vpack.c.bf16 %v3568_v36, %v3556_v34  ;;  %v2272_v56 = vpop.f32.mrb[28].mxu0  ;;  %v2498_v57 = vpop.f32.mrb[28].mxu1  ;;  %7761 = vmatpush3.bf16.msra.mxu1 %v9214_v26  ;;  %v10118_v62 = vpack.c.bf16 %v3570_v51, %v3558_v35  ;;  %v9229_v34 = vld [vmem:[#allocation8 + $0x128] ss:$12 sps:$4 sm:$0xff]  }
 0x1fc   :  { %v8168_v0 = vadd.f32 %v2272_v56, %v9990_v14  ;;  %v8200_v1 = vadd.f32 %v2498_v57, %v9993_v27  ;;  %v2274_v7 = vpop.f32.mrb[29].mxu0  ;;  %v2500_v9 = vpop.f32.mrb[29].mxu1  ;;  %7762 = vmatprep.subr.bf16.mxu1 %v9221_v24  ;;  %v9215_v24 = vld [vmem:[#allocation8 + $0x78] ss:$12 sps:$4 sm:$0xff]  }
 0x1fd   :  { %v8169_v10 = vadd.f32 %v2274_v7, %v9996_v28  ;;  %v8201_v11 = vadd.f32 %v2500_v9, %v10000_v29  ;;  %v2276_v15 = vpop.f32.mrb[30].mxu0  ;;  %v2502_v16 = vpop.f32.mrb[30].mxu1  ;;  %5643 = vmatpush1.bf16.msra.mxu0 %v9207_v38  ;;  %v9615_v56 = vld [vmem:[#allocation2 + $0x38] ss:$12 sps:$4 sm:$0xff]  }
 0x1fe   :  { %v8170_v18 = vadd.f32 %v2276_v15, %v9990_v14  ;;  %v8202_v26 = vadd.f32 %v2502_v16, %v9993_v27  ;;  %v2278_v13 = vpop.f32.mrb[31].mxu0  ;;  %v2504_v31 = vpop.f32.mrb[31].mxu1  ;;  %5644 = vmatprep.subr.bf16.mxu0 %v9212_v52  ;;  %v3579_v35 = vmax.f32 %v8168_v0, 0.0  ;;  %v3581_v36 = vmax.f32 %v8200_v1, 0.0  ;;  %v9230_v14 = vld [vmem:[#allocation8 + $0x68] ss:$12 sps:$4 sm:$0xff]  }
 0x1ff   :  { %v8171_v33 = vadd.f32 %v2278_v13, %v9996_v28  ;;  %v8203_v23 = vadd.f32 %v2504_v31, %v10000_v29  ;;  %7763 = vmatpush3.bf16.msra.mxu1 %v9222_v61  ;;  %v3580_v27 = vmax.f32 %v8169_v10, 0.0  ;;  %v3582_v57 = vmax.f32 %v8201_v11, 0.0  ;;  %v9237_v28 = vld [vmem:[#allocation8 + $0x140] ss:$12 sps:$4 sm:$0xff]   ;;  %v9218_v10 = vld [vmem:[#allocation8 + $0x90] ss:$12 sps:$4 sm:$0xff]  }
 0x200   :  { %v3591_v51 = vmax.f32 %v8170_v18, 0.0  ;;  %v3593_v38 = vmax.f32 %v8202_v26, 0.0  ;;  %3125 = vmatmul.mubr.bf16.gmra.mrb[72].mxu0 %v9615_v56  ;;  %3351 = vmatmul.mubr.bf16.gmra.mrb[72].mxu1 %v9615_v56  ;;  %v9220_v61 = vld [vmem:[#allocation8 + $0x94] ss:$12 sps:$4 sm:$0xff]   ;;  %v9225_v11 = vld [vmem:[#allocation8 + $0xac] ss:$12 sps:$4 sm:$0xff]  }
 0x201   :  { %v3592_v7 = vmax.f32 %v8171_v33, 0.0  ;;  %v3594_v52 = vmax.f32 %v8203_v23, 0.0  ;;  %5645 = vmatpush1.bf16.msra.mxu0 %v9210_v17  ;;  %3134 = vmatprep.mubr.bf16.mxu0 %v9798_v50  ;;  %v9238_v15 = vld [vmem:[#allocation8 + $0x80] ss:$12 sps:$4 sm:$0xff]   ;;  %v9616_v16 = vld [vmem:[#allocation2 + $0x50] ss:$12 sps:$4 sm:$0xff]  }
 0x202   :  { %v10129_v29 = vpack.c.bf16 %v3591_v51, %v3579_v35  ;;  %5646 = vmatprep.subr.bf16.mxu0 %v9217_v32  ;;  %3360 = vmatprep.mubr.bf16.mxu1 %v9798_v50  ;;  %v10132_v0 = vpack.c.bf16 %v3593_v38, %v3581_v36  ;;  %v9245_v17 = vld [vmem:[#allocation8 + $0x158] ss:$12 sps:$4 sm:$0xff]   ;;  %v9223_v18 = vld [vmem:[#allocation8 + $0xa8] ss:$12 sps:$4 sm:$0xff]   ;;  %v9226_v31 = vld [vmem:[#allocation8 + $0xc0] ss:$12 sps:$4 sm:$0xff]  }
 0x203   :  { %v10134_v1 = vpack.c.bf16 %v3592_v7, %v3580_v27  ;;  %7764 = vmatprep.subr.bf16.mxu1 %v9229_v34  ;;  %v10136_v9 = vpack.c.bf16 %v3594_v52, %v3582_v57  ;;  %v9228_v26 = vld [vmem:[#allocation8 + $0xc4] ss:$12 sps:$4 sm:$0xff]   ;;  %v9233_v32 = vld [vmem:[#allocation8 + $0xdc] ss:$12 sps:$4 sm:$0xff]   ;;  %v9236_v36 = vld [vmem:[#allocation8 + $0xf4] ss:$12 sps:$4 sm:$0xff]  }
 0x204   :  { %7765 = vmatpush3.bf16.msra.mxu1 %v9230_v14  ;;  %v9246_v13 = vld [vmem:[#allocation8 + $0x98] ss:$12 sps:$4 sm:$0xff]   ;;  %v9253_v33 = vld [vmem:[#allocation8 + $0x170] ss:$12 sps:$4 sm:$0xff]   ;;  %v9261_v35 = vld [vmem:[#allocation8 + $0x248] ss:$12 sps:$4 sm:$0xff]  }
 0x205   :  { %5647 = vmatpush1.bf16.msra.mxu0 %v9215_v24  ;;  %7766 = vmatprep.subr.bf16.mxu1 %v9237_v28  ;;  %v9617_v23 = vld [vmem:[#allocation2 + $0x68] ss:$12 sps:$4 sm:$0xff]   ;;  %v9231_v34 = vld [vmem:[#allocation8 + $0xd8] ss:$12 sps:$4 sm:$0xff]   ;;  %v9618_v56 = vld [vmem:[#allocation2 + $0x80] ss:$12 sps:$4 sm:$0xff]  }
 0x206   :  { %5648 = vmatprep.subr.bf16.mxu0 %v9220_v61  ;;  %v9254_v24 = vld [vmem:[#allocation8 + $0xb0] ss:$12 sps:$4 sm:$0xff]   ;;  %v9241_v38 = vld [vmem:[#allocation8 + $0x10c] ss:$12 sps:$4 sm:$0xff]   ;;  %v9239_v14 = vld [vmem:[#allocation8 + $0x108] ss:$12 sps:$4 sm:$0xff]  }
 0x207   :  { %v9234_v51 = vld [vmem:[#allocation8 + $0xf0] ss:$12 sps:$4 sm:$0xff]   ;;  %v9242_v57 = vld [vmem:[#allocation8 + $0x120] ss:$12 sps:$4 sm:$0xff]   ;;  %v9247_v28 = vld [vmem:[#allocation8 + $0x138] ss:$12 sps:$4 sm:$0xff]  }
 0x208   :  { %3135 = vmatmul.mubr.bf16.gmra.mrb[76].mxu0 %v9616_v16  ;;  %3361 = vmatmul.mubr.bf16.gmra.mrb[76].mxu1 %v9616_v16  ;;  %v9244_v27 = vld [vmem:[#allocation8 + $0x124] ss:$12 sps:$4 sm:$0xff]   ;;  %v9249_v7 = vld [vmem:[#allocation8 + $0x13c] ss:$12 sps:$4 sm:$0xff]   ;;  %v9619_v52 = vld [vmem:[#allocation2 + $0x98] ss:$12 sps:$4 sm:$0xff]  }
 0x209   :  { %5649 = vmatpush1.bf16.msra.mxu0 %v9218_v10  ;;  %3144 = vmatprep.mubr.bf16.mxu0 %v9798_v50  ;;  %v9252_v61 = vld [vmem:[#allocation8 + $0x154] ss:$12 sps:$4 sm:$0xff]   ;;  %v9250_v10 = vld [vmem:[#allocation8 + $0x150] ss:$12 sps:$4 sm:$0xff]  }
 0x20a   :  { %5650 = vmatprep.subr.bf16.mxu0 %v9225_v11  ;;  %3370 = vmatprep.mubr.bf16.mxu1 %v9798_v50  ;;  %v9257_v11 = vld [vmem:[#allocation8 + $0x16c] ss:$12 sps:$4 sm:$0xff]   ;;  %v9255_v16 = vld [vmem:[#allocation8 + $0x168] ss:$12 sps:$4 sm:$0xff]  }
 0x20b   :  { %7767 = vmatpush3.bf16.msra.mxu1 %v9238_v15  ;;  %v9620_v15 = vld [vmem:[#allocation2 + $0xb0] ss:$12 sps:$4 sm:$0xff]  }
 0x20c   :  { %7768 = vmatprep.subr.bf16.mxu1 %v9245_v17  ;;  %v9260_v17 = vld [vmem:[#allocation8 + $0x184] ss:$12 sps:$4 sm:$0xff]  }
 0x20d   :  { %5651 = vmatpush1.bf16.msra.mxu0 %v9223_v18  ;;  %v9258_v18 = vld [vmem:[#allocation8 + $0x180] ss:$12 sps:$4 sm:$0xff]  }
 0x20e   :  { %5652 = vmatprep.subr.bf16.mxu0 %v9228_v26  ;;  %v9265_v26 = vld [vmem:[#allocation8 + $0x19c] ss:$12 sps:$4 sm:$0xff]  }
 0x20f   :  { %7769 = vmatpush3.bf16.msra.mxu1 %v9246_v13  ;;  %v9269_v13 = vld [vmem:[#allocation8 + $0x260] ss:$12 sps:$4 sm:$0xff]  }
 0x210   :  { %3145 = vmatmul.mubr.bf16.gmra.mrb[80].mxu0 %v9617_v23  ;;  %3371 = vmatmul.mubr.bf16.gmra.mrb[80].mxu1 %v9617_v23  ;;  %v9266_v23 = vld [vmem:[#allocation8 + $0x1b0] ss:$12 sps:$4 sm:$0xff]  }
 0x211   :  { %5653 = vmatpush1.bf16.msra.mxu0 %v9226_v31  ;;  %3154 = vmatprep.mubr.bf16.mxu0 %v9798_v50  ;;  %v9263_v31 = vld [vmem:[#allocation8 + $0x198] ss:$12 sps:$4 sm:$0xff]  }
 0x212   :  { %5654 = vmatprep.subr.bf16.mxu0 %v9233_v32  ;;  %3380 = vmatprep.mubr.bf16.mxu1 %v9798_v50  ;;  %v9270_v32 = vld [vmem:[#allocation8 + $0x1a0] ss:$12 sps:$4 sm:$0xff]  }
 0x213   :  { %7770 = vmatprep.subr.bf16.mxu1 %v9253_v33  ;;  %v9277_v33 = vld [vmem:[#allocation8 + $0x278] ss:$12 sps:$4 sm:$0xff]  }
 0x214   :  { %7771 = vmatpush3.bf16.msra.mxu1 %v9254_v24  ;;  %v9273_v24 = vld [vmem:[#allocation8 + $0x1cc] ss:$12 sps:$4 sm:$0xff]  }
 0x215   :  { %5655 = vmatpush1.bf16.msra.mxu0 %v9231_v34  ;;  %7820 = vmatprep.subr.bf16.mxu1 %v9261_v35  ;;  %v9278_v34 = vld [vmem:[#allocation8 + $0x1b8] ss:$12 sps:$4 sm:$0xff]  }
 0x216   :  { %5656 = vmatprep.subr.bf16.mxu0 %v9236_v36  ;;  %v9276_v35 = vld [vmem:[#allocation8 + $0x1e4] ss:$12 sps:$4 sm:$0xff]  }
 0x217   :  { %v9286_v36 = vld [vmem:[#allocation8 + $0x1d0] ss:$12 sps:$4 sm:$0xff]  }
 0x218   :  { %3155 = vmatmul.mubr.bf16.gmra.mrb[84].mxu0 %v9618_v56  ;;  %3381 = vmatmul.mubr.bf16.gmra.mrb[84].mxu1 %v9618_v56  ;;  %v9274_v56 = vld [vmem:[#allocation8 + $0x1e0] ss:$12 sps:$4 sm:$0xff]  }
 0x219   :  { %5657 = vmatpush1.bf16.msra.mxu0 %v9234_v51  ;;  %3164 = vmatprep.mubr.bf16.mxu0 %v9798_v50  ;;  %v445_v51 = vsub.s32 4, %v9977_v8 }
 0x21a   :  { %5658 = vmatprep.subr.bf16.mxu0 %v9241_v38  ;;  %3390 = vmatprep.mubr.bf16.mxu1 %v9798_v50  ;;  %v453_v38 = vsub.s32 6, %v9977_v8 }
 0x21d   :  { %5659 = vmatpush1.bf16.msra.mxu0 %v9239_v14  ;;  %v457_v14 = vsub.s32 7, %v9977_v8 }
 0x21e   :  { %5660 = vmatprep.subr.bf16.mxu0 %v9244_v27  ;;  %v9281_v27 = vld [vmem:[#allocation8 + $0x1fc] ss:$12 sps:$4 sm:$0xff]  }
 0x220   :  { %3165 = vmatmul.mubr.bf16.gmra.mrb[88].mxu0 %v9619_v52  ;;  %3391 = vmatmul.mubr.bf16.gmra.mrb[88].mxu1 %v9619_v52 }
 0x221   :  { %5661 = vmatpush1.bf16.msra.mxu0 %v9242_v57  ;;  %3174 = vmatprep.mubr.bf16.mxu0 %v9798_v50  ;;  %v9293_v57 = vld [vmem:[#allocation8 + $0x2a8] ss:$12 sps:$4 sm:$0xff]  }
 0x222   :  { %5662 = vmatprep.subr.bf16.mxu0 %v9249_v7  ;;  %3400 = vmatprep.mubr.bf16.mxu1 %v9798_v50  ;;  %v9262_v50 = vld [vmem:[#allocation8 + $0x188] ss:$12 sps:$4 sm:$0xff]  }
 0x225   :  { %5663 = vmatpush1.bf16.msra.mxu0 %v9247_v28  ;;  %v9294_v28 = vld [vmem:[#allocation8 + $0x1e8] ss:$12 sps:$4 sm:$0xff]  }
 0x226   :  { %5664 = vmatprep.subr.bf16.mxu0 %v9252_v61 }
 0x228   :  { %3175 = vmatmul.mubr.bf16.gmra.mrb[92].mxu0 %v9620_v15  ;;  %3401 = vmatmul.mubr.bf16.gmra.mrb[92].mxu1 %v9620_v15  ;;  %v9301_v15 = vld [vmem:[#allocation8 + $0x2c0] ss:$12 sps:$4 sm:$0xff]  }
 0x229   :  { %5665 = vmatpush1.bf16.msra.mxu0 %v9250_v10  ;;  %5668 = vmatprep.mubr.bf16.mxu0 %v10014_v5 }
 0x22a   :  { %6346 = vmatprep.mubr.bf16.mxu1 %v10014_v5  ;;  %5666 = vmatprep.subr.bf16.mxu0 %v9257_v11  ;;  %v9268_v5 = vld [vmem:[#allocation8 + $0x1b4] ss:$12 sps:$4 sm:$0xff]   ;;  %v9279_v11 = vld [vmem:[#allocation8 + $0x1f8] ss:$12 sps:$4 sm:$0xff]  }
 0x22d   :  { %5667 = vmatpush1.bf16.msra.mxu0 %v9255_v16  ;;  %v9284_v16 = vld [vmem:[#allocation8 + $0x214] ss:$12 sps:$4 sm:$0xff]  }
 0x22e   :  { %5749 = vmatprep.subr.bf16.mxu0 %v9260_v17 }
 0x230   :  { %5669 = vmatmul.mubr.bf16.vlgmr.msra.gmra.mrb[96].mxu0 %v10010_v2  ;;  %6347 = vmatmul.mubr.bf16.vlgmr.msra.gmra.mrb[96].mxu1 %v10010_v2  ;;  %v9285_v2 = vld [vmem:[#allocation8 + $0x290] ss:$12 sps:$4 sm:$0xff]  }
 0x231   :  { %5678 = vmatprep.mubr.bf16.mxu0 %v10030_v45  ;;  %5750 = vmatpush1.bf16.msra.mxu0 %v9258_v18 }
 0x232   :  { %6354 = vmatprep.mubr.bf16.mxu1 %v10030_v45  ;;  %7821 = vmatpush3.bf16.msra.mxu1 %v9262_v50  ;;  %v9271_v45 = vld [vmem:[#allocation8 + $0x1c8] ss:$12 sps:$4 sm:$0xff]  }
 0x233   :  { %5751 = vmatprep.subr.bf16.mxu0 %v9265_v26  ;;  %7822 = vmatprep.subr.bf16.mxu1 %v9269_v13 }
 0x235   :  { %5752 = vmatpush1.bf16.msra.mxu0 %v9263_v31 }
 0x236   :  { %5753 = vmatprep.subr.bf16.mxu0 %v9268_v5  ;;  %7823 = vmatpush3.bf16.msra.mxu1 %v9270_v32 }
 0x237   :  { %7824 = vmatprep.subr.bf16.mxu1 %v9277_v33 }
 0x238   :  { %5679 = vmatmul.mubr.bf16.gmra.mrb[100].mxu0 %v10026_v43  ;;  %6355 = vmatmul.mubr.bf16.gmra.mrb[100].mxu1 %v10026_v43  ;;  %v449_v43 = vsub.s32 5, %v9977_v8 }
 0x239   :  { %5688 = vmatprep.mubr.bf16.mxu0 %v10046_v25  ;;  %5754 = vmatpush1.bf16.msra.mxu0 %v9266_v23 }
 0x23a   :  { %6362 = vmatprep.mubr.bf16.mxu1 %v10046_v25  ;;  %5755 = vmatprep.subr.bf16.mxu0 %v9273_v24  ;;  %v9621_v25 = vld [vmem:[#allocation7] sm:$0xff] }
 0x23b   :  { %7825 = vmatpush3.bf16.msra.mxu1 %v9278_v34  ;;  %v10162_v7 = vrot.slane %v9621_v25, %v445_v51  ;;  %v10164_v52 = vrot.slane %v9621_v25, %v453_v38  ;;  %v10167_v61 = vrot.slane %v9621_v25, %v449_v43  ;;  %v10169_v10 = vrot.slane %v9621_v25, %v457_v14  ;;  %v9302_v51 = vld [vmem:[#allocation8 + $0x200] ss:$12 sps:$4 sm:$0xff]  }
 0x23c   :  { %7826 = vmatprep.subr.bf16.mxu1 %v9285_v2 }
 0x23d   :  { %5756 = vmatpush1.bf16.msra.mxu0 %v9271_v45  ;;  %v9289_v45 = vld [vmem:[#allocation8 + $0x22c] ss:$12 sps:$4 sm:$0xff]  }
 0x23e   :  { %5757 = vmatprep.subr.bf16.mxu0 %v9276_v35 }
 0x23f   :  { %7827 = vmatpush3.bf16.msra.mxu1 %v9286_v36 }
 0x240   :  { %5689 = vmatmul.mubr.bf16.gmra.mrb[104].mxu0 %v10042_v21  ;;  %6363 = vmatmul.mubr.bf16.gmra.mrb[104].mxu1 %v10042_v21 }
 0x241   :  { %5698 = vmatprep.mubr.bf16.mxu0 %v10062_v60  ;;  %5758 = vmatpush1.bf16.msra.mxu0 %v9274_v56 }
 0x242   :  { %6370 = vmatprep.mubr.bf16.mxu1 %v10062_v60  ;;  %5759 = vmatprep.subr.bf16.mxu0 %v9281_v27  ;;  %v9282_v60 = vld [vmem:[#allocation8 + $0x210] ss:$12 sps:$4 sm:$0xff]   ;;  %v9309_v27 = vld [vmem:[#allocation8 + $0x2d8] ss:$12 sps:$4 sm:$0xff]  }
 0x243   :  { %v2654_v21 = vpop.f32.mrb[32].mxu0  ;;  %v2880_v17 = vpop.f32.mrb[32].mxu1  ;;  %7828 = vmatprep.subr.bf16.mxu1 %v9293_v57 }
 0x244   :  { %v8204_v18 = vadd.f32 %v2654_v21, %v10162_v7  ;;  %v8236_v50 = vadd.f32 %v2880_v17, %v10164_v52  ;;  %v2656_v26 = vpop.f32.mrb[33].mxu0  ;;  %v2882_v13 = vpop.f32.mrb[33].mxu1  ;;  %7829 = vmatpush3.bf16.msra.mxu1 %v9294_v28  ;;  %v9292_v17 = vld [vmem:[#allocation8 + $0x244] ss:$12 sps:$4 sm:$0xff]  }
 0x245   :  { %v8205_v31 = vadd.f32 %v2656_v26, %v10167_v61  ;;  %v8237_v5 = vadd.f32 %v2882_v13, %v10169_v10  ;;  %v2658_v32 = vpop.f32.mrb[34].mxu0  ;;  %v2884_v33 = vpop.f32.mrb[34].mxu1  ;;  %5760 = vmatpush1.bf16.msra.mxu0 %v9279_v11  ;;  %7830 = vmatprep.subr.bf16.mxu1 %v9301_v15  ;;  %v9287_v15 = vld [vmem:[#allocation8 + $0x228] ss:$12 sps:$4 sm:$0xff]   ;;  %v9310_v13 = vld [vmem:[#allocation8 + $0x218] ss:$12 sps:$4 sm:$0xff]  }
 0x246   :  { %v8206_v23 = vadd.f32 %v2658_v32, %v10162_v7  ;;  %v8238_v24 = vadd.f32 %v2884_v33, %v10164_v52  ;;  %v2660_v34 = vpop.f32.mrb[35].mxu0  ;;  %v2886_v2 = vpop.f32.mrb[35].mxu1  ;;  %5761 = vmatprep.subr.bf16.mxu0 %v9284_v16  ;;  %v3415_v38 = vmax.f32 %v8204_v18, 0.0  ;;  %v3417_v56 = vmax.f32 %v8236_v50, 0.0 }
 0x247   :  { %v8207_v35 = vadd.f32 %v2660_v34, %v10167_v61  ;;  %v8239_v36 = vadd.f32 %v2886_v2, %v10169_v10  ;;  %v3416_v57 = vmax.f32 %v8205_v31, 0.0  ;;  %v3418_v25 = vmax.f32 %v8237_v5, 0.0  ;;  %v9290_v34 = vld [vmem:[#allocation8 + $0x240] ss:$12 sps:$4 sm:$0xff]  }
 0x248   :  { %v3427_v43 = vmax.f32 %v8206_v23, 0.0  ;;  %v3429_v14 = vmax.f32 %v8238_v24, 0.0  ;;  %5699 = vmatmul.mubr.bf16.gmra.mrb[108].mxu0 %v10058_v58  ;;  %6371 = vmatmul.mubr.bf16.gmra.mrb[108].mxu1 %v10058_v58 }
 0x249   :  { %v3428_v28 = vmax.f32 %v8207_v35, 0.0  ;;  %v3430_v11 = vmax.f32 %v8239_v36, 0.0  ;;  %5708 = vmatprep.mubr.bf16.mxu0 %v10080_v42  ;;  %5762 = vmatpush1.bf16.msra.mxu0 %v9282_v60 }
 0x24a   :  { %v10183_v16 = vpack.c.bf16 %v3427_v43, %v3415_v38  ;;  %v10185_v21 = vpack.c.bf16 %v3429_v14, %v3417_v56  ;;  %6378 = vmatprep.mubr.bf16.mxu1 %v10080_v42  ;;  %5763 = vmatprep.subr.bf16.mxu0 %v9289_v45  ;;  %v9295_v43 = vld [vmem:[#allocation8 + $0x258] ss:$12 sps:$4 sm:$0xff]   ;;  %v9317_v14 = vld [vmem:[#allocation8 + $0x2f0] ss:$12 sps:$4 sm:$0xff]  }
 0x24b   :  { %v10188_v18 = vpack.c.bf16 %v3428_v28, %v3416_v57  ;;  %v10190_v58 = vpack.c.bf16 %v3430_v11, %v3418_v25  ;;  %v2664_v50 = vpop.f32.mrb[36].mxu0  ;;  %v2890_v26 = vpop.f32.mrb[36].mxu1  ;;  %7831 = vmatpush3.bf16.msra.mxu1 %v9302_v51  ;;  %v9297_v51 = vld [vmem:[#allocation8 + $0x25c] ss:$12 sps:$4 sm:$0xff]  }
 0x24c   :  { %v8208_v31 = vadd.f32 %v2664_v50, %v10162_v7  ;;  %v8240_v5 = vadd.f32 %v2890_v26, %v10164_v52  ;;  %v2666_v32 = vpop.f32.mrb[37].mxu0  ;;  %v2892_v33 = vpop.f32.mrb[37].mxu1  ;;  %7832 = vmatprep.subr.bf16.mxu1 %v9309_v27  ;;  %v9318_v11 = vld [vmem:[#allocation8 + $0x230] ss:$12 sps:$4 sm:$0xff]  }
 0x24d   :  { %v8209_v60 = vadd.f32 %v2666_v32, %v10167_v61  ;;  %v8241_v42 = vadd.f32 %v2892_v33, %v10169_v10  ;;  %v2668_v23 = vpop.f32.mrb[38].mxu0  ;;  %v2894_v24 = vpop.f32.mrb[38].mxu1  ;;  %5764 = vmatpush1.bf16.msra.mxu0 %v9287_v15  ;;  %v9325_v32 = vld [vmem:[#allocation8 + $0x3c8] ss:$12 sps:$4 sm:$0xff]  }
 0x24e   :  { %v8210_v2 = vadd.f32 %v2668_v23, %v10162_v7  ;;  %v8242_v45 = vadd.f32 %v2894_v24, %v10164_v52  ;;  %v2670_v35 = vpop.f32.mrb[39].mxu0  ;;  %v2896_v36 = vpop.f32.mrb[39].mxu1  ;;  %5765 = vmatprep.subr.bf16.mxu0 %v9292_v17  ;;  %v3439_v27 = vmax.f32 %v8208_v31, 0.0  ;;  %v3441_v57 = vmax.f32 %v8240_v5, 0.0  ;;  %v9300_v31 = vld [vmem:[#allocation8 + $0x274] ss:$12 sps:$4 sm:$0xff]  }
 0x24f   :  { %v8211_v38 = vadd.f32 %v2670_v35, %v10167_v61  ;;  %v8243_v56 = vadd.f32 %v2896_v36, %v10169_v10  ;;  %7833 = vmatpush3.bf16.msra.mxu1 %v9310_v13  ;;  %v3440_v15 = vmax.f32 %v8209_v60, 0.0  ;;  %v3442_v50 = vmax.f32 %v8241_v42, 0.0 }
 0x250   :  { %v3451_v25 = vmax.f32 %v8210_v2, 0.0  ;;  %v3453_v28 = vmax.f32 %v8242_v45, 0.0  ;;  %5709 = vmatmul.mubr.bf16.gmra.mrb[112].mxu0 %v10076_v40  ;;  %6379 = vmatmul.mubr.bf16.gmra.mrb[112].mxu1 %v10076_v40 }
 0x251   :  { %v3452_v17 = vmax.f32 %v8211_v38, 0.0  ;;  %v3454_v26 = vmax.f32 %v8243_v56, 0.0  ;;  %5718 = vmatprep.mubr.bf16.mxu0 %v10097_v47  ;;  %5766 = vmatpush1.bf16.msra.mxu0 %v9290_v34 }
 0x252   :  { %v10203_v33 = vpack.c.bf16 %v3451_v25, %v3439_v27  ;;  %v10205_v13 = vpack.c.bf16 %v3453_v28, %v3441_v57  ;;  %6386 = vmatprep.mubr.bf16.mxu1 %v10097_v47  ;;  %5767 = vmatprep.subr.bf16.mxu0 %v9297_v51  ;;  %v9298_v51 = vld [vmem:[#allocation8 + $0x270] ss:$12 sps:$4 sm:$0xff]   ;;  %v9305_v57 = vld [vmem:[#allocation8 + $0x28c] ss:$12 sps:$4 sm:$0xff]  }
 0x253   :  { %v10208_v5 = vpack.c.bf16 %v3452_v17, %v3440_v15  ;;  %v10210_v40 = vpack.c.bf16 %v3454_v26, %v3442_v50  ;;  %v2674_v60 = vpop.f32.mrb[40].mxu0  ;;  %v2900_v42 = vpop.f32.mrb[40].mxu1  ;;  %7834 = vmatprep.subr.bf16.mxu1 %v9317_v14 }
 0x254   :  { %v8212_v23 = vadd.f32 %v2674_v60, %v10162_v7  ;;  %v8244_v24 = vadd.f32 %v2900_v42, %v10164_v52  ;;  %v2676_v34 = vpop.f32.mrb[41].mxu0  ;;  %v2902_v2 = vpop.f32.mrb[41].mxu1  ;;  %7835 = vmatpush3.bf16.msra.mxu1 %v9318_v11 }
 0x255   :  { %v8213_v45 = vadd.f32 %v2676_v34, %v10167_v61  ;;  %v8245_v47 = vadd.f32 %v2902_v2, %v10169_v10  ;;  %v2678_v35 = vpop.f32.mrb[42].mxu0  ;;  %v2904_v36 = vpop.f32.mrb[42].mxu1  ;;  %5768 = vmatpush1.bf16.msra.mxu0 %v9295_v43  ;;  %7884 = vmatprep.subr.bf16.mxu1 %v9325_v32 }
 0x256   :  { %v8214_v38 = vadd.f32 %v2678_v35, %v10162_v7  ;;  %v8246_v56 = vadd.f32 %v2904_v36, %v10164_v52  ;;  %v2680_v14 = vpop.f32.mrb[43].mxu0  ;;  %v2906_v27 = vpop.f32.mrb[43].mxu1  ;;  %5769 = vmatprep.subr.bf16.mxu0 %v9300_v31  ;;  %v3463_v11 = vmax.f32 %v8212_v23, 0.0  ;;  %v3465_v15 = vmax.f32 %v8244_v24, 0.0  ;;  %v9303_v31 = vld [vmem:[#allocation8 + $0x288] ss:$12 sps:$4 sm:$0xff]  }
 0x257   :  { %v8215_v25 = vadd.f32 %v2680_v14, %v10167_v61  ;;  %v8247_v28 = vadd.f32 %v2906_v27, %v10169_v10  ;;  %v3464_v43 = vmax.f32 %v8213_v45, 0.0  ;;  %v3466_v26 = vmax.f32 %v8245_v47, 0.0  ;;  %v9308_v23 = vld [vmem:[#allocation8 + $0x2a4] ss:$12 sps:$4 sm:$0xff]   ;;  %v9306_v27 = vld [vmem:[#allocation8 + $0x2a0] ss:$12 sps:$4 sm:$0xff]  }
 0x258   :  { %v3475_v50 = vmax.f32 %v8214_v38, 0.0  ;;  %v3477_v17 = vmax.f32 %v8246_v56, 0.0  ;;  %5719 = vmatmul.mubr.bf16.gmra.mrb[116].mxu0 %v10092_v37  ;;  %6387 = vmatmul.mubr.bf16.gmra.mrb[116].mxu1 %v10092_v37 }
 0x259   :  { %v3476_v32 = vmax.f32 %v8215_v25, 0.0  ;;  %v3478_v60 = vmax.f32 %v8247_v28, 0.0  ;;  %5728 = vmatprep.mubr.bf16.mxu0 %v10116_v55  ;;  %5770 = vmatpush1.bf16.msra.mxu0 %v9298_v51 }
 0x25a   :  { %v10223_v42 = vpack.c.bf16 %v3475_v50, %v3463_v11  ;;  %v10225_v34 = vpack.c.bf16 %v3477_v17, %v3465_v15  ;;  %6394 = vmatprep.mubr.bf16.mxu1 %v10116_v55  ;;  %5771 = vmatprep.subr.bf16.mxu0 %v9305_v57  ;;  %v9313_v15 = vld [vmem:[#allocation8 + $0x2bc] ss:$12 sps:$4 sm:$0xff]  }
 0x25b   :  { %v10228_v24 = vpack.c.bf16 %v3476_v32, %v3464_v43  ;;  %v10230_v2 = vpack.c.bf16 %v3478_v60, %v3466_v26  ;;  %v2684_v37 = vpop.f32.mrb[44].mxu0  ;;  %v2910_v45 = vpop.f32.mrb[44].mxu1 }
 0x25c   :  { %v8216_v47 = vadd.f32 %v2684_v37, %v10162_v7  ;;  %v8248_v35 = vadd.f32 %v2910_v45, %v10164_v52  ;;  %v2686_v36 = vpop.f32.mrb[45].mxu0  ;;  %v2912_v51 = vpop.f32.mrb[45].mxu1 }
 0x25d   :  { %v8217_v38 = vadd.f32 %v2686_v36, %v10167_v61  ;;  %v8249_v56 = vadd.f32 %v2912_v51, %v10169_v10  ;;  %v2688_v14 = vpop.f32.mrb[46].mxu0  ;;  %v2914_v55 = vpop.f32.mrb[46].mxu1  ;;  %5772 = vmatpush1.bf16.msra.mxu0 %v9303_v31 }
 0x25e   :  { %v8218_v57 = vadd.f32 %v2688_v14, %v10162_v7  ;;  %v8250_v25 = vadd.f32 %v2914_v55, %v10164_v52  ;;  %v2690_v28 = vpop.f32.mrb[47].mxu0  ;;  %v2916_v11 = vpop.f32.mrb[47].mxu1  ;;  %5773 = vmatprep.subr.bf16.mxu0 %v9308_v23  ;;  %v3487_v43 = vmax.f32 %v8216_v47, 0.0  ;;  %v3489_v26 = vmax.f32 %v8248_v35, 0.0  ;;  %v9311_v23 = vld [vmem:[#allocation8 + $0x2b8] ss:$12 sps:$4 sm:$0xff]  }
 0x25f   :  { %v8219_v50 = vadd.f32 %v2690_v28, %v10167_v61  ;;  %v8251_v17 = vadd.f32 %v2916_v11, %v10169_v10  ;;  %v3488_v31 = vmax.f32 %v8217_v38, 0.0  ;;  %v3490_v37 = vmax.f32 %v8249_v56, 0.0  ;;  %v9316_v47 = vld [vmem:[#allocation8 + $0x2d4] ss:$12 sps:$4 sm:$0xff]  }
 0x260   :  { %v3499_v32 = vmax.f32 %v8218_v57, 0.0  ;;  %v3501_v60 = vmax.f32 %v8250_v25, 0.0  ;;  %5729 = vmatmul.mubr.bf16.gmra.mrb[120].mxu0 %v10111_v39  ;;  %6395 = vmatmul.mubr.bf16.gmra.mrb[120].mxu1 %v10111_v39 }
 0x261   :  { %v3500_v45 = vmax.f32 %v8219_v50, 0.0  ;;  %v3502_v36 = vmax.f32 %v8251_v17, 0.0  ;;  %5738 = vmatprep.mubr.bf16.mxu0 %v10134_v1  ;;  %5774 = vmatpush1.bf16.msra.mxu0 %v9306_v27 }
 0x262   :  { %v10243_v51 = vpack.c.bf16 %v3499_v32, %v3487_v43  ;;  %v10245_v14 = vpack.c.bf16 %v3501_v60, %v3489_v26  ;;  %6402 = vmatprep.mubr.bf16.mxu1 %v10134_v1  ;;  %5775 = vmatprep.subr.bf16.mxu0 %v9313_v15  ;;  %v9314_v15 = vld [vmem:[#allocation8 + $0x2d0] ss:$12 sps:$4 sm:$0xff]   ;;  %v9321_v60 = vld [vmem:[#allocation8 + $0x2ec] ss:$12 sps:$4 sm:$0xff]  }
 0x263   :  { %v10248_v35 = vpack.c.bf16 %v3500_v45, %v3488_v31  ;;  %v10250_v55 = vpack.c.bf16 %v3502_v36, %v3490_v37  ;;  %v2694_v39 = vpop.f32.mrb[48].mxu0  ;;  %v2920_v38 = vpop.f32.mrb[48].mxu1 }
 0x264   :  { %v8220_v56 = vadd.f32 %v2694_v39, %v10162_v7  ;;  %v8252_v57 = vadd.f32 %v2920_v38, %v10164_v52  ;;  %v2696_v27 = vpop.f32.mrb[49].mxu0  ;;  %v2922_v25 = vpop.f32.mrb[49].mxu1 }
 0x265   :  { %v8221_v28 = vadd.f32 %v2696_v27, %v10167_v61  ;;  %v8253_v11 = vadd.f32 %v2922_v25, %v10169_v10  ;;  %v2698_v50 = vpop.f32.mrb[50].mxu0  ;;  %v2924_v1 = vpop.f32.mrb[50].mxu1  ;;  %5776 = vmatpush1.bf16.msra.mxu0 %v9311_v23 }
 0x266   :  { %v8222_v17 = vadd.f32 %v2698_v50, %v10162_v7  ;;  %v8254_v43 = vadd.f32 %v2924_v1, %v10164_v52  ;;  %v2700_v26 = vpop.f32.mrb[51].mxu0  ;;  %v2926_v32 = vpop.f32.mrb[51].mxu1  ;;  %5777 = vmatprep.subr.bf16.mxu0 %v9316_v47  ;;  %v3511_v45 = vmax.f32 %v8220_v56, 0.0  ;;  %v3513_v36 = vmax.f32 %v8252_v57, 0.0  ;;  %v9319_v47 = vld [vmem:[#allocation8 + $0x2e8] ss:$12 sps:$4 sm:$0xff]  }
 0x267   :  { %v8223_v31 = vadd.f32 %v2700_v26, %v10167_v61  ;;  %v8255_v37 = vadd.f32 %v2926_v32, %v10169_v10  ;;  %v3512_v23 = vmax.f32 %v8221_v28, 0.0  ;;  %v3514_v27 = vmax.f32 %v8253_v11, 0.0  ;;  %v9324_v56 = vld [vmem:[#allocation8 + $0x304] ss:$12 sps:$4 sm:$0xff]  }
 0x268   :  { %v3523_v39 = vmax.f32 %v8222_v17, 0.0  ;;  %v3525_v38 = vmax.f32 %v8254_v43, 0.0  ;;  %5739 = vmatmul.mubr.bf16.gmra.mrb[124].mxu0 %v10129_v29  ;;  %6403 = vmatmul.mubr.bf16.gmra.mrb[124].mxu1 %v10129_v29 }
 0x269   :  { %v3524_v25 = vmax.f32 %v8223_v31, 0.0  ;;  %v3526_v50 = vmax.f32 %v8255_v37, 0.0  ;;  %5778 = vmatpush1.bf16.msra.mxu0 %v9314_v15  ;;  %5781 = vmatprep.mubr.bf16.mxu0 %v10016_v12 }
 0x26a   :  { %v10263_v1 = vpack.c.bf16 %v3523_v39, %v3511_v45  ;;  %v10265_v26 = vpack.c.bf16 %v3525_v38, %v3513_v36  ;;  %6443 = vmatprep.mubr.bf16.mxu1 %v10016_v12  ;;  %5779 = vmatprep.subr.bf16.mxu0 %v9321_v60  ;;  %v9322_v60 = vld [vmem:[#allocation8 + $0x300] ss:$12 sps:$4 sm:$0xff]  }
 0x26b   :  { %v10268_v57 = vpack.c.bf16 %v3524_v25, %v3512_v23  ;;  %v10270_v17 = vpack.c.bf16 %v3526_v50, %v3514_v27  ;;  %v2704_v29 = vpop.f32.mrb[52].mxu0  ;;  %v2930_v28 = vpop.f32.mrb[52].mxu1  ;;  %v9326_v27 = vld [vmem:[#allocation8 + $0x308] ss:$12 sps:$4 sm:$0xff]  }
 0x26c   :  { %10984 = vst [vmem:[#allocation19_spill] sm:$0xff] %v10265_v26  ;;  %v8224_v11 = vadd.f32 %v2704_v29, %v10162_v7  ;;  %v8256_v15 = vadd.f32 %v2930_v28, %v10164_v52  ;;  %v2706_v43 = vpop.f32.mrb[53].mxu0  ;;  %v2932_v32 = vpop.f32.mrb[53].mxu1  ;;  %v9329_v29 = vld [vmem:[#allocation8 + $0x31c] ss:$12 sps:$4 sm:$0xff]  }
 0x26d   :  { %10985 = vst [vmem:[#allocation20_spill] sm:$0xff] %v10270_v17  ;;  %v8225_v31 = vadd.f32 %v2706_v43, %v10167_v61  ;;  %v8257_v37 = vadd.f32 %v2932_v32, %v10169_v10  ;;  %v2708_v45 = vpop.f32.mrb[54].mxu0  ;;  %v2934_v12 = vpop.f32.mrb[54].mxu1  ;;  %5780 = vmatpush1.bf16.msra.mxu0 %v9319_v47  ;;  %v9333_v28 = vld [vmem:[#allocation8 + $0x3e0] ss:$12 sps:$4 sm:$0xff]  }
 0x26e   :  { %v8226_v36 = vadd.f32 %v2708_v45, %v10162_v7  ;;  %v8258_v39 = vadd.f32 %v2934_v12, %v10164_v52  ;;  %v2710_v38 = vpop.f32.mrb[55].mxu0  ;;  %v2936_v23 = vpop.f32.mrb[55].mxu1  ;;  %5862 = vmatprep.subr.bf16.mxu0 %v9324_v56  ;;  %v3535_v43 = vmax.f32 %v8224_v11, 0.0  ;;  %v3537_v32 = vmax.f32 %v8256_v15, 0.0  ;;  %v9327_v56 = vld [vmem:[#allocation8 + $0x318] ss:$12 sps:$4 sm:$0xff]  }
 0x26f   :  { %v8227_v25 = vadd.f32 %v2710_v38, %v10167_v61  ;;  %v8259_v50 = vadd.f32 %v2936_v23, %v10169_v10  ;;  %v3536_v47 = vmax.f32 %v8225_v31, 0.0  ;;  %v3538_v45 = vmax.f32 %v8257_v37, 0.0  ;;  %v9332_v11 = vld [vmem:[#allocation8 + $0x334] ss:$12 sps:$4 sm:$0xff]  }
 0x270   :  { %v3547_v20 = vmax.f32 %v8226_v36, 0.0  ;;  %v3549_v26 = vmax.f32 %v8258_v39, 0.0  ;;  %5782 = vmatmul.mubr.bf16.vlgmr.msra.gmra.mrb[96].mxu0 %v10012_v4  ;;  %6444 = vmatmul.mubr.bf16.vlgmr.msra.gmra.mrb[128].mxu1 %v10012_v4  ;;  %v9334_v15 = vld [vmem:[#allocation8 + $0x320] ss:$12 sps:$4 sm:$0xff]   ;;  %v9341_v39 = vld [vmem:[#allocation8 + $0x3f8] ss:$12 sps:$4 sm:$0xff]  }
 0x271   :  { %v3548_v12 = vmax.f32 %v8227_v25, 0.0  ;;  %v3550_v17 = vmax.f32 %v8259_v50, 0.0  ;;  %5791 = vmatprep.mubr.bf16.mxu0 %v10032_v48  ;;  %5863 = vmatpush1.bf16.msra.mxu0 %v9322_v60 }
 0x272   :  { %v10283_v38 = vpack.c.bf16 %v3547_v20, %v3535_v43  ;;  %v10285_v23 = vpack.c.bf16 %v3549_v26, %v3537_v32  ;;  %6451 = vmatprep.mubr.bf16.mxu1 %v10032_v48  ;;  %7885 = vmatpush3.bf16.msra.mxu1 %v9326_v27 }
 0x273   :  { %v10288_v36 = vpack.c.bf16 %v3548_v12, %v3536_v47  ;;  %v10290_v4 = vpack.c.bf16 %v3550_v17, %v3538_v45  ;;  %v2714_v31 = vpop.f32.mrb[56].mxu0  ;;  %v2940_v37 = vpop.f32.mrb[56].mxu1  ;;  %5864 = vmatprep.subr.bf16.mxu0 %v9329_v29  ;;  %7886 = vmatprep.subr.bf16.mxu1 %v9333_v28  ;;  %v9330_v17 = vld [vmem:[#allocation8 + $0x330] ss:$12 sps:$4 sm:$0xff]   ;;  %v9337_v45 = vld [vmem:[#allocation8 + $0x34c] ss:$12 sps:$4 sm:$0xff]  }
 0x274   :  { %10986 = vst [vmem:[#allocation21_spill] sm:$0xff] %v10285_v23  ;;  %v8228_v60 = vadd.f32 %v2714_v31, %v10162_v7  ;;  %v8260_v20 = vadd.f32 %v2940_v37, %v10164_v52  ;;  %v2716_v26 = vpop.f32.mrb[57].mxu0  ;;  %v2942_v25 = vpop.f32.mrb[57].mxu1  ;;  %v9342_v37 = vld [vmem:[#allocation8 + $0x338] ss:$12 sps:$4 sm:$0xff]  }
 0x275   :  { %10987 = vst [vmem:[#allocation22_spill] sm:$0xff] %v10290_v4  ;;  %v8229_v48 = vadd.f32 %v2716_v26, %v10167_v61  ;;  %v8261_v27 = vadd.f32 %v2942_v25, %v10169_v10  ;;  %v2718_v50 = vpop.f32.mrb[58].mxu0  ;;  %v2944_v43 = vpop.f32.mrb[58].mxu1  ;;  %5865 = vmatpush1.bf16.msra.mxu0 %v9327_v56 }
 0x276   :  { %v8230_v32 = vadd.f32 %v2718_v50, %v10162_v7  ;;  %v8262_v29 = vadd.f32 %v2944_v43, %v10164_v52  ;;  %v2720_v28 = vpop.f32.mrb[59].mxu0  ;;  %v2946_v47 = vpop.f32.mrb[59].mxu1  ;;  %5866 = vmatprep.subr.bf16.mxu0 %v9332_v11  ;;  %7887 = vmatpush3.bf16.msra.mxu1 %v9334_v15  ;;  %v3559_v26 = vmax.f32 %v8228_v60, 0.0  ;;  %v3561_v25 = vmax.f32 %v8260_v20, 0.0  ;;  %v9349_v50 = vld [vmem:[#allocation8 + $0x410] ss:$12 sps:$4 sm:$0xff]  }
 0x277   :  { %v8231_v12 = vadd.f32 %v2720_v28, %v10167_v61  ;;  %v8263_v31 = vadd.f32 %v2946_v47, %v10169_v10  ;;  %7888 = vmatprep.subr.bf16.mxu1 %v9341_v39  ;;  %v3560_v43 = vmax.f32 %v8229_v48, 0.0  ;;  %v3562_v4 = vmax.f32 %v8261_v27, 0.0  ;;  %v9335_v28 = vld [vmem:[#allocation8 + $0x348] ss:$12 sps:$4 sm:$0xff]   ;;  %v9340_v60 = vld [vmem:[#allocation8 + $0x364] ss:$12 sps:$4 sm:$0xff]  }
 0x278   :  { %v3571_v23 = vmax.f32 %v8230_v32, 0.0  ;;  %v3573_v56 = vmax.f32 %v8262_v29, 0.0  ;;  %5792 = vmatmul.mubr.bf16.gmra.mrb[100].mxu0 %v10028_v44  ;;  %6452 = vmatmul.mubr.bf16.gmra.mrb[132].mxu1 %v10028_v44  ;;  %v9350_v32 = vld [vmem:[#allocation8 + $0x350] ss:$12 sps:$4 sm:$0xff]  }
 0x279   :  { %v3572_v11 = vmax.f32 %v8231_v12, 0.0  ;;  %v3574_v15 = vmax.f32 %v8263_v31, 0.0  ;;  %5801 = vmatprep.mubr.bf16.mxu0 %v10048_v30  ;;  %5867 = vmatpush1.bf16.msra.mxu0 %v9330_v17 }
 0x27a   :  { %v10303_v47 = vpack.c.bf16 %v3571_v23, %v3559_v26  ;;  %v10305_v39 = vpack.c.bf16 %v3573_v56, %v3561_v25  ;;  %6459 = vmatprep.mubr.bf16.mxu1 %v10048_v30  ;;  %5868 = vmatprep.subr.bf16.mxu0 %v9337_v45 }
 0x27b   :  { %v10308_v20 = vpack.c.bf16 %v3572_v11, %v3560_v43  ;;  %v10310_v44 = vpack.c.bf16 %v3574_v15, %v3562_v4  ;;  %v2724_v48 = vpop.f32.mrb[60].mxu0  ;;  %v2950_v27 = vpop.f32.mrb[60].mxu1  ;;  %7889 = vmatpush3.bf16.msra.mxu1 %v9342_v37  ;;  %v9338_v4 = vld [vmem:[#allocation8 + $0x360] ss:$12 sps:$4 sm:$0xff]   ;;  %v9345_v11 = vld [vmem:[#allocation8 + $0x37c] ss:$12 sps:$4 sm:$0xff]  }
 0x27c   :  { %10988 = vst [vmem:[#allocation23_spill] sm:$0xff] %v10305_v39  ;;  %v8232_v29 = vadd.f32 %v2724_v48, %v10162_v7  ;;  %v8264_v17 = vadd.f32 %v2950_v27, %v10164_v52  ;;  %v2726_v23 = vpop.f32.mrb[61].mxu0  ;;  %v2952_v12 = vpop.f32.mrb[61].mxu1  ;;  %7890 = vmatprep.subr.bf16.mxu1 %v9349_v50  ;;  %v9343_v48 = vld [vmem:[#allocation8 + $0x378] ss:$12 sps:$4 sm:$0xff]  }
 0x27d   :  { %v8233_v31 = vadd.f32 %v2726_v23, %v10167_v61  ;;  %v8265_v30 = vadd.f32 %v2952_v12, %v10169_v10  ;;  %v2728_v45 = vpop.f32.mrb[62].mxu0  ;;  %v2954_v26 = vpop.f32.mrb[62].mxu1  ;;  %5869 = vmatpush1.bf16.msra.mxu0 %v9335_v28  ;;  %v9357_v27 = vld [vmem:[#allocation8 + $0x428] ss:$12 sps:$4 sm:$0xff]  }
 0x27e   :  { %v8234_v25 = vadd.f32 %v2728_v45, %v10162_v7  ;;  %v8266_v37 = vadd.f32 %v2954_v26, %v10164_v52  ;;  %v2730_v56 = vpop.f32.mrb[63].mxu0  ;;  %v2956_v43 = vpop.f32.mrb[63].mxu1  ;;  %5870 = vmatprep.subr.bf16.mxu0 %v9340_v60  ;;  %v3583_v23 = vmax.f32 %v8232_v29, 0.0  ;;  %v3585_v12 = vmax.f32 %v8264_v17, 0.0  ;;  %v9358_v7 = vld [vmem:[#allocation8 + $0x368] ss:$12 sps:$4 sm:$0xff]  }
 0x27f   :  { %v8235_v15 = vadd.f32 %v2730_v56, %v10167_v61  ;;  %v8267_v50 = vadd.f32 %v2956_v43, %v10169_v10  ;;  %7891 = vmatpush3.bf16.msra.mxu1 %v9350_v32  ;;  %v3584_v52 = vmax.f32 %v8233_v31, 0.0  ;;  %v3586_v45 = vmax.f32 %v8265_v30, 0.0  ;;  %v9365_v61 = vld [vmem:[#allocation8 + $0x440] ss:$12 sps:$4 sm:$0xff]   ;;  %v9346_v31 = vld [vmem:[#allocation8 + $0x390] ss:$12 sps:$4 sm:$0xff]  }
 0x280   :  { %v3595_v39 = vmax.f32 %v8234_v25, 0.0  ;;  %v3597_v28 = vmax.f32 %v8266_v37, 0.0  ;;  %5802 = vmatmul.mubr.bf16.gmra.mrb[104].mxu0 %v10044_v22  ;;  %6460 = vmatmul.mubr.bf16.gmra.mrb[136].mxu1 %v10044_v22  ;;  %v9348_v29 = vld [vmem:[#allocation8 + $0x394] ss:$12 sps:$4 sm:$0xff]   ;;  %v9353_v30 = vld [vmem:[#allocation8 + $0x3ac] ss:$12 sps:$4 sm:$0xff]  }
 0x281   :  { %v3596_v60 = vmax.f32 %v8235_v15, 0.0  ;;  %v3598_v26 = vmax.f32 %v8267_v50, 0.0  ;;  %5811 = vmatprep.mubr.bf16.mxu0 %v10064_v63  ;;  %5871 = vmatpush1.bf16.msra.mxu0 %v9338_v4  ;;  %v9366_v4 = vld [vmem:[#allocation8 + $0x380] ss:$12 sps:$4 sm:$0xff]   ;;  %v9356_v25 = vld [vmem:[#allocation8 + $0x3c4] ss:$12 sps:$4 sm:$0xff]  }
 0x282   :  { %v10323_v10 = vpack.c.bf16 %v3595_v39, %v3583_v23  ;;  %v10325_v32 = vpack.c.bf16 %v3597_v28, %v3585_v12  ;;  %6467 = vmatprep.mubr.bf16.mxu1 %v10064_v63  ;;  %5872 = vmatprep.subr.bf16.mxu0 %v9345_v11  ;;  %v9373_v39 = vld [vmem:[#allocation8 + $0x458] ss:$12 sps:$4 sm:$0xff]   ;;  %v9351_v63 = vld [vmem:[#allocation8 + $0x3a8] ss:$12 sps:$4 sm:$0xff]   ;;  %v9354_v56 = vld [vmem:[#allocation8 + $0x3c0] ss:$12 sps:$4 sm:$0xff]  }
 0x283   :  { %v10328_v17 = vpack.c.bf16 %v3596_v60, %v3584_v52  ;;  %v10330_v22 = vpack.c.bf16 %v3598_v26, %v3586_v45  ;;  %7892 = vmatprep.subr.bf16.mxu1 %v9357_v27  ;;  %v9374_v37 = vld [vmem:[#allocation8 + $0x398] ss:$12 sps:$4 sm:$0xff]   ;;  %v9361_v43 = vld [vmem:[#allocation8 + $0x3dc] ss:$12 sps:$4 sm:$0xff]   ;;  %v9364_v50 = vld [vmem:[#allocation8 + $0x3f4] ss:$12 sps:$4 sm:$0xff]  }
 0x284   :  { %7893 = vmatpush3.bf16.msra.mxu1 %v9358_v7  ;;  %v9381_v11 = vld [vmem:[#allocation8 + $0x470] ss:$12 sps:$4 sm:$0xff]   ;;  %v9389_v15 = vld [vmem:[#allocation8 + $0x548] ss:$12 sps:$4 sm:$0xff]   ;;  %v9369_v27 = vld [vmem:[#allocation8 + $0x40c] ss:$12 sps:$4 sm:$0xff]  }
 0x285   :  { %5873 = vmatpush1.bf16.msra.mxu0 %v9343_v48  ;;  %7894 = vmatprep.subr.bf16.mxu1 %v9365_v61  ;;  %v9362_v48 = vld [vmem:[#allocation8 + $0x3f0] ss:$12 sps:$4 sm:$0xff]   ;;  %v9370_v23 = vld [vmem:[#allocation8 + $0x420] ss:$12 sps:$4 sm:$0xff]   ;;  %v9390_v45 = vld [vmem:[#allocation8 + $0x488] ss:$12 sps:$4 sm:$0xff]  }
 0x286   :  { %5874 = vmatprep.subr.bf16.mxu0 %v9348_v29  ;;  %v9377_v12 = vld [vmem:[#allocation8 + $0x43c] ss:$12 sps:$4 sm:$0xff]   ;;  %v9380_v28 = vld [vmem:[#allocation8 + $0x454] ss:$12 sps:$4 sm:$0xff]   ;;  %v9385_v7 = vld [vmem:[#allocation8 + $0x46c] ss:$12 sps:$4 sm:$0xff]  }
 0x287   :  { %v9388_v52 = vld [vmem:[#allocation8 + $0x484] ss:$12 sps:$4 sm:$0xff]   ;;  %v9393_v60 = vld [vmem:[#allocation8 + $0x49c] ss:$12 sps:$4 sm:$0xff]   ;;  %v9397_v26 = vld [vmem:[#allocation8 + $0x560] ss:$12 sps:$4 sm:$0xff]  }
 0x288   :  { %5812 = vmatmul.mubr.bf16.gmra.mrb[108].mxu0 %v10060_v59  ;;  %6468 = vmatmul.mubr.bf16.gmra.mrb[140].mxu1 %v10060_v59  ;;  %v9382_v59 = vld [vmem:[#allocation8 + $0x3b0] ss:$12 sps:$4 sm:$0xff]   ;;  %v9398_v61 = vld [vmem:[#allocation8 + $0x4a0] ss:$12 sps:$4 sm:$0xff]   ;;  %v9405_v29 = vld [vmem:[#allocation8 + $0x578] ss:$12 sps:$4 sm:$0xff]  }
 0x289   :  { %5821 = vmatprep.mubr.bf16.mxu0 %v10082_v49  ;;  %5875 = vmatpush1.bf16.msra.mxu0 %v9346_v31  ;;  %v9394_v31 = vld [vmem:[#allocation8 + $0x4b0] ss:$12 sps:$4 sm:$0xff]  }
 0x28a   :  { %6475 = vmatprep.mubr.bf16.mxu1 %v10082_v49  ;;  %5876 = vmatprep.subr.bf16.mxu0 %v9353_v30  ;;  %v9359_v49 = vld [vmem:[#allocation8 + $0x3d8] ss:$12 sps:$4 sm:$0xff]  }
 0x28b   :  { %7895 = vmatpush3.bf16.msra.mxu1 %v9366_v4  ;;  %v9401_v30 = vld [vmem:[#allocation8 + $0x4cc] ss:$12 sps:$4 sm:$0xff]  }
 0x28c   :  { %7896 = vmatprep.subr.bf16.mxu1 %v9373_v39  ;;  %v9406_v4 = vld [vmem:[#allocation8 + $0x4b8] ss:$12 sps:$4 sm:$0xff]  }
 0x28d   :  { %5877 = vmatpush1.bf16.msra.mxu0 %v9351_v63  ;;  %v9404_v39 = vld [vmem:[#allocation8 + $0x4e4] ss:$12 sps:$4 sm:$0xff]  }
 0x28e   :  { %5878 = vmatprep.subr.bf16.mxu0 %v9356_v25  ;;  %v9414_v63 = vld [vmem:[#allocation8 + $0x4d0] ss:$12 sps:$4 sm:$0xff]   ;;  %v9402_v25 = vld [vmem:[#allocation8 + $0x4e0] ss:$12 sps:$4 sm:$0xff]  }
 0x28f   :  { %7897 = vmatpush3.bf16.msra.mxu1 %v9374_v37  ;;  %v424_v37 = vld [vmem:[#allocation7 + $0x8] sm:$0xf] }
 0x290   :  { %5822 = vmatmul.mubr.bf16.gmra.mrb[112].mxu0 %v10078_v41  ;;  %6476 = vmatmul.mubr.bf16.gmra.mrb[144].mxu1 %v10078_v41  ;;  %v9367_v41 = vld [vmem:[#allocation8 + $0x408] ss:$12 sps:$4 sm:$0xff]  }
 0x291   :  { %5831 = vmatprep.mubr.bf16.mxu0 %v10100_v53  ;;  %5879 = vmatpush1.bf16.msra.mxu0 %v9354_v56  ;;  %v9409_v56 = vld [vmem:[#allocation8 + $0x4fc] ss:$12 sps:$4 sm:$0xff]  }
 0x292   :  { %6483 = vmatprep.mubr.bf16.mxu1 %v10100_v53  ;;  %5880 = vmatprep.subr.bf16.mxu0 %v9361_v43  ;;  %v9372_v53 = vld [vmem:[#allocation8 + $0x424] ss:$12 sps:$4 sm:$0xff]   ;;  %v9421_v43 = vld [vmem:[#allocation8 + $0x5a8] ss:$12 sps:$4 sm:$0xff]  }
 0x293   :  { %7898 = vmatprep.subr.bf16.mxu1 %v9381_v11  ;;  %v9422_v11 = vld [vmem:[#allocation8 + $0x4e8] ss:$12 sps:$4 sm:$0xff]  }
 0x294   :  { %7899 = vmatpush3.bf16.msra.mxu1 %v9382_v59  ;;  %v10370_v59 = vrot.slane %v424_v37, %v9986_v6 }
 0x295   :  { %5881 = vmatpush1.bf16.msra.mxu0 %v9359_v49  ;;  %7948 = vmatprep.subr.bf16.mxu1 %v9389_v15  ;;  %v10989_v49 = vsub.s32 3, %v9977_v8 }
 0x296   :  { %5882 = vmatprep.subr.bf16.mxu0 %v9364_v50  ;;  %v9407_v50 = vld [vmem:[#allocation8 + $0x4f8] ss:$12 sps:$4 sm:$0xff]  }
 0x297   :  { %v10374_v15 = vrot.slane %v424_v37, %v10989_v49 }
 0x298   :  { %5832 = vmatmul.mubr.bf16.gmra.mrb[116].mxu0 %v10095_v46  ;;  %6484 = vmatmul.mubr.bf16.gmra.mrb[148].mxu1 %v10095_v46  ;;  %v9375_v46 = vld [vmem:[#allocation8 + $0x438] ss:$12 sps:$4 sm:$0xff]  }
 0x299   :  { %5841 = vmatprep.mubr.bf16.mxu0 %v10118_v62  ;;  %5883 = vmatpush1.bf16.msra.mxu0 %v9362_v48  ;;  %v9429_v48 = vld [vmem:[#allocation8 + $0x5c0] ss:$12 sps:$4 sm:$0xff]  }
 0x29a   :  { %6491 = vmatprep.mubr.bf16.mxu1 %v10118_v62  ;;  %5884 = vmatprep.subr.bf16.mxu0 %v9369_v27  ;;  %v9378_v62 = vld [vmem:[#allocation8 + $0x450] ss:$12 sps:$4 sm:$0xff]  }
 0x29d   :  { %5885 = vmatpush1.bf16.msra.mxu0 %v9367_v41 }
 0x29e   :  { %5886 = vmatprep.subr.bf16.mxu0 %v9372_v53 }
 0x2a0   :  { %5842 = vmatmul.mubr.bf16.gmra.mrb[120].mxu0 %v10114_v54  ;;  %6492 = vmatmul.mubr.bf16.gmra.mrb[152].mxu1 %v10114_v54  ;;  %v9383_v54 = vld [vmem:[#allocation8 + $0x468] ss:$12 sps:$4 sm:$0xff]  }
 0x2a1   :  { %5851 = vmatprep.mubr.bf16.mxu0 %v10136_v9  ;;  %5887 = vmatpush1.bf16.msra.mxu0 %v9370_v23 }
 0x2a2   :  { %6499 = vmatprep.mubr.bf16.mxu1 %v10136_v9  ;;  %5888 = vmatprep.subr.bf16.mxu0 %v9377_v12  ;;  %v9386_v9 = vld [vmem:[#allocation8 + $0x480] ss:$12 sps:$4 sm:$0xff]  }
 0x2a5   :  { %5889 = vmatpush1.bf16.msra.mxu0 %v9375_v46 }
 0x2a6   :  { %5890 = vmatprep.subr.bf16.mxu0 %v9380_v28 }
 0x2a8   :  { %5852 = vmatmul.mubr.bf16.gmra.mrb[124].mxu0 %v10132_v0  ;;  %6500 = vmatmul.mubr.bf16.gmra.mrb[156].mxu1 %v10132_v0  ;;  %v9391_v0 = vld [vmem:[#allocation8 + $0x498] ss:$12 sps:$4 sm:$0xff]  }
 0x2a9   :  { %5891 = vmatpush1.bf16.msra.mxu0 %v9378_v62  ;;  %5894 = vmatprep.mubr.bf16.mxu0 %v10188_v18 }
 0x2aa   :  { %6540 = vmatprep.mubr.bf16.mxu1 %v10188_v18  ;;  %5892 = vmatprep.subr.bf16.mxu0 %v9385_v7  ;;  %v9396_v18 = vld [vmem:[#allocation8 + $0x4b4] ss:$12 sps:$4 sm:$0xff]  }
 0x2ad   :  { %5893 = vmatpush1.bf16.msra.mxu0 %v9383_v54 }
 0x2ae   :  { %5975 = vmatprep.subr.bf16.mxu0 %v9388_v52 }
 0x2b0   :  { %5895 = vmatmul.mubr.bf16.vlgmr.msra.gmra.mrb[96].mxu0 %v10183_v16  ;;  %6541 = vmatmul.mubr.bf16.vlgmr.msra.gmra.mrb[160].mxu1 %v10183_v16  ;;  %v9413_v16 = vld [vmem:[#allocation8 + $0x590] ss:$12 sps:$4 sm:$0xff]  }
 0x2b1   :  { %5904 = vmatprep.mubr.bf16.mxu0 %v10208_v5  ;;  %5976 = vmatpush1.bf16.msra.mxu0 %v9386_v9 }
 0x2b2   :  { %6548 = vmatprep.mubr.bf16.mxu1 %v10208_v5  ;;  %7949 = vmatpush3.bf16.msra.mxu1 %v9390_v45  ;;  %v9399_v5 = vld [vmem:[#allocation8 + $0x4c8] ss:$12 sps:$4 sm:$0xff]  }
 0x2b3   :  { %5977 = vmatprep.subr.bf16.mxu0 %v9393_v60  ;;  %7950 = vmatprep.subr.bf16.mxu1 %v9397_v26  ;;  %v9417_v60 = vld [vmem:[#allocation8 + $0x52c] ss:$12 sps:$4 sm:$0xff]  }
 0x2b5   :  { %5978 = vmatpush1.bf16.msra.mxu0 %v9391_v0 }
 0x2b6   :  { %5979 = vmatprep.subr.bf16.mxu0 %v9396_v18  ;;  %7951 = vmatpush3.bf16.msra.mxu1 %v9398_v61  ;;  %v9430_v18 = vld [vmem:[#allocation8 + $0x500] ss:$12 sps:$4 sm:$0xff]  }
 0x2b7   :  { %7952 = vmatprep.subr.bf16.mxu1 %v9405_v29 }
 0x2b8   :  { %5905 = vmatmul.mubr.bf16.gmra.mrb[100].mxu0 %v10203_v33  ;;  %6549 = vmatmul.mubr.bf16.gmra.mrb[164].mxu1 %v10203_v33  ;;  %v10363_v33 = vrot.slane %v424_v37, %v9980_v3 }
 0x2b9   :  { %5914 = vmatprep.mubr.bf16.mxu0 %v10228_v24  ;;  %5980 = vmatpush1.bf16.msra.mxu0 %v9394_v31 }
 0x2ba   :  { %6556 = vmatprep.mubr.bf16.mxu1 %v10228_v24  ;;  %5981 = vmatprep.subr.bf16.mxu0 %v9401_v30  ;;  %v10366_v24 = vrot.slane %v424_v37, %v9983_v19 }
 0x2bb   :  { %7953 = vmatpush3.bf16.msra.mxu1 %v9406_v4  ;;  %v9437_v4 = vld [vmem:[#allocation8 + $0x5d8] ss:$12 sps:$4 sm:$0xff]  }
 0x2bc   :  { %7954 = vmatprep.subr.bf16.mxu1 %v9413_v16 }
 0x2bd   :  { %5982 = vmatpush1.bf16.msra.mxu0 %v9399_v5 }
 0x2be   :  { %5983 = vmatprep.subr.bf16.mxu0 %v9404_v39 }
 0x2bf   :  { %7955 = vmatpush3.bf16.msra.mxu1 %v9414_v63 }
 0x2c0   :  { %5915 = vmatmul.mubr.bf16.gmra.mrb[104].mxu0 %v10223_v42  ;;  %6557 = vmatmul.mubr.bf16.gmra.mrb[168].mxu1 %v10223_v42  ;;  %v9412_v42 = vld [vmem:[#allocation8 + $0x514] ss:$12 sps:$4 sm:$0xff]  }
 0x2c1   :  { %5924 = vmatprep.mubr.bf16.mxu0 %v10248_v35  ;;  %5984 = vmatpush1.bf16.msra.mxu0 %v9402_v25  ;;  %v9415_v25 = vld [vmem:[#allocation8 + $0x528] ss:$12 sps:$4 sm:$0xff]  }
 0x2c2   :  { %6564 = vmatprep.mubr.bf16.mxu1 %v10248_v35  ;;  %5985 = vmatprep.subr.bf16.mxu0 %v9409_v56  ;;  %v9410_v35 = vld [vmem:[#allocation8 + $0x510] ss:$12 sps:$4 sm:$0xff]  }
 0x2c3   :  { %v3106_v27 = vpop.f32.mrb[64].mxu0  ;;  %v3332_v41 = vpop.f32.mrb[64].mxu1  ;;  %7956 = vmatprep.subr.bf16.mxu1 %v9421_v43  ;;  %v9420_v43 = vld [vmem:[#allocation8 + $0x544] ss:$12 sps:$4 sm:$0xff]  }
 0x2c4   :  { %v8268_v53 = vadd.f32 %v3106_v27, %v10363_v33  ;;  %v8300_v23 = vadd.f32 %v3332_v41, %v10366_v24  ;;  %v3108_v12 = vpop.f32.mrb[65].mxu0  ;;  %v3334_v46 = vpop.f32.mrb[65].mxu1  ;;  %7957 = vmatpush3.bf16.msra.mxu1 %v9422_v11 }
 0x2c5   :  { %v8269_v8 = vadd.f32 %v3108_v12, %v10370_v59  ;;  %v8301_v28 = vadd.f32 %v3334_v46, %v10374_v15  ;;  %v3110_v62 = vpop.f32.mrb[66].mxu0  ;;  %v3336_v7 = vpop.f32.mrb[66].mxu1  ;;  %5986 = vmatpush1.bf16.msra.mxu0 %v9407_v50  ;;  %7958 = vmatprep.subr.bf16.mxu1 %v9429_v48  ;;  %v9438_v48 = vld [vmem:[#allocation8 + $0x518] ss:$12 sps:$4 sm:$0xff]  }
 0x2c6   :  { %v8270_v54 = vadd.f32 %v3110_v62, %v10363_v33  ;;  %v8302_v52 = vadd.f32 %v3336_v7, %v10366_v24  ;;  %v3112_v9 = vpop.f32.mrb[67].mxu0  ;;  %v3338_v45 = vpop.f32.mrb[67].mxu1  ;;  %5987 = vmatprep.subr.bf16.mxu0 %v9412_v42  ;;  %v3419_v61 = vmax.f32 %v8268_v53, 0.0  ;;  %v3421_v29 = vmax.f32 %v8300_v23, 0.0 }
 0x2c7   :  { %v8271_v26 = vadd.f32 %v3112_v9, %v10370_v59  ;;  %v8303_v0 = vadd.f32 %v3338_v45, %v10374_v15  ;;  %v3420_v16 = vmax.f32 %v8269_v8, 0.0  ;;  %v3422_v5 = vmax.f32 %v8301_v28, 0.0  ;;  %v9418_v8 = vld [vmem:[#allocation8 + $0x540] ss:$12 sps:$4 sm:$0xff]   ;;  %v9423_v45 = vld [vmem:[#allocation8 + $0x558] ss:$12 sps:$4 sm:$0xff]  }
 0x2c8   :  { %v3431_v31 = vmax.f32 %v8270_v54, 0.0  ;;  %v3433_v30 = vmax.f32 %v8302_v52, 0.0  ;;  %5925 = vmatmul.mubr.bf16.gmra.mrb[108].mxu0 %v10243_v51  ;;  %6565 = vmatmul.mubr.bf16.gmra.mrb[172].mxu1 %v10243_v51  ;;  %v9425_v54 = vld [vmem:[#allocation8 + $0x55c] ss:$12 sps:$4 sm:$0xff]  }
 0x2c9   :  { %v3432_v39 = vmax.f32 %v8271_v26, 0.0  ;;  %v3434_v63 = vmax.f32 %v8303_v0, 0.0  ;;  %5934 = vmatprep.mubr.bf16.mxu0 %v10268_v57  ;;  %5988 = vmatpush1.bf16.msra.mxu0 %v9410_v35 }
 0x2ca   :  { %v10388_v37 = vpack.c.bf16 %v3431_v31, %v3419_v61  ;;  %v10390_v56 = vpack.c.bf16 %v3433_v30, %v3421_v29  ;;  %6572 = vmatprep.mubr.bf16.mxu1 %v10268_v57  ;;  %5989 = vmatprep.subr.bf16.mxu0 %v9417_v60  ;;  %v9445_v60 = vld [vmem:[#allocation8 + $0x5f0] ss:$12 sps:$4 sm:$0xff]  }
 0x2cb   :  { %v10393_v11 = vpack.c.bf16 %v3432_v39, %v3420_v16  ;;  %v10395_v51 = vpack.c.bf16 %v3434_v63, %v3422_v5  ;;  %v3116_v49 = vpop.f32.mrb[68].mxu0  ;;  %v3342_v50 = vpop.f32.mrb[68].mxu1  ;;  %7959 = vmatpush3.bf16.msra.mxu1 %v9430_v18  ;;  %v9446_v29 = vld [vmem:[#allocation8 + $0x530] ss:$12 sps:$4 sm:$0xff]   ;;  %v9453_v5 = vld [vmem:[#allocation8 + $0x6c8] ss:$12 sps:$4 sm:$0xff]  }
 0x2cc   :  { %v8272_v42 = vadd.f32 %v3116_v49, %v10363_v33  ;;  %v8304_v27 = vadd.f32 %v3342_v50, %v10366_v24  ;;  %v3118_v41 = vpop.f32.mrb[69].mxu0  ;;  %v3344_v53 = vpop.f32.mrb[69].mxu1  ;;  %7960 = vmatprep.subr.bf16.mxu1 %v9437_v4 }
 0x2cd   :  { %v8273_v23 = vadd.f32 %v3118_v41, %v10370_v59  ;;  %v8305_v57 = vadd.f32 %v3344_v53, %v10374_v15  ;;  %v3120_v12 = vpop.f32.mrb[70].mxu0  ;;  %v3346_v46 = vpop.f32.mrb[70].mxu1  ;;  %5990 = vmatpush1.bf16.msra.mxu0 %v9415_v25  ;;  %v9428_v25 = vld [vmem:[#allocation8 + $0x574] ss:$12 sps:$4 sm:$0xff]  }
 0x2ce   :  { %v8274_v28 = vadd.f32 %v3120_v12, %v10363_v33  ;;  %v8306_v62 = vadd.f32 %v3346_v46, %v10366_v24  ;;  %v3122_v7 = vpop.f32.mrb[71].mxu0  ;;  %v3348_v35 = vpop.f32.mrb[71].mxu1  ;;  %5991 = vmatprep.subr.bf16.mxu0 %v9420_v43  ;;  %v3443_v26 = vmax.f32 %v8272_v42, 0.0  ;;  %v3445_v0 = vmax.f32 %v8304_v27, 0.0  ;;  %v9426_v12 = vld [vmem:[#allocation8 + $0x570] ss:$12 sps:$4 sm:$0xff]  }
 0x2cf   :  { %v8275_v52 = vadd.f32 %v3122_v7, %v10370_v59  ;;  %v8307_v9 = vadd.f32 %v3348_v35, %v10374_v15  ;;  %7961 = vmatpush3.bf16.msra.mxu1 %v9438_v48  ;;  %v3444_v31 = vmax.f32 %v8273_v23, 0.0  ;;  %v3446_v30 = vmax.f32 %v8305_v57, 0.0  ;;  %v9433_v7 = vld [vmem:[#allocation8 + $0x58c] ss:$12 sps:$4 sm:$0xff]  }
 0x2d0   :  { %v3455_v18 = vmax.f32 %v8274_v28, 0.0  ;;  %v3457_v61 = vmax.f32 %v8306_v62, 0.0  ;;  %5935 = vmatmul.mubr.bf16.gmra.mrb[112].mxu0 %v10263_v1  ;;  %6573 = vmatmul.mubr.bf16.gmra.mrb[176].mxu1 %v10263_v1 }
 0x2d1   :  { %v3456_v4 = vmax.f32 %v8275_v52, 0.0  ;;  %v3458_v16 = vmax.f32 %v8307_v9, 0.0  ;;  %5944 = vmatprep.mubr.bf16.mxu0 %v10288_v36  ;;  %5992 = vmatpush1.bf16.msra.mxu0 %v9418_v8 }
 0x2d2   :  { %v10408_v39 = vpack.c.bf16 %v3455_v18, %v3443_v26  ;;  %v10410_v63 = vpack.c.bf16 %v3457_v61, %v3445_v0  ;;  %6580 = vmatprep.mubr.bf16.mxu1 %v10288_v36  ;;  %5993 = vmatprep.subr.bf16.mxu0 %v9425_v54 }
 0x2d3   :  { %v10413_v43 = vpack.c.bf16 %v3456_v4, %v3444_v31  ;;  %v10415_v1 = vpack.c.bf16 %v3458_v16, %v3446_v30  ;;  %v3126_v49 = vpop.f32.mrb[72].mxu0  ;;  %v3352_v50 = vpop.f32.mrb[72].mxu1  ;;  %7962 = vmatprep.subr.bf16.mxu1 %v9445_v60  ;;  %v9436_v4 = vld [vmem:[#allocation8 + $0x5a4] ss:$12 sps:$4 sm:$0xff]  }
 0x2d4   :  { %v8276_v48 = vadd.f32 %v3126_v49, %v10363_v33  ;;  %v8308_v42 = vadd.f32 %v3352_v50, %v10366_v24  ;;  %v3128_v27 = vpop.f32.mrb[73].mxu0  ;;  %v3354_v41 = vpop.f32.mrb[73].mxu1  ;;  %7963 = vmatpush3.bf16.msra.mxu1 %v9446_v29  ;;  %v9431_v29 = vld [vmem:[#allocation8 + $0x588] ss:$12 sps:$4 sm:$0xff]  }
 0x2d5   :  { %v8277_v53 = vadd.f32 %v3128_v27, %v10370_v59  ;;  %v8309_v36 = vadd.f32 %v3354_v41, %v10374_v15  ;;  %v3130_v23 = vpop.f32.mrb[74].mxu0  ;;  %v3356_v57 = vpop.f32.mrb[74].mxu1  ;;  %5994 = vmatpush1.bf16.msra.mxu0 %v9423_v45  ;;  %8012 = vmatprep.subr.bf16.mxu1 %v9453_v5 }
 0x2d6   :  { %v8278_v46 = vadd.f32 %v3130_v23, %v10363_v33  ;;  %v8310_v8 = vadd.f32 %v3356_v57, %v10366_v24  ;;  %v3132_v28 = vpop.f32.mrb[75].mxu0  ;;  %v3358_v62 = vpop.f32.mrb[75].mxu1  ;;  %5995 = vmatprep.subr.bf16.mxu0 %v9428_v25  ;;  %v3467_v52 = vmax.f32 %v8276_v48, 0.0  ;;  %v3469_v9 = vmax.f32 %v8308_v42, 0.0 }
 0x2d7   :  { %v8279_v35 = vadd.f32 %v3132_v28, %v10370_v59  ;;  %v8311_v54 = vadd.f32 %v3358_v62, %v10374_v15  ;;  %v3468_v45 = vmax.f32 %v8277_v53, 0.0  ;;  %v3470_v0 = vmax.f32 %v8309_v36, 0.0  ;;  %v9434_v36 = vld [vmem:[#allocation8 + $0x5a0] ss:$12 sps:$4 sm:$0xff]  }
 0x2d8   :  { %v3479_v60 = vmax.f32 %v8278_v46, 0.0  ;;  %v3481_v26 = vmax.f32 %v8310_v8, 0.0  ;;  %5945 = vmatmul.mubr.bf16.gmra.mrb[116].mxu0 %v10283_v38  ;;  %6581 = vmatmul.mubr.bf16.gmra.mrb[180].mxu1 %v10283_v38  ;;  %v9441_v8 = vld [vmem:[#allocation8 + $0x5bc] ss:$12 sps:$4 sm:$0xff]  }
 0x2d9   :  { %v3480_v18 = vmax.f32 %v8279_v35, 0.0  ;;  %v3482_v61 = vmax.f32 %v8311_v54, 0.0  ;;  %5954 = vmatprep.mubr.bf16.mxu0 %v10308_v20  ;;  %5996 = vmatpush1.bf16.msra.mxu0 %v9426_v12 }
 0x2da   :  { %v10428_v31 = vpack.c.bf16 %v3479_v60, %v3467_v52  ;;  %v10430_v30 = vpack.c.bf16 %v3481_v26, %v3469_v9  ;;  %6588 = vmatprep.mubr.bf16.mxu1 %v10308_v20  ;;  %5997 = vmatprep.subr.bf16.mxu0 %v9433_v7 }
 0x2db   :  { %v10433_v16 = vpack.c.bf16 %v3480_v18, %v3468_v45  ;;  %v10435_v5 = vpack.c.bf16 %v3482_v61, %v3470_v0  ;;  %v3136_v38 = vpop.f32.mrb[76].mxu0  ;;  %v3362_v25 = vpop.f32.mrb[76].mxu1  ;;  %v9439_v0 = vld [vmem:[#allocation8 + $0x5b8] ss:$12 sps:$4 sm:$0xff]  }
 0x2dc   :  { %v8280_v49 = vadd.f32 %v3136_v38, %v10363_v33  ;;  %v8312_v50 = vadd.f32 %v3362_v25, %v10366_v24  ;;  %v3138_v48 = vpop.f32.mrb[77].mxu0  ;;  %v3364_v42 = vpop.f32.mrb[77].mxu1 }
 0x2dd   :  { %v8281_v27 = vadd.f32 %v3138_v48, %v10370_v59  ;;  %v8313_v41 = vadd.f32 %v3364_v42, %v10374_v15  ;;  %v3140_v53 = vpop.f32.mrb[78].mxu0  ;;  %v3366_v20 = vpop.f32.mrb[78].mxu1  ;;  %5998 = vmatpush1.bf16.msra.mxu0 %v9431_v29  ;;  %v9444_v29 = vld [vmem:[#allocation8 + $0x5d4] ss:$12 sps:$4 sm:$0xff]  }
 0x2de   :  { %v8282_v23 = vadd.f32 %v3140_v53, %v10363_v33  ;;  %v8314_v57 = vadd.f32 %v3366_v20, %v10366_v24  ;;  %v3142_v12 = vpop.f32.mrb[79].mxu0  ;;  %v3368_v46 = vpop.f32.mrb[79].mxu1  ;;  %5999 = vmatprep.subr.bf16.mxu0 %v9436_v4  ;;  %v3491_v7 = vmax.f32 %v8280_v49, 0.0  ;;  %v3493_v35 = vmax.f32 %v8312_v50, 0.0  ;;  %v9442_v20 = vld [vmem:[#allocation8 + $0x5d0] ss:$12 sps:$4 sm:$0xff]  }
 0x2df   :  { %v8283_v28 = vadd.f32 %v3142_v12, %v10370_v59  ;;  %v8315_v62 = vadd.f32 %v3368_v46, %v10374_v15  ;;  %v3492_v9 = vmax.f32 %v8281_v27, 0.0  ;;  %v3494_v60 = vmax.f32 %v8313_v41, 0.0  ;;  %v9449_v46 = vld [vmem:[#allocation8 + $0x5ec] ss:$12 sps:$4 sm:$0xff]  }
 0x2e0   :  { %v3503_v54 = vmax.f32 %v8282_v23, 0.0  ;;  %v3505_v52 = vmax.f32 %v8314_v57, 0.0  ;;  %5955 = vmatmul.mubr.bf16.gmra.mrb[120].mxu0 %v10303_v47  ;;  %6589 = vmatmul.mubr.bf16.gmra.mrb[184].mxu1 %v10303_v47 }
 0x2e1   :  { %v3504_v26 = vmax.f32 %v8283_v28, 0.0  ;;  %v3506_v45 = vmax.f32 %v8315_v62, 0.0  ;;  %5964 = vmatprep.mubr.bf16.mxu0 %v10328_v17  ;;  %6000 = vmatpush1.bf16.msra.mxu0 %v9434_v36 }
 0x2e2   :  { %v10448_v18 = vpack.c.bf16 %v3503_v54, %v3491_v7  ;;  %v10450_v61 = vpack.c.bf16 %v3505_v52, %v3493_v35  ;;  %6596 = vmatprep.mubr.bf16.mxu1 %v10328_v17  ;;  %6001 = vmatprep.subr.bf16.mxu0 %v9441_v8 }
 0x2e3   :  { %v10453_v4 = vpack.c.bf16 %v3504_v26, %v3492_v9  ;;  %v10455_v38 = vpack.c.bf16 %v3506_v45, %v3494_v60  ;;  %v3146_v47 = vpop.f32.mrb[80].mxu0  ;;  %v3372_v25 = vpop.f32.mrb[80].mxu1  ;;  %v9447_v45 = vld [vmem:[#allocation8 + $0x5e8] ss:$12 sps:$4 sm:$0xff]  }
 0x2e4   :  { %v8284_v49 = vadd.f32 %v3146_v47, %v10363_v33  ;;  %v8316_v50 = vadd.f32 %v3372_v25, %v10366_v24  ;;  %v3148_v48 = vpop.f32.mrb[81].mxu0  ;;  %v3374_v42 = vpop.f32.mrb[81].mxu1  ;;  %v9452_v47 = vld [vmem:[#allocation8 + $0x604] ss:$12 sps:$4 sm:$0xff]  }
 0x2e5   :  { %v8285_v27 = vadd.f32 %v3148_v48, %v10370_v59  ;;  %v8317_v41 = vadd.f32 %v3374_v42, %v10374_v15  ;;  %v3150_v53 = vpop.f32.mrb[82].mxu0  ;;  %v3376_v17 = vpop.f32.mrb[82].mxu1  ;;  %6002 = vmatpush1.bf16.msra.mxu0 %v9439_v0 }
 0x2e6   :  { %v8286_v36 = vadd.f32 %v3150_v53, %v10363_v33  ;;  %v8318_v23 = vadd.f32 %v3376_v17, %v10366_v24  ;;  %v3152_v57 = vpop.f32.mrb[83].mxu0  ;;  %v3378_v12 = vpop.f32.mrb[83].mxu1  ;;  %6003 = vmatprep.subr.bf16.mxu0 %v9444_v29  ;;  %v3515_v62 = vmax.f32 %v8284_v49, 0.0  ;;  %v3517_v7 = vmax.f32 %v8316_v50, 0.0 }
 0x2e7   :  { %v8287_v8 = vadd.f32 %v3152_v57, %v10370_v59  ;;  %v8319_v28 = vadd.f32 %v3378_v12, %v10374_v15  ;;  %v3516_v52 = vmax.f32 %v8285_v27, 0.0  ;;  %v3518_v9 = vmax.f32 %v8317_v41, 0.0 }
 0x2e8   :  { %v3527_v35 = vmax.f32 %v8286_v36, 0.0  ;;  %v3529_v54 = vmax.f32 %v8318_v23, 0.0  ;;  %5965 = vmatmul.mubr.bf16.gmra.mrb[124].mxu0 %v10323_v10  ;;  %6597 = vmatmul.mubr.bf16.gmra.mrb[188].mxu1 %v10323_v10  ;;  %v9450_v36 = vld [vmem:[#allocation8 + $0x600] ss:$12 sps:$4 sm:$0xff]  }
 0x2e9   :  { %v3528_v60 = vmax.f32 %v8287_v8, 0.0  ;;  %v3530_v26 = vmax.f32 %v8319_v28, 0.0  ;;  %6004 = vmatpush1.bf16.msra.mxu0 %v9442_v20  ;;  %6007 = vmatprep.mubr.bf16.mxu0 %v10190_v58  ;;  %v9454_v8 = vld [vmem:[#allocation8 + $0x608] ss:$12 sps:$4 sm:$0xff]  }
 0x2ea   :  { %v10468_v0 = vpack.c.bf16 %v3527_v35, %v3515_v62  ;;  %v10470_v29 = vpack.c.bf16 %v3529_v54, %v3517_v7  ;;  %6637 = vmatprep.mubr.bf16.mxu1 %v10190_v58  ;;  %6005 = vmatprep.subr.bf16.mxu0 %v9449_v46  ;;  %v9457_v7 = vld [vmem:[#allocation8 + $0x61c] ss:$12 sps:$4 sm:$0xff]   ;;  %v9461_v35 = vld [vmem:[#allocation8 + $0x6e0] ss:$12 sps:$4 sm:$0xff]  }
 0x2eb   :  { %v10473_v25 = vpack.c.bf16 %v3528_v60, %v3516_v52  ;;  %v10475_v49 = vpack.c.bf16 %v3530_v26, %v3518_v9  ;;  %v3156_v10 = vpop.f32.mrb[84].mxu0  ;;  %v3382_v50 = vpop.f32.mrb[84].mxu1 }
 0x2ec   :  { %v8288_v48 = vadd.f32 %v3156_v10, %v10363_v33  ;;  %v8320_v42 = vadd.f32 %v3382_v50, %v10366_v24  ;;  %v3158_v27 = vpop.f32.mrb[85].mxu0  ;;  %v3384_v41 = vpop.f32.mrb[85].mxu1 }
 0x2ed   :  { %v8289_v53 = vadd.f32 %v3158_v27, %v10370_v59  ;;  %v8321_v17 = vadd.f32 %v3384_v41, %v10374_v15  ;;  %v3160_v20 = vpop.f32.mrb[86].mxu0  ;;  %v3386_v58 = vpop.f32.mrb[86].mxu1  ;;  %6006 = vmatpush1.bf16.msra.mxu0 %v9447_v45 }
 0x2ee   :  { %v8290_v23 = vadd.f32 %v3160_v20, %v10363_v33  ;;  %v8322_v57 = vadd.f32 %v3386_v58, %v10366_v24  ;;  %v3162_v12 = vpop.f32.mrb[87].mxu0  ;;  %v3388_v46 = vpop.f32.mrb[87].mxu1  ;;  %6088 = vmatprep.subr.bf16.mxu0 %v9452_v47  ;;  %v3539_v54 = vmax.f32 %v8288_v48, 0.0  ;;  %v3541_v52 = vmax.f32 %v8320_v42, 0.0  ;;  %v9455_v47 = vld [vmem:[#allocation8 + $0x618] ss:$12 sps:$4 sm:$0xff]  }
 0x2ef   :  { %v8291_v28 = vadd.f32 %v3162_v12, %v10370_v59  ;;  %v8323_v62 = vadd.f32 %v3388_v46, %v10374_v15  ;;  %v3540_v26 = vmax.f32 %v8289_v53, 0.0  ;;  %v3542_v45 = vmax.f32 %v8321_v17, 0.0  ;;  %v9460_v48 = vld [vmem:[#allocation8 + $0x634] ss:$12 sps:$4 sm:$0xff]   ;;  %v9469_v58 = vld [vmem:[#allocation8 + $0x6f8] ss:$12 sps:$4 sm:$0xff]  }
 0x2f0   :  { %v3551_v9 = vmax.f32 %v8290_v23, 0.0  ;;  %v3553_v60 = vmax.f32 %v8322_v57, 0.0  ;;  %6008 = vmatmul.mubr.bf16.vlgmr.msra.gmra.mrb[96].mxu0 %v10185_v21  ;;  %6638 = vmatmul.mubr.bf16.vlgmr.msra.gmra.mrb[192].mxu1 %v10185_v21  ;;  %v9462_v42 = vld [vmem:[#allocation8 + $0x620] ss:$12 sps:$4 sm:$0xff]  }
 0x2f1   :  { %v3552_v10 = vmax.f32 %v8291_v28, 0.0  ;;  %v3554_v50 = vmax.f32 %v8323_v62, 0.0  ;;  %6017 = vmatprep.mubr.bf16.mxu0 %v10210_v40  ;;  %6089 = vmatpush1.bf16.msra.mxu0 %v9450_v36  ;;  %v9458_v62 = vld [vmem:[#allocation8 + $0x630] ss:$12 sps:$4 sm:$0xff]  }
 0x2f2   :  { %v10488_v27 = vpack.c.bf16 %v3551_v9, %v3539_v54  ;;  %v10490_v41 = vpack.c.bf16 %v3553_v60, %v3541_v52  ;;  %6645 = vmatprep.mubr.bf16.mxu1 %v10210_v40  ;;  %8013 = vmatpush3.bf16.msra.mxu1 %v9454_v8  ;;  %v9465_v9 = vld [vmem:[#allocation8 + $0x64c] ss:$12 sps:$4 sm:$0xff]  }
 0x2f3   :  { %v10493_v20 = vpack.c.bf16 %v3552_v10, %v3540_v26  ;;  %v10495_v21 = vpack.c.bf16 %v3554_v50, %v3542_v45  ;;  %v3166_v53 = vpop.f32.mrb[88].mxu0  ;;  %v3392_v17 = vpop.f32.mrb[88].mxu1  ;;  %6090 = vmatprep.subr.bf16.mxu0 %v9457_v7  ;;  %8014 = vmatprep.subr.bf16.mxu1 %v9461_v35  ;;  %v9470_v45 = vld [vmem:[#allocation8 + $0x638] ss:$12 sps:$4 sm:$0xff]  }
 0x2f4   :  { %v8292_v36 = vadd.f32 %v3166_v53, %v10363_v33  ;;  %v8324_v23 = vadd.f32 %v3392_v17, %v10366_v24  ;;  %v3168_v57 = vpop.f32.mrb[89].mxu0  ;;  %v3394_v12 = vpop.f32.mrb[89].mxu1  ;;  %v9477_v17 = vld [vmem:[#allocation8 + $0x710] ss:$12 sps:$4 sm:$0xff]  }
 0x2f5   :  { %v8293_v40 = vadd.f32 %v3168_v57, %v10370_v59  ;;  %v8325_v46 = vadd.f32 %v3394_v12, %v10374_v15  ;;  %v3170_v8 = vpop.f32.mrb[90].mxu0  ;;  %v3396_v28 = vpop.f32.mrb[90].mxu1  ;;  %6091 = vmatpush1.bf16.msra.mxu0 %v9455_v47 }
 0x2f6   :  { %v8294_v54 = vadd.f32 %v3170_v8, %v10363_v33  ;;  %v8326_v7 = vadd.f32 %v3396_v28, %v10366_v24  ;;  %v3172_v35 = vpop.f32.mrb[91].mxu0  ;;  %v3398_v52 = vpop.f32.mrb[91].mxu1  ;;  %6092 = vmatprep.subr.bf16.mxu0 %v9460_v48  ;;  %8015 = vmatpush3.bf16.msra.mxu1 %v9462_v42  ;;  %v3563_v10 = vmax.f32 %v8292_v36, 0.0  ;;  %v3565_v50 = vmax.f32 %v8324_v23, 0.0  ;;  %v9463_v8 = vld [vmem:[#allocation8 + $0x648] ss:$12 sps:$4 sm:$0xff]  }
 0x2f7   :  { %v8295_v60 = vadd.f32 %v3172_v35, %v10370_v59  ;;  %v8327_v26 = vadd.f32 %v3398_v52, %v10374_v15  ;;  %8016 = vmatprep.subr.bf16.mxu1 %v9469_v58  ;;  %v3564_v57 = vmax.f32 %v8293_v40, 0.0  ;;  %v3566_v12 = vmax.f32 %v8325_v46, 0.0  ;;  %v9468_v36 = vld [vmem:[#allocation8 + $0x664] ss:$12 sps:$4 sm:$0xff]  }
 0x2f8   :  { %v3575_v53 = vmax.f32 %v8294_v54, 0.0  ;;  %v3577_v47 = vmax.f32 %v8326_v7, 0.0  ;;  %6018 = vmatmul.mubr.bf16.gmra.mrb[100].mxu0 %v10205_v13  ;;  %6646 = vmatmul.mubr.bf16.gmra.mrb[196].mxu1 %v10205_v13  ;;  %v9478_v54 = vld [vmem:[#allocation8 + $0x650] ss:$12 sps:$4 sm:$0xff]  }
 0x2f9   :  { %v3576_v48 = vmax.f32 %v8295_v60, 0.0  ;;  %v3578_v42 = vmax.f32 %v8327_v26, 0.0  ;;  %6027 = vmatprep.mubr.bf16.mxu0 %v10230_v2  ;;  %6093 = vmatpush1.bf16.msra.mxu0 %v9458_v62 }
 0x2fa   :  { %v10508_v28 = vpack.c.bf16 %v3575_v53, %v3563_v10  ;;  %v10510_v58 = vpack.c.bf16 %v3577_v47, %v3565_v50  ;;  %6653 = vmatprep.mubr.bf16.mxu1 %v10230_v2  ;;  %6094 = vmatprep.subr.bf16.mxu0 %v9465_v9  ;;  %v9466_v10 = vld [vmem:[#allocation8 + $0x660] ss:$12 sps:$4 sm:$0xff]  }
 0x2fb   :  { %v10513_v23 = vpack.c.bf16 %v3576_v48, %v3564_v57  ;;  %v10515_v13 = vpack.c.bf16 %v3578_v42, %v3566_v12  ;;  %v3176_v40 = vpop.f32.mrb[92].mxu0  ;;  %v3402_v46 = vpop.f32.mrb[92].mxu1  ;;  %8017 = vmatpush3.bf16.msra.mxu1 %v9470_v45  ;;  %v9473_v57 = vld [vmem:[#allocation8 + $0x67c] ss:$12 sps:$4 sm:$0xff]   ;;  %v9471_v48 = vld [vmem:[#allocation8 + $0x678] ss:$12 sps:$4 sm:$0xff]  }
 0x2fc   :  { %v8296_v7 = vadd.f32 %v3176_v40, %v10363_v33  ;;  %v8328_v62 = vadd.f32 %v3402_v46, %v10366_v24  ;;  %v3178_v35 = vpop.f32.mrb[93].mxu0  ;;  %v3404_v52 = vpop.f32.mrb[93].mxu1  ;;  %8018 = vmatprep.subr.bf16.mxu1 %v9477_v17  ;;  %v9485_v42 = vld [vmem:[#allocation8 + $0x728] ss:$12 sps:$4 sm:$0xff]  }
 0x2fd   :  { %v8297_v60 = vadd.f32 %v3178_v35, %v10370_v59  ;;  %v8329_v2 = vadd.f32 %v3404_v52, %v10374_v15  ;;  %v3180_v9 = vpop.f32.mrb[94].mxu0  ;;  %v3406_v26 = vpop.f32.mrb[94].mxu1  ;;  %6095 = vmatpush1.bf16.msra.mxu0 %v9463_v8 }
 0x2fe   :  { %v8298_v50 = vadd.f32 %v3180_v9, %v10363_v33  ;;  %v8330_v45 = vadd.f32 %v3406_v26, %v10366_v24  ;;  %v3182_v53 = vpop.f32.mrb[95].mxu0  ;;  %v3408_v47 = vpop.f32.mrb[95].mxu1  ;;  %6096 = vmatprep.subr.bf16.mxu0 %v9468_v36  ;;  %v3587_v40 = vmax.f32 %v8296_v7, 0.0  ;;  %v3589_v46 = vmax.f32 %v8328_v62, 0.0  ;;  %v9486_v33 = vld [vmem:[#allocation8 + $0x668] ss:$12 sps:$4 sm:$0xff]  }
 0x2ff   :  { %v8299_v12 = vadd.f32 %v3182_v53, %v10370_v59  ;;  %v8331_v17 = vadd.f32 %v3408_v47, %v10374_v15  ;;  %8019 = vmatpush3.bf16.msra.mxu1 %v9478_v54  ;;  %v3588_v24 = vmax.f32 %v8297_v60, 0.0  ;;  %v3590_v52 = vmax.f32 %v8329_v2, 0.0  ;;  %v9493_v59 = vld [vmem:[#allocation8 + $0x740] ss:$12 sps:$4 sm:$0xff]  }
 0x300   :  { %v3599_v35 = vmax.f32 %v8298_v50, 0.0  ;;  %v3601_v8 = vmax.f32 %v8330_v45, 0.0  ;;  %6028 = vmatmul.mubr.bf16.gmra.mrb[104].mxu0 %v10225_v34  ;;  %6654 = vmatmul.mubr.bf16.gmra.mrb[200].mxu1 %v10225_v34  ;;  %v9476_v7 = vld [vmem:[#allocation8 + $0x694] ss:$12 sps:$4 sm:$0xff]   ;;  %v9474_v50 = vld [vmem:[#allocation8 + $0x690] ss:$12 sps:$4 sm:$0xff]  }
 0x301   :  { %v3600_v36 = vmax.f32 %v8299_v12, 0.0  ;;  %v3602_v9 = vmax.f32 %v8331_v17, 0.0  ;;  %6037 = vmatprep.mubr.bf16.mxu0 %v10250_v55  ;;  %6097 = vmatpush1.bf16.msra.mxu0 %v9466_v10  ;;  %v9481_v53 = vld [vmem:[#allocation8 + $0x6ac] ss:$12 sps:$4 sm:$0xff]   ;;  %v9479_v17 = vld [vmem:[#allocation8 + $0x6a8] ss:$12 sps:$4 sm:$0xff]  }
 0x302   :  { %v10528_v15 = vpack.c.bf16 %v3599_v35, %v3587_v40  ;;  %v10530_v54 = vpack.c.bf16 %v3601_v8, %v3589_v46  ;;  %6661 = vmatprep.mubr.bf16.mxu1 %v10250_v55  ;;  %6098 = vmatprep.subr.bf16.mxu0 %v9473_v57  ;;  %v9494_v47 = vld [vmem:[#allocation8 + $0x680] ss:$12 sps:$4 sm:$0xff]   ;;  %v9501_v57 = vld [vmem:[#allocation8 + $0x758] ss:$12 sps:$4 sm:$0xff]  }
 0x303   :  { %v10533_v62 = vpack.c.bf16 %v3600_v36, %v3588_v24  ;;  %v10535_v34 = vpack.c.bf16 %v3602_v9, %v3590_v52  ;;  %v7772_v60 = vpop.f32.mrb[96].mxu1  ;;  %8020 = vmatprep.subr.bf16.mxu1 %v9485_v42  ;;  %v10990_v12 = vld [vmem:[#allocation20_spill] sm:$0xff]  ;;  %v9502_v40 = vld [vmem:[#allocation8 + $0x698] ss:$12 sps:$4 sm:$0xff]   ;;  %v9489_v24 = vld [vmem:[#allocation8 + $0x6dc] ss:$12 sps:$4 sm:$0xff]  }
 0x304   :  { %v7773_v2 = vpop.f32.mrb[97].mxu1  ;;  %8021 = vmatpush3.bf16.msra.mxu1 %v9486_v33  ;;  %v9482_v33 = vld [vmem:[#allocation8 + $0x6c0] ss:$12 sps:$4 sm:$0xff]   ;;  %v9509_v36 = vld [vmem:[#allocation8 + $0x770] ss:$12 sps:$4 sm:$0xff]   ;;  %v10991_v9 = vld [vmem:[#allocation19_spill] sm:$0xff] }
 0x305   :  { %v10537_v26 = vadd.f32 %v7773_v2, %v7772_v60  ;;  %6099 = vmatpush1.bf16.msra.mxu0 %v9471_v48  ;;  %v7775_v10 = vpop.f32.mrb[98].mxu1  ;;  %8022 = vmatprep.subr.bf16.mxu1 %v9493_v59  ;;  %v9484_v48 = vld [vmem:[#allocation8 + $0x6c4] ss:$12 sps:$4 sm:$0xff]   ;;  %v9517_v2 = vld [vmem:[#allocation8 + $0x848] ss:$12 sps:$4 sm:$0xff]  }
 0x306   :  { %v7776_v45 = vpop.f32.mrb[99].mxu1  ;;  %6100 = vmatprep.subr.bf16.mxu0 %v9476_v7  ;;  %v9510_v59 = vld [vmem:[#allocation8 + $0x6b0] ss:$12 sps:$4 sm:$0xff]   ;;  %v9487_v60 = vld [vmem:[#allocation8 + $0x6d8] ss:$12 sps:$4 sm:$0xff]  }
 0x307   :  { %v10539_v55 = vadd.f32 %v7776_v45, %v7775_v10  ;;  %v10992_v7 = vld [vmem:[#allocation22_spill] sm:$0xff] }
 0x308   :  { %6038 = vmatmul.mubr.bf16.gmra.mrb[108].mxu0 %v10245_v14  ;;  %6662 = vmatmul.mubr.bf16.gmra.mrb[204].mxu1 %v10245_v14  ;;  %v9492_v10 = vld [vmem:[#allocation8 + $0x6f4] ss:$12 sps:$4 sm:$0xff]  }
 0x309   :  { %6047 = vmatprep.mubr.bf16.mxu0 %v10990_v12  ;;  %6101 = vmatpush1.bf16.msra.mxu0 %v9474_v50 }
 0x30a   :  { %6669 = vmatprep.mubr.bf16.mxu1 %v10990_v12  ;;  %6102 = vmatprep.subr.bf16.mxu0 %v9481_v53 }
 0x30b   :  { %v7778_v42 = vpop.f32.mrb[100].mxu1  ;;  %8023 = vmatpush3.bf16.msra.mxu1 %v9494_v47 }
 0x30c   :  { %v7779_v46 = vpop.f32.mrb[101].mxu1  ;;  %8024 = vmatprep.subr.bf16.mxu1 %v9501_v57  ;;  %v9490_v57 = vld [vmem:[#allocation8 + $0x6f0] ss:$12 sps:$4 sm:$0xff]  }
 0x30d   :  { %v10545_v35 = vadd.f32 %v7779_v46, %v7778_v42  ;;  %6103 = vmatpush1.bf16.msra.mxu0 %v9479_v17  ;;  %v7781_v8 = vpop.f32.mrb[102].mxu1  ;;  %v9497_v17 = vld [vmem:[#allocation8 + $0x70c] ss:$12 sps:$4 sm:$0xff]   ;;  %v9500_v46 = vld [vmem:[#allocation8 + $0x724] ss:$12 sps:$4 sm:$0xff]  }
 0x30e   :  { %v7782_v14 = vpop.f32.mrb[103].mxu1  ;;  %6104 = vmatprep.subr.bf16.mxu0 %v9484_v48  ;;  %v10993_v42 = vld [vmem:[#allocation21_spill] sm:$0xff] }
 0x30f   :  { %v10547_v52 = vadd.f32 %v7782_v14, %v7781_v8  ;;  %8025 = vmatpush3.bf16.msra.mxu1 %v9502_v40  ;;  %v9495_v40 = vld [vmem:[#allocation8 + $0x708] ss:$12 sps:$4 sm:$0xff]  }
 0x310   :  { %6048 = vmatmul.mubr.bf16.gmra.mrb[112].mxu0 %v10991_v9  ;;  %6670 = vmatmul.mubr.bf16.gmra.mrb[208].mxu1 %v10991_v9 }
 0x311   :  { %6057 = vmatprep.mubr.bf16.mxu0 %v10992_v7  ;;  %6105 = vmatpush1.bf16.msra.mxu0 %v9482_v33 }
 0x312   :  { %6677 = vmatprep.mubr.bf16.mxu1 %v10992_v7  ;;  %6106 = vmatprep.subr.bf16.mxu0 %v9489_v24 }
 0x313   :  { %v7784_v50 = vpop.f32.mrb[104].mxu1  ;;  %8026 = vmatprep.subr.bf16.mxu1 %v9509_v36  ;;  %v9498_v36 = vld [vmem:[#allocation8 + $0x720] ss:$12 sps:$4 sm:$0xff]  }
 0x314   :  { %v7785_v45 = vpop.f32.mrb[105].mxu1  ;;  %8027 = vmatpush3.bf16.msra.mxu1 %v9510_v59  ;;  %v9505_v59 = vld [vmem:[#allocation8 + $0x73c] ss:$12 sps:$4 sm:$0xff]  }
 0x315   :  { %v10553_v53 = vadd.f32 %v7785_v45, %v7784_v50  ;;  %6107 = vmatpush1.bf16.msra.mxu0 %v9487_v60  ;;  %v7787_v47 = vpop.f32.mrb[106].mxu1  ;;  %8076 = vmatprep.subr.bf16.mxu1 %v9517_v2  ;;  %v10994_v60 = vld [vmem:[#allocation23_spill] sm:$0xff]  ;;  %v9508_v2 = vld [vmem:[#allocation8 + $0x754] ss:$12 sps:$4 sm:$0xff]  }
 0x316   :  { %v7788_v12 = vpop.f32.mrb[107].mxu1  ;;  %6108 = vmatprep.subr.bf16.mxu0 %v9492_v10 }
 0x317   :  { %v10555_v48 = vadd.f32 %v7788_v12, %v7787_v47 }
 0x318   :  { %6058 = vmatmul.mubr.bf16.gmra.mrb[116].mxu0 %v10993_v42  ;;  %6678 = vmatmul.mubr.bf16.gmra.mrb[212].mxu1 %v10993_v42 }
 0x319   :  { %6067 = vmatprep.mubr.bf16.mxu0 %v10310_v44  ;;  %6109 = vmatpush1.bf16.msra.mxu0 %v9490_v57  ;;  %v9506_v57 = vld [vmem:[#allocation8 + $0x750] ss:$12 sps:$4 sm:$0xff]  }
 0x31a   :  { %6685 = vmatprep.mubr.bf16.mxu1 %v10310_v44  ;;  %6110 = vmatprep.subr.bf16.mxu0 %v9497_v17  ;;  %v9503_v44 = vld [vmem:[#allocation8 + $0x738] ss:$12 sps:$4 sm:$0xff]  }
 0x31b   :  { %v7790_v8 = vpop.f32.mrb[108].mxu1  ;;  %v9513_v17 = vld [vmem:[#allocation8 + $0x76c] ss:$12 sps:$4 sm:$0xff]  }
 0x31c   :  { %v7791_v33 = vpop.f32.mrb[109].mxu1 }
 0x31d   :  { %v10561_v14 = vadd.f32 %v7791_v33, %v7790_v8  ;;  %6111 = vmatpush1.bf16.msra.mxu0 %v9495_v40  ;;  %v7793_v24 = vpop.f32.mrb[110].mxu1  ;;  %v9516_v40 = vld [vmem:[#allocation8 + $0x784] ss:$12 sps:$4 sm:$0xff]  }
 0x31e   :  { %v7794_v9 = vpop.f32.mrb[111].mxu1  ;;  %6112 = vmatprep.subr.bf16.mxu0 %v9500_v46 }
 0x31f   :  { %v10563_v7 = vadd.f32 %v7794_v9, %v7793_v24 }
 0x320   :  { %6068 = vmatmul.mubr.bf16.gmra.mrb[120].mxu0 %v10994_v60  ;;  %6686 = vmatmul.mubr.bf16.gmra.mrb[216].mxu1 %v10994_v60 }
 0x321   :  { %6077 = vmatprep.mubr.bf16.mxu0 %v10330_v22  ;;  %6113 = vmatpush1.bf16.msra.mxu0 %v9498_v36  ;;  %v9514_v36 = vld [vmem:[#allocation8 + $0x780] ss:$12 sps:$4 sm:$0xff]  }
 0x322   :  { %6693 = vmatprep.mubr.bf16.mxu1 %v10330_v22  ;;  %6114 = vmatprep.subr.bf16.mxu0 %v9505_v59  ;;  %v9511_v22 = vld [vmem:[#allocation8 + $0x768] ss:$12 sps:$4 sm:$0xff]  }
 0x323   :  { %v7796_v10 = vpop.f32.mrb[112].mxu1  ;;  %v9518_v59 = vld [vmem:[#allocation8 + $0x788] ss:$12 sps:$4 sm:$0xff]  }
 0x324   :  { %v7797_v50 = vpop.f32.mrb[113].mxu1 }
 0x325   :  { %v10569_v45 = vadd.f32 %v7797_v50, %v7796_v10  ;;  %6115 = vmatpush1.bf16.msra.mxu0 %v9503_v44  ;;  %v7799_v47 = vpop.f32.mrb[114].mxu1  ;;  %v9525_v44 = vld [vmem:[#allocation8 + $0x860] ss:$12 sps:$4 sm:$0xff]  }
 0x326   :  { %v7800_v12 = vpop.f32.mrb[115].mxu1  ;;  %6116 = vmatprep.subr.bf16.mxu0 %v9508_v2  ;;  %v9524_v2 = vld [vmem:[#allocation8 + $0x7b4] ss:$12 sps:$4 sm:$0xff]  }
 0x327   :  { %v10571_v42 = vadd.f32 %v7800_v12, %v7799_v47  ;;  %v9526_v10 = vld [vmem:[#allocation8 + $0x7a0] ss:$12 sps:$4 sm:$0xff]   ;;  %v9533_v47 = vld [vmem:[#allocation8 + $0x878] ss:$12 sps:$4 sm:$0xff]  }
 0x328   :  { %6078 = vmatmul.mubr.bf16.gmra.mrb[124].mxu0 %v10325_v32  ;;  %6694 = vmatmul.mubr.bf16.gmra.mrb[220].mxu1 %v10325_v32  ;;  %v9521_v32 = vld [vmem:[#allocation8 + $0x79c] ss:$12 sps:$4 sm:$0xff]  }
 0x329   :  { %6117 = vmatpush1.bf16.msra.mxu0 %v9506_v57  ;;  %6120 = vmatprep.mubr.bf16.mxu0 %v10393_v11 }
 0x32a   :  { %6734 = vmatprep.mubr.bf16.mxu1 %v10393_v11  ;;  %6118 = vmatprep.subr.bf16.mxu0 %v9513_v17  ;;  %v9519_v11 = vld [vmem:[#allocation8 + $0x798] ss:$12 sps:$4 sm:$0xff]  }
 0x32b   :  { %v7802_v46 = vpop.f32.mrb[116].mxu1 }
 0x32c   :  { %v7803_v8 = vpop.f32.mrb[117].mxu1 }
 0x32d   :  { %v10577_v33 = vadd.f32 %v7803_v8, %v7802_v46  ;;  %6119 = vmatpush1.bf16.msra.mxu0 %v9511_v22  ;;  %v7805_v24 = vpop.f32.mrb[118].mxu1  ;;  %v9522_v22 = vld [vmem:[#allocation8 + $0x7b0] ss:$12 sps:$4 sm:$0xff]  }
 0x32e   :  { %v7806_v9 = vpop.f32.mrb[119].mxu1  ;;  %6201 = vmatprep.subr.bf16.mxu0 %v9516_v40  ;;  %v9529_v40 = vld [vmem:[#allocation8 + $0x7cc] ss:$12 sps:$4 sm:$0xff]   ;;  %v9541_v8 = vld [vmem:[#allocation8 + $0x890] ss:$12 sps:$4 sm:$0xff]  }
 0x32f   :  { %v10579_v60 = vadd.f32 %v7806_v9, %v7805_v24  ;;  %v9527_v24 = vld [vmem:[#allocation8 + $0x7c8] ss:$12 sps:$4 sm:$0xff]  }
 0x330   :  { %6121 = vmatmul.mubr.bf16.vlgmr.msra.gmra.mrb[96].mxu0 %v10388_v37  ;;  %6735 = vmatmul.mubr.bf16.vlgmr.msra.gmra.mrb[224].mxu1 %v10388_v37 }
 0x331   :  { %6130 = vmatprep.mubr.bf16.mxu0 %v10413_v43  ;;  %6202 = vmatpush1.bf16.msra.mxu0 %v9514_v36  ;;  %v9532_v36 = vld [vmem:[#allocation8 + $0x7e4] ss:$12 sps:$4 sm:$0xff]  }
 0x332   :  { %6742 = vmatprep.mubr.bf16.mxu1 %v10413_v43  ;;  %8077 = vmatpush3.bf16.msra.mxu1 %v9518_v59  ;;  %v9534_v43 = vld [vmem:[#allocation8 + $0x7b8] ss:$12 sps:$4 sm:$0xff]   ;;  %v9542_v59 = vld [vmem:[#allocation8 + $0x7d0] ss:$12 sps:$4 sm:$0xff]  }
 0x333   :  { %v7808_v50 = vpop.f32.mrb[120].mxu1  ;;  %6203 = vmatprep.subr.bf16.mxu0 %v9521_v32  ;;  %8078 = vmatprep.subr.bf16.mxu1 %v9525_v44 }
 0x334   :  { %v7809_v57 = vpop.f32.mrb[121].mxu1 }
 0x335   :  { %v10585_v12 = vadd.f32 %v7809_v57, %v7808_v50  ;;  %6204 = vmatpush1.bf16.msra.mxu0 %v9519_v11  ;;  %v7811_v17 = vpop.f32.mrb[122].mxu1  ;;  %v9537_v50 = vld [vmem:[#allocation8 + $0x7fc] ss:$12 sps:$4 sm:$0xff]  }
 0x336   :  { %v7812_v37 = vpop.f32.mrb[123].mxu1  ;;  %6205 = vmatprep.subr.bf16.mxu0 %v9524_v2  ;;  %8079 = vmatpush3.bf16.msra.mxu1 %v9526_v10  ;;  %v9530_v2 = vld [vmem:[#allocation8 + $0x7e0] ss:$12 sps:$4 sm:$0xff]   ;;  %v9550_v57 = vld [vmem:[#allocation8 + $0x7e8] ss:$12 sps:$4 sm:$0xff]  }
 0x337   :  { %v10587_v46 = vadd.f32 %v7812_v37, %v7811_v17  ;;  %8080 = vmatprep.subr.bf16.mxu1 %v9533_v47  ;;  %v9557_v37 = vld [vmem:[#allocation8 + $0x8c0] ss:$12 sps:$4 sm:$0xff]  }
 0x338   :  { %6131 = vmatmul.mubr.bf16.gmra.mrb[100].mxu0 %v10408_v39  ;;  %6743 = vmatmul.mubr.bf16.gmra.mrb[228].mxu1 %v10408_v39  ;;  %v10595_v39 = vld [vmem:[#allocation10] sm:$0x7] }
 0x339   :  { %6140 = vmatprep.mubr.bf16.mxu0 %v10433_v16  ;;  %6206 = vmatpush1.bf16.msra.mxu0 %v9522_v22  ;;  %v10603_v17 = vrot.slane %v10595_v39, %v9983_v19  ;;  %v9535_v22 = vld [vmem:[#allocation8 + $0x7f8] ss:$12 sps:$4 sm:$0xff]  }
 0x33a   :  { %6750 = vmatprep.mubr.bf16.mxu1 %v10433_v16  ;;  %6207 = vmatprep.subr.bf16.mxu0 %v9529_v40  ;;  %v9549_v16 = vld [vmem:[#allocation8 + $0x8a8] ss:$12 sps:$4 sm:$0xff]  }
 0x33b   :  { %v7814_v9 = vpop.f32.mrb[124].mxu1  ;;  %8081 = vmatpush3.bf16.msra.mxu1 %v9534_v43  ;;  %v9540_v40 = vld [vmem:[#allocation8 + $0x814] ss:$12 sps:$4 sm:$0xff]  }
 0x33c   :  { %v7815_v32 = vpop.f32.mrb[125].mxu1  ;;  %8082 = vmatprep.subr.bf16.mxu1 %v9541_v8 }
 0x33d   :  { %v10593_v44 = vadd.f32 %v7815_v32, %v7814_v9  ;;  %6208 = vmatpush1.bf16.msra.mxu0 %v9527_v24  ;;  %v7817_v11 = vpop.f32.mrb[126].mxu1 }
 0x33e   :  { %v7818_v10 = vpop.f32.mrb[127].mxu1  ;;  %6209 = vmatprep.subr.bf16.mxu0 %v9532_v36  ;;  %v9538_v36 = vld [vmem:[#allocation8 + $0x810] ss:$12 sps:$4 sm:$0xff]  }
 0x33f   :  { %v10597_v47 = vadd.f32 %v7818_v10, %v7817_v11  ;;  %8083 = vmatpush3.bf16.msra.mxu1 %v9542_v59  ;;  %v9545_v59 = vld [vmem:[#allocation8 + $0x82c] ss:$12 sps:$4 sm:$0xff]  }
 0x340   :  { %6141 = vmatmul.mubr.bf16.gmra.mrb[104].mxu0 %v10428_v31  ;;  %6751 = vmatmul.mubr.bf16.gmra.mrb[232].mxu1 %v10428_v31  ;;  %v6349_v31 = vadd.f32 %v10537_v26, %v10603_v17  ;;  %v9565_v26 = vld [vmem:[#allocation8 + $0x8d8] ss:$12 sps:$4 sm:$0xff]  }
 0x341   :  { %6150 = vmatprep.mubr.bf16.mxu0 %v10453_v4  ;;  %6210 = vmatpush1.bf16.msra.mxu0 %v9530_v2  ;;  %v9558_v2 = vld [vmem:[#allocation8 + $0x800] ss:$12 sps:$4 sm:$0xff]  }
 0x342   :  { %6758 = vmatprep.mubr.bf16.mxu1 %v10453_v4  ;;  %6211 = vmatprep.subr.bf16.mxu0 %v9537_v50  ;;  %v6352_v4 = vadd.f32 %v10539_v55, %v10603_v17  ;;  %v9543_v50 = vld [vmem:[#allocation8 + $0x828] ss:$12 sps:$4 sm:$0xff]  }
 0x343   :  { %v7836_v43 = vpop.f32.mrb[128].mxu1  ;;  %8084 = vmatprep.subr.bf16.mxu1 %v9549_v16  ;;  %v9548_v16 = vld [vmem:[#allocation8 + $0x844] ss:$12 sps:$4 sm:$0xff]  }
 0x344   :  { %v7837_v8 = vpop.f32.mrb[129].mxu1  ;;  %8085 = vmatpush3.bf16.msra.mxu1 %v9550_v57  ;;  %v9566_v57 = vld [vmem:[#allocation8 + $0x818] ss:$12 sps:$4 sm:$0xff]  }
 0x345   :  { %v7838_v24 = vadd.f32 %v7837_v8, %v7836_v43  ;;  %6212 = vmatpush1.bf16.msra.mxu0 %v9535_v22  ;;  %v7839_v19 = vpop.f32.mrb[130].mxu1  ;;  %8086 = vmatprep.subr.bf16.mxu1 %v9557_v37  ;;  %v6357_v37 = vadd.f32 %v10545_v35, %v10603_v17  ;;  %v9546_v43 = vld [vmem:[#allocation8 + $0x840] ss:$12 sps:$4 sm:$0xff]   ;;  %v9574_v35 = vld [vmem:[#allocation8 + $0x830] ss:$12 sps:$4 sm:$0xff]  }
 0x346   :  { %v7840_v9 = vpop.f32.mrb[131].mxu1  ;;  %6213 = vmatprep.subr.bf16.mxu0 %v9540_v40 }
 0x347   :  { %v10611_v32 = vadd.f32 %v7838_v24, %v6349_v31  ;;  %v7841_v11 = vadd.f32 %v7840_v9, %v7839_v19  ;;  %v9553_v31 = vld [vmem:[#allocation8 + $0x85c] ss:$12 sps:$4 sm:$0xff]  }
 0x348   :  { %6151 = vmatmul.mubr.bf16.gmra.mrb[108].mxu0 %v10448_v18  ;;  %6759 = vmatmul.mubr.bf16.gmra.mrb[236].mxu1 %v10448_v18 }
 0x349   :  { %v10615_v10 = vadd.f32 %v7841_v11, %v6352_v4  ;;  %6160 = vmatprep.mubr.bf16.mxu0 %v10473_v25  ;;  %6214 = vmatpush1.bf16.msra.mxu0 %v9538_v36  ;;  %v9573_v36 = vld [vmem:[#allocation8 + $0x8f0] ss:$12 sps:$4 sm:$0xff]  }
 0x34a   :  { %6766 = vmatprep.mubr.bf16.mxu1 %v10473_v25  ;;  %6215 = vmatprep.subr.bf16.mxu0 %v9545_v59  ;;  %v6360_v25 = vadd.f32 %v10547_v52, %v10603_v17  ;;  %v9551_v59 = vld [vmem:[#allocation8 + $0x858] ss:$12 sps:$4 sm:$0xff]   ;;  %v9556_v52 = vld [vmem:[#allocation8 + $0x874] ss:$12 sps:$4 sm:$0xff]  }
 0x34b   :  { %v7842_v55 = vpop.f32.mrb[132].mxu1  ;;  %8087 = vmatpush3.bf16.msra.mxu1 %v9558_v2  ;;  %v6365_v2 = vadd.f32 %v10553_v53, %v10603_v17  ;;  %v9559_v53 = vld [vmem:[#allocation8 + $0x888] ss:$12 sps:$4 sm:$0xff]  }
 0x34c   :  { %v7843_v22 = vpop.f32.mrb[133].mxu1  ;;  %8088 = vmatprep.subr.bf16.mxu1 %v9565_v26 }
 0x34d   :  { %v7844_v18 = vadd.f32 %v7843_v22, %v7842_v55  ;;  %6216 = vmatpush1.bf16.msra.mxu0 %v9543_v50  ;;  %v7845_v40 = vpop.f32.mrb[134].mxu1  ;;  %v9554_v50 = vld [vmem:[#allocation8 + $0x870] ss:$12 sps:$4 sm:$0xff]   ;;  %v9561_v55 = vld [vmem:[#allocation8 + $0x88c] ss:$12 sps:$4 sm:$0xff]  }
 0x34e   :  { %v7846_v8 = vpop.f32.mrb[135].mxu1  ;;  %6217 = vmatprep.subr.bf16.mxu0 %v9548_v16 }
 0x34f   :  { %v10623_v24 = vadd.f32 %v7844_v18, %v6357_v37  ;;  %v7847_v19 = vadd.f32 %v7846_v8, %v7845_v40  ;;  %8089 = vmatpush3.bf16.msra.mxu1 %v9566_v57  ;;  %v6368_v57 = vadd.f32 %v10555_v48, %v10603_v17  ;;  %v9564_v18 = vld [vmem:[#allocation8 + $0x8a4] ss:$12 sps:$4 sm:$0xff]   ;;  %v6373_v48 = vadd.f32 %v10561_v14, %v10603_v17 }
 0x350   :  { %6161 = vmatmul.mubr.bf16.gmra.mrb[112].mxu0 %v10468_v0  ;;  %6767 = vmatmul.mubr.bf16.gmra.mrb[240].mxu1 %v10468_v0  ;;  %v9567_v14 = vld [vmem:[#allocation8 + $0x8b8] ss:$12 sps:$4 sm:$0xff]  }
 0x351   :  { %v10627_v9 = vadd.f32 %v7847_v19, %v6360_v25  ;;  %6170 = vmatprep.mubr.bf16.mxu0 %v10493_v20  ;;  %6218 = vmatpush1.bf16.msra.mxu0 %v9546_v43  ;;  %v9562_v25 = vld [vmem:[#allocation8 + $0x8a0] ss:$12 sps:$4 sm:$0xff]   ;;  %v9569_v19 = vld [vmem:[#allocation8 + $0x8bc] ss:$12 sps:$4 sm:$0xff]  }
 0x352   :  { %6774 = vmatprep.mubr.bf16.mxu1 %v10493_v20  ;;  %6219 = vmatprep.subr.bf16.mxu0 %v9553_v31 }
 0x353   :  { %v7848_v4 = vpop.f32.mrb[136].mxu1  ;;  %8090 = vmatprep.subr.bf16.mxu1 %v9573_v36  ;;  %v6376_v36 = vadd.f32 %v10563_v7, %v10603_v17  ;;  %v6381_v7 = vadd.f32 %v10569_v45, %v10603_v17  ;;  %v9575_v45 = vld [vmem:[#allocation8 + $0x8e8] ss:$12 sps:$4 sm:$0xff]  }
 0x354   :  { %v7849_v11 = vpop.f32.mrb[137].mxu1  ;;  %8091 = vmatpush3.bf16.msra.mxu1 %v9574_v35 }
 0x355   :  { %v7850_v26 = vadd.f32 %v7849_v11, %v7848_v4  ;;  %6220 = vmatpush1.bf16.msra.mxu0 %v9551_v59  ;;  %v7851_v0 = vpop.f32.mrb[138].mxu1 }
 0x356   :  { %v7852_v16 = vpop.f32.mrb[139].mxu1  ;;  %6221 = vmatprep.subr.bf16.mxu0 %v9556_v52  ;;  %v9572_v52 = vld [vmem:[#allocation8 + $0x8d4] ss:$12 sps:$4 sm:$0xff]  }
 0x357   :  { %v10635_v20 = vadd.f32 %v7850_v26, %v6365_v2  ;;  %v7853_v22 = vadd.f32 %v7852_v16, %v7851_v0  ;;  %v9570_v0 = vld [vmem:[#allocation8 + $0x8d0] ss:$12 sps:$4 sm:$0xff]   ;;  %v6384_v16 = vadd.f32 %v10571_v42, %v10603_v17  ;;  %v6389_v42 = vadd.f32 %v10577_v33, %v10603_v17 }
 0x358   :  { %6171 = vmatmul.mubr.bf16.gmra.mrb[116].mxu0 %v10488_v27  ;;  %6775 = vmatmul.mubr.bf16.gmra.mrb[244].mxu1 %v10488_v27 }
 0x359   :  { %v10639_v37 = vadd.f32 %v7853_v22, %v6368_v57  ;;  %6180 = vmatprep.mubr.bf16.mxu0 %v10513_v23  ;;  %6222 = vmatpush1.bf16.msra.mxu0 %v9554_v50  ;;  %v9577_v50 = vld [vmem:[#allocation8 + $0x8ec] ss:$12 sps:$4 sm:$0xff]  }
 0x35a   :  { %6782 = vmatprep.mubr.bf16.mxu1 %v10513_v23  ;;  %6223 = vmatprep.subr.bf16.mxu0 %v9561_v55 }
 0x35b   :  { %v7854_v40 = vpop.f32.mrb[140].mxu1 }
 0x35c   :  { %v7855_v43 = vpop.f32.mrb[141].mxu1 }
 0x35d   :  { %v7856_v8 = vadd.f32 %v7855_v43, %v7854_v40  ;;  %6224 = vmatpush1.bf16.msra.mxu0 %v9559_v53  ;;  %v7857_v31 = vpop.f32.mrb[142].mxu1 }
 0x35e   :  { %v7858_v27 = vpop.f32.mrb[143].mxu1  ;;  %6225 = vmatprep.subr.bf16.mxu0 %v9564_v18 }
 0x35f   :  { %v10647_v35 = vadd.f32 %v7856_v8, %v6373_v48  ;;  %v7859_v23 = vadd.f32 %v7858_v27, %v7857_v31 }
 0x360   :  { %6181 = vmatmul.mubr.bf16.gmra.mrb[120].mxu0 %v10508_v28  ;;  %6783 = vmatmul.mubr.bf16.gmra.mrb[248].mxu1 %v10508_v28 }
 0x361   :  { %v10651_v59 = vadd.f32 %v7859_v23, %v6376_v36  ;;  %6190 = vmatprep.mubr.bf16.mxu0 %v10533_v62  ;;  %6226 = vmatpush1.bf16.msra.mxu0 %v9562_v25  ;;  %v6397_v25 = vadd.f32 %v10585_v12, %v10603_v17  ;;  %v6400_v36 = vadd.f32 %v10587_v46, %v10603_v17 }
 0x362   :  { %6790 = vmatprep.mubr.bf16.mxu1 %v10533_v62  ;;  %6227 = vmatprep.subr.bf16.mxu0 %v9569_v19 }
 0x363   :  { %v7860_v4 = vpop.f32.mrb[144].mxu1 }
 0x364   :  { %v7861_v11 = vpop.f32.mrb[145].mxu1 }
 0x365   :  { %v7862_v2 = vadd.f32 %v7861_v11, %v7860_v4  ;;  %6228 = vmatpush1.bf16.msra.mxu0 %v9567_v14  ;;  %v7863_v26 = vpop.f32.mrb[146].mxu1 }
 0x366   :  { %v7864_v28 = vpop.f32.mrb[147].mxu1  ;;  %6229 = vmatprep.subr.bf16.mxu0 %v9572_v52  ;;  %v6405_v52 = vadd.f32 %v10593_v44, %v10603_v17 }
 0x367   :  { %v10659_v55 = vadd.f32 %v7862_v2, %v6381_v7  ;;  %v7865_v62 = vadd.f32 %v7864_v28, %v7863_v26  ;;  %v6408_v7 = vadd.f32 %v10597_v47, %v10603_v17 }
 0x368   :  { %6191 = vmatmul.mubr.bf16.gmra.mrb[124].mxu0 %v10528_v15  ;;  %6791 = vmatmul.mubr.bf16.gmra.mrb[252].mxu1 %v10528_v15  ;;  %v6392_v15 = vadd.f32 %v10579_v60, %v10603_v17 }
 0x369   :  { %v10663_v57 = vadd.f32 %v7865_v62, %v6384_v16  ;;  %6230 = vmatpush1.bf16.msra.mxu0 %v9570_v0  ;;  %6233 = vmatprep.mubr.bf16.mxu0 %v10395_v51 }
 0x36a   :  { %6831 = vmatprep.mubr.bf16.mxu1 %v10395_v51  ;;  %6231 = vmatprep.subr.bf16.mxu0 %v9577_v50 }
 0x36b   :  { %v7866_v22 = vpop.f32.mrb[148].mxu1 }
 0x36c   :  { %v7867_v53 = vpop.f32.mrb[149].mxu1 }
 0x36d   :  { %v7868_v18 = vadd.f32 %v7867_v53, %v7866_v22  ;;  %6232 = vmatpush1.bf16.msra.mxu0 %v9575_v45  ;;  %v7869_v40 = vpop.f32.mrb[150].mxu1 }
 0x36e   :  { %v7870_v43 = vpop.f32.mrb[151].mxu1 }
 0x36f   :  { %v10671_v48 = vadd.f32 %v7868_v18, %v6389_v42  ;;  %v7871_v8 = vadd.f32 %v7870_v43, %v7869_v40 }
 0x370   :  { %6234 = vmatmul.mubr.bf16.vlgmr.msra.gmra.mrb[96].mxu0 %v10390_v56  ;;  %6832 = vmatmul.mubr.bf16.vlgmr.msra.gmra.mrb[0].mxu1 %v10390_v56 }
 0x371   :  { %v10675_v51 = vadd.f32 %v7871_v8, %v6392_v15  ;;  %6243 = vmatprep.mubr.bf16.mxu0 %v10415_v1  ;;  %6839 = vmatprep.mubr.bf16.mxu1 %v10415_v1 }
 0x373   :  { %v7872_v33 = vpop.f32.mrb[152].mxu1 }
 0x374   :  { %v7873_v31 = vpop.f32.mrb[153].mxu1 }
 0x375   :  { %v7874_v27 = vadd.f32 %v7873_v31, %v7872_v33  ;;  %v7875_v60 = vpop.f32.mrb[154].mxu1 }
 0x376   :  { %v7876_v19 = vpop.f32.mrb[155].mxu1 }
 0x377   :  { %v10683_v23 = vadd.f32 %v7874_v27, %v6397_v25  ;;  %v7877_v56 = vadd.f32 %v7876_v19, %v7875_v60 }
 0x378   :  { %6244 = vmatmul.mubr.bf16.gmra.mrb[100].mxu0 %v10410_v63  ;;  %6840 = vmatmul.mubr.bf16.gmra.mrb[4].mxu1 %v10410_v63 }
 0x379   :  { %v10687_v14 = vadd.f32 %v7877_v56, %v6400_v36  ;;  %6253 = vmatprep.mubr.bf16.mxu0 %v10435_v5  ;;  %6847 = vmatprep.mubr.bf16.mxu1 %v10435_v5 }
 0x37b   :  { %v7878_v1 = vpop.f32.mrb[156].mxu1 }
 0x37c   :  { %v7879_v12 = vpop.f32.mrb[157].mxu1 }
 0x37d   :  { %v7880_v4 = vadd.f32 %v7879_v12, %v7878_v1  ;;  %v7881_v46 = vpop.f32.mrb[158].mxu1 }
 0x37e   :  { %v7882_v11 = vpop.f32.mrb[159].mxu1 }
 0x37f   :  { %v10695_v2 = vadd.f32 %v7880_v4, %v6405_v52  ;;  %v7883_v63 = vadd.f32 %v7882_v11, %v7881_v46 }
 0x380   :  { %6254 = vmatmul.mubr.bf16.gmra.mrb[104].mxu0 %v10430_v30  ;;  %6848 = vmatmul.mubr.bf16.gmra.mrb[8].mxu1 %v10430_v30 }
 0x381   :  { %v10699_v26 = vadd.f32 %v7883_v63, %v6408_v7  ;;  %6263 = vmatprep.mubr.bf16.mxu0 %v10455_v38  ;;  %6855 = vmatprep.mubr.bf16.mxu1 %v10455_v38 }
 0x383   :  { %v7900_v5 = vpop.f32.mrb[160].mxu1 }
 0x384   :  { %v7901_v44 = vpop.f32.mrb[161].mxu1 }
 0x385   :  { %v7902_v0 = vadd.f32 %v7901_v44, %v7900_v5  ;;  %v7903_v28 = vpop.f32.mrb[162].mxu1 }
 0x386   :  { %v7904_v50 = vpop.f32.mrb[163].mxu1 }
 0x387   :  { %v10704_v47 = vadd.f32 %v7902_v0, %v10611_v32  ;;  %v7905_v17 = vadd.f32 %v7904_v50, %v7903_v28 }
 0x388   :  { %6264 = vmatmul.mubr.bf16.gmra.mrb[108].mxu0 %v10450_v61  ;;  %6856 = vmatmul.mubr.bf16.gmra.mrb[12].mxu1 %v10450_v61 }
 0x389   :  { %v10709_v30 = vadd.f32 %v7905_v17, %v10615_v10  ;;  %6273 = vmatprep.mubr.bf16.mxu0 %v10475_v49  ;;  %6863 = vmatprep.mubr.bf16.mxu1 %v10475_v49 }
 0x38b   :  { %v7906_v38 = vpop.f32.mrb[164].mxu1 }
 0x38c   :  { %v7907_v16 = vpop.f32.mrb[165].mxu1 }
 0x38d   :  { %v7908_v62 = vadd.f32 %v7907_v16, %v7906_v38  ;;  %v7909_v45 = vpop.f32.mrb[166].mxu1 }
 0x38e   :  { %v7910_v22 = vpop.f32.mrb[167].mxu1 }
 0x38f   :  { %v10714_v32 = vadd.f32 %v7908_v62, %v10623_v24  ;;  %v7911_v53 = vadd.f32 %v7910_v22, %v7909_v45 }
 0x390   :  { %6274 = vmatmul.mubr.bf16.gmra.mrb[112].mxu0 %v10470_v29  ;;  %6864 = vmatmul.mubr.bf16.gmra.mrb[16].mxu1 %v10470_v29 }
 0x391   :  { %v10719_v61 = vadd.f32 %v7911_v53, %v10627_v9  ;;  %6283 = vmatprep.mubr.bf16.mxu0 %v10495_v21  ;;  %6871 = vmatprep.mubr.bf16.mxu1 %v10495_v21 }
 0x393   :  { %v7912_v49 = vpop.f32.mrb[168].mxu1 }
 0x394   :  { %v7913_v10 = vpop.f32.mrb[169].mxu1 }
 0x395   :  { %v7914_v42 = vadd.f32 %v7913_v10, %v7912_v49  ;;  %v7915_v18 = vpop.f32.mrb[170].mxu1 }
 0x396   :  { %v7916_v40 = vpop.f32.mrb[171].mxu1 }
 0x397   :  { %v10724_v24 = vadd.f32 %v7914_v42, %v10635_v20  ;;  %v7917_v43 = vadd.f32 %v7916_v40, %v7915_v18 }
 0x398   :  { %6284 = vmatmul.mubr.bf16.gmra.mrb[116].mxu0 %v10490_v41  ;;  %6872 = vmatmul.mubr.bf16.gmra.mrb[20].mxu1 %v10490_v41 }
 0x399   :  { %v10729_v29 = vadd.f32 %v7917_v43, %v10639_v37  ;;  %6293 = vmatprep.mubr.bf16.mxu0 %v10515_v13  ;;  %6879 = vmatprep.mubr.bf16.mxu1 %v10515_v13 }
 0x39b   :  { %v7918_v21 = vpop.f32.mrb[172].mxu1 }
 0x39c   :  { %v7919_v9 = vpop.f32.mrb[173].mxu1 }
 0x39d   :  { %v7920_v15 = vadd.f32 %v7919_v9, %v7918_v21  ;;  %v7921_v8 = vpop.f32.mrb[174].mxu1 }
 0x39e   :  { %v7922_v33 = vpop.f32.mrb[175].mxu1 }
 0x39f   :  { %v10734_v20 = vadd.f32 %v7920_v15, %v10647_v35  ;;  %v7923_v31 = vadd.f32 %v7922_v33, %v7921_v8 }
 0x3a0   :  { %6294 = vmatmul.mubr.bf16.gmra.mrb[120].mxu0 %v10510_v58  ;;  %6880 = vmatmul.mubr.bf16.gmra.mrb[24].mxu1 %v10510_v58 }
 0x3a1   :  { %v10739_v41 = vadd.f32 %v7923_v31, %v10651_v59  ;;  %6303 = vmatprep.mubr.bf16.mxu0 %v10535_v34  ;;  %6887 = vmatprep.mubr.bf16.mxu1 %v10535_v34 }
 0x3a3   :  { %v7924_v13 = vpop.f32.mrb[176].mxu1 }
 0x3a4   :  { %v7925_v37 = vpop.f32.mrb[177].mxu1 }
 0x3a5   :  { %v7926_v25 = vadd.f32 %v7925_v37, %v7924_v13  ;;  %v7927_v27 = vpop.f32.mrb[178].mxu1 }
 0x3a6   :  { %v7928_v60 = vpop.f32.mrb[179].mxu1 }
 0x3a7   :  { %v10744_v35 = vadd.f32 %v7926_v25, %v10659_v55  ;;  %v7929_v19 = vadd.f32 %v7928_v60, %v7927_v27 }
 0x3a8   :  { %6304 = vmatmul.mubr.bf16.gmra.mrb[124].mxu0 %v10530_v54  ;;  %6888 = vmatmul.mubr.bf16.gmra.mrb[28].mxu1 %v10530_v54 }
 0x3a9   :  { %v10749_v58 = vadd.f32 %v7929_v19, %v10663_v57 }
 0x3ab   :  { %v7930_v59 = vpop.f32.mrb[180].mxu1 }
 0x3ac   :  { %v7931_v36 = vpop.f32.mrb[181].mxu1 }
 0x3ad   :  { %v7932_v56 = vadd.f32 %v7931_v36, %v7930_v59  ;;  %v7933_v34 = vpop.f32.mrb[182].mxu1 }
 0x3ae   :  { %v7934_v1 = vpop.f32.mrb[183].mxu1 }
 0x3af   :  { %v10752_v12 = vadd.f32 %v7932_v56, %v10671_v48  ;;  %v7935_v52 = vadd.f32 %v7934_v1, %v7933_v34 }
 0x3b1   :  { %v10755_v55 = vadd.f32 %v7935_v52, %v10675_v51 }
 0x3b3   :  { %v7936_v4 = vpop.f32.mrb[184].mxu1 }
 0x3b4   :  { %v7937_v46 = vpop.f32.mrb[185].mxu1 }
 0x3b5   :  { %v7938_v11 = vadd.f32 %v7937_v46, %v7936_v4  ;;  %v7939_v7 = vpop.f32.mrb[186].mxu1 }
 0x3b6   :  { %v7940_v54 = vpop.f32.mrb[187].mxu1 }
 0x3b7   :  { %v10758_v57 = vadd.f32 %v7938_v11, %v10683_v23  ;;  %v7941_v63 = vadd.f32 %v7940_v54, %v7939_v7 }
 0x3b9   :  { %v10761_v5 = vadd.f32 %v7941_v63, %v10687_v14 }
 0x3bb   :  { %v7942_v44 = vpop.f32.mrb[188].mxu1 }
 0x3bc   :  { %v7943_v0 = vpop.f32.mrb[189].mxu1 }
 0x3bd   :  { %v7944_v48 = vadd.f32 %v7943_v0, %v7942_v44  ;;  %v7945_v28 = vpop.f32.mrb[190].mxu1 }
 0x3be   :  { %v7946_v50 = vpop.f32.mrb[191].mxu1 }
 0x3bf   :  { %v10764_v51 = vadd.f32 %v7944_v48, %v10695_v2  ;;  %v7947_v17 = vadd.f32 %v7946_v50, %v7945_v28 }
 0x3c1   :  { %v10767_v38 = vadd.f32 %v7947_v17, %v10699_v26 }
 0x3c3   :  { %v7964_v16 = vpop.f32.mrb[192].mxu1 }
 0x3c4   :  { %v7965_v62 = vpop.f32.mrb[193].mxu1 }
 0x3c5   :  { %v7966_v23 = vadd.f32 %v7965_v62, %v7964_v16  ;;  %v7967_v45 = vpop.f32.mrb[194].mxu1 }
 0x3c6   :  { %v7968_v22 = vpop.f32.mrb[195].mxu1 }
 0x3c7   :  { %v10770_v14 = vadd.f32 %v7966_v23, %v10704_v47  ;;  %v7969_v53 = vadd.f32 %v7968_v22, %v7967_v45 }
 0x3c9   :  { %v10773_v49 = vadd.f32 %v7969_v53, %v10709_v30 }
 0x3cb   :  { %v7970_v10 = vpop.f32.mrb[196].mxu1 }
 0x3cc   :  { %v7971_v42 = vpop.f32.mrb[197].mxu1 }
 0x3cd   :  { %v7972_v2 = vadd.f32 %v7971_v42, %v7970_v10  ;;  %v7973_v18 = vpop.f32.mrb[198].mxu1 }
 0x3ce   :  { %v7974_v40 = vpop.f32.mrb[199].mxu1 }
 0x3cf   :  { %v10776_v26 = vadd.f32 %v7972_v2, %v10714_v32  ;;  %v7975_v43 = vadd.f32 %v7974_v40, %v7973_v18 }
 0x3d1   :  { %v10779_v21 = vadd.f32 %v7975_v43, %v10719_v61 }
 0x3d3   :  { %v7976_v9 = vpop.f32.mrb[200].mxu1 }
 0x3d4   :  { %v7977_v15 = vpop.f32.mrb[201].mxu1 }
 0x3d5   :  { %v7978_v47 = vadd.f32 %v7977_v15, %v7976_v9  ;;  %v7979_v8 = vpop.f32.mrb[202].mxu1 }
 0x3d6   :  { %v7980_v33 = vpop.f32.mrb[203].mxu1 }
 0x3d7   :  { %v10782_v30 = vadd.f32 %v7978_v47, %v10724_v24  ;;  %v7981_v31 = vadd.f32 %v7980_v33, %v7979_v8 }
 0x3d9   :  { %v10785_v13 = vadd.f32 %v7981_v31, %v10729_v29 }
 0x3db   :  { %v7982_v37 = vpop.f32.mrb[204].mxu1 }
 0x3dc   :  { %v7983_v25 = vpop.f32.mrb[205].mxu1 }
 0x3dd   :  { %v7984_v32 = vadd.f32 %v7983_v25, %v7982_v37  ;;  %v7985_v27 = vpop.f32.mrb[206].mxu1 }
 0x3de   :  { %v7986_v60 = vpop.f32.mrb[207].mxu1 }
 0x3df   :  { %v10788_v61 = vadd.f32 %v7984_v32, %v10734_v20  ;;  %v7987_v19 = vadd.f32 %v7986_v60, %v7985_v27 }
 0x3e1   :  { %v10791_v59 = vadd.f32 %v7987_v19, %v10739_v41 }
 0x3e3   :  { %v7988_v36 = vpop.f32.mrb[208].mxu1 }
 0x3e4   :  { %v7989_v56 = vpop.f32.mrb[209].mxu1 }
 0x3e5   :  { %v7990_v24 = vadd.f32 %v7989_v56, %v7988_v36  ;;  %v7991_v34 = vpop.f32.mrb[210].mxu1 }
 0x3e6   :  { %v7992_v1 = vpop.f32.mrb[211].mxu1 }
 0x3e7   :  { %v10794_v29 = vadd.f32 %v7990_v24, %v10744_v35  ;;  %v7993_v52 = vadd.f32 %v7992_v1, %v7991_v34 }
 0x3e9   :  { %v10797_v4 = vadd.f32 %v7993_v52, %v10749_v58 }
 0x3eb   :  { %v7994_v46 = vpop.f32.mrb[212].mxu1 }
 0x3ec   :  { %v7995_v11 = vpop.f32.mrb[213].mxu1 }
 0x3ed   :  { %v7996_v20 = vadd.f32 %v7995_v11, %v7994_v46  ;;  %v7997_v7 = vpop.f32.mrb[214].mxu1 }
 0x3ee   :  { %v7998_v54 = vpop.f32.mrb[215].mxu1 }
 0x3ef   :  { %v10800_v41 = vadd.f32 %v7996_v20, %v10752_v12  ;;  %v7999_v63 = vadd.f32 %v7998_v54, %v7997_v7 }
 0x3f1   :  { %v10803_v44 = vadd.f32 %v7999_v63, %v10755_v55 }
 0x3f3   :  { %v8000_v0 = vpop.f32.mrb[216].mxu1 }
 0x3f4   :  { %v8001_v48 = vpop.f32.mrb[217].mxu1 }
 0x3f5   :  { %v8002_v35 = vadd.f32 %v8001_v48, %v8000_v0  ;;  %v8003_v28 = vpop.f32.mrb[218].mxu1 }
 0x3f6   :  { %v8004_v50 = vpop.f32.mrb[219].mxu1 }
 0x3f7   :  { %v10806_v58 = vadd.f32 %v8002_v35, %v10758_v57  ;;  %v8005_v17 = vadd.f32 %v8004_v50, %v8003_v28 }
 0x3f9   :  { %v10809_v16 = vadd.f32 %v8005_v17, %v10761_v5 }
 0x3fb   :  { %v8006_v62 = vpop.f32.mrb[220].mxu1 }
 0x3fc   :  { %v8007_v23 = vpop.f32.mrb[221].mxu1 }
 0x3fd   :  { %v8008_v12 = vadd.f32 %v8007_v23, %v8006_v62  ;;  %v8009_v45 = vpop.f32.mrb[222].mxu1 }
 0x3fe   :  { %v8010_v22 = vpop.f32.mrb[223].mxu1 }
 0x3ff   :  { %v10812_v55 = vadd.f32 %v8008_v12, %v10764_v51  ;;  %v8011_v53 = vadd.f32 %v8010_v22, %v8009_v45 }
 0x401   :  { %v10815_v10 = vadd.f32 %v8011_v53, %v10767_v38 }
 0x403   :  { %v8028_v42 = vpop.f32.mrb[224].mxu1 }
 0x404   :  { %v8029_v2 = vpop.f32.mrb[225].mxu1 }
 0x405   :  { %v8030_v57 = vadd.f32 %v8029_v2, %v8028_v42  ;;  %v8031_v18 = vpop.f32.mrb[226].mxu1 }
 0x406   :  { %v8032_v40 = vpop.f32.mrb[227].mxu1 }
 0x407   :  { %v10818_v5 = vadd.f32 %v8030_v57, %v10770_v14  ;;  %v8033_v43 = vadd.f32 %v8032_v40, %v8031_v18 }
 0x409   :  { %v10821_v9 = vadd.f32 %v8033_v43, %v10773_v49 }
 0x40b   :  { %v8034_v15 = vpop.f32.mrb[228].mxu1 }
 0x40c   :  { %v8035_v47 = vpop.f32.mrb[229].mxu1 }
 0x40d   :  { %v8036_v51 = vadd.f32 %v8035_v47, %v8034_v15  ;;  %v8037_v8 = vpop.f32.mrb[230].mxu1  ;;  %v10864_v15 = vrot.slane %v10595_v39, %v9980_v3  ;;  %v6896_v47 = vld [vmem:[#allocation11] sm:$0xff] }
 0x40e   :  { %v8038_v33 = vpop.f32.mrb[231].mxu1  ;;  %vm6944_vm0 = vcmp.ge.f32.partialorder %v6896_v47, 0.2 }
 0x40f   :  { %v10824_v38 = vadd.f32 %v8036_v51, %v10776_v26  ;;  %v8039_v31 = vadd.f32 %v8038_v33, %v8037_v8  ;;  %v6897_v51 = vld [vmem:[#allocation11 + $0x8] sm:$0xff]  ;;  %v6898_v8 = vld [vmem:[#allocation11 + $0x10] sm:$0xff]  ;;  %v6899_v33 = vld [vmem:[#allocation11 + $0x18] sm:$0xff] }
 0x410   :  { %vm6945_vm1 = vcmp.ge.f32.partialorder %v6897_v51, 0.2  ;;  %vm6946_vm2 = vcmp.ge.f32.partialorder %v6898_v8, 0.2  ;;  %vm6947_vm3 = vcmp.ge.f32.partialorder %v6899_v33, 0.2 }
 0x411   :  { %v10827_v37 = vadd.f32 %v8039_v31, %v10779_v21 }
 0x413   :  { %v8040_v25 = vpop.f32.mrb[232].mxu1 }
 0x414   :  { %v8041_v32 = vpop.f32.mrb[233].mxu1 }
 0x415   :  { %v8042_v14 = vadd.f32 %v8041_v32, %v8040_v25  ;;  %v8043_v27 = vpop.f32.mrb[234].mxu1  ;;  %v6900_v25 = vld [vmem:[#allocation11 + $0x20] sm:$0xff] }
 0x416   :  { %v8044_v60 = vpop.f32.mrb[235].mxu1  ;;  %vm6948_vm4 = vcmp.ge.f32.partialorder %v6900_v25, 0.2 }
 0x417   :  { %v10830_v49 = vadd.f32 %v8042_v14, %v10782_v30  ;;  %v8045_v19 = vadd.f32 %v8044_v60, %v8043_v27 }
 0x419   :  { %v10833_v36 = vadd.f32 %v8045_v19, %v10785_v13 }
 0x41b   :  { %v8046_v56 = vpop.f32.mrb[236].mxu1 }
 0x41c   :  { %v8047_v24 = vpop.f32.mrb[237].mxu1 }
 0x41d   :  { %v8048_v26 = vadd.f32 %v8047_v24, %v8046_v56  ;;  %v8049_v34 = vpop.f32.mrb[238].mxu1 }
 0x41e   :  { %v8050_v1 = vpop.f32.mrb[239].mxu1 }
 0x41f   :  { %v10836_v21 = vadd.f32 %v8048_v26, %v10788_v61  ;;  %v8051_v52 = vadd.f32 %v8050_v1, %v8049_v34  ;;  %v6901_v26 = vld [vmem:[#allocation11 + $0x28] sm:$0xff] }
 0x420   :  { %vm6949_vm5 = vcmp.ge.f32.partialorder %v6901_v26, 0.2 }
 0x421   :  { %v10839_v46 = vadd.f32 %v8051_v52, %v10791_v59 }
 0x423   :  { %v8052_v11 = vpop.f32.mrb[240].mxu1 }
 0x424   :  { %v8053_v20 = vpop.f32.mrb[241].mxu1 }
 0x425   :  { %v8054_v30 = vadd.f32 %v8053_v20, %v8052_v11  ;;  %v8055_v7 = vpop.f32.mrb[242].mxu1  ;;  %v6902_v20 = vld [vmem:[#allocation11 + $0x30] sm:$0xff] }
 0x426   :  { %v8056_v54 = vpop.f32.mrb[243].mxu1  ;;  %vm6950_vm6 = vcmp.ge.f32.partialorder %v6902_v20, 0.2  ;;  %v6912_v20 = vld [vmem:[#allocation11 + $0x80] sm:$0xff] }
 0x427   :  { %v10842_v13 = vadd.f32 %v8054_v30, %v10794_v29  ;;  %v8057_v63 = vadd.f32 %v8056_v54, %v8055_v7 }
 0x429   :  { %v10845_v0 = vadd.f32 %v8057_v63, %v10797_v4  ;;  %v6903_v63 = vld [vmem:[#allocation11 + $0x38] sm:$0xff] }
 0x42a   :  { %vm6951_vm7 = vcmp.ge.f32.partialorder %v6903_v63, 0.2 }
 0x42b   :  { %v8058_v48 = vpop.f32.mrb[244].mxu1 }
 0x42c   :  { %v8059_v35 = vpop.f32.mrb[245].mxu1 }
 0x42d   :  { %v8060_v61 = vadd.f32 %v8059_v35, %v8058_v48  ;;  %v8061_v28 = vpop.f32.mrb[246].mxu1 }
 0x42e   :  { %v8062_v50 = vpop.f32.mrb[247].mxu1 }
 0x42f   :  { %v10848_v59 = vadd.f32 %v8060_v61, %v10800_v41  ;;  %v8063_v17 = vadd.f32 %v8062_v50, %v8061_v28  ;;  %v6905_v28 = vld [vmem:[#allocation11 + $0x48] sm:$0xff] }
 0x430   :  { %vm6953_vm8 = vcmp.ge.f32.partialorder %v6905_v28, 0.2 }
 0x431   :  { %v10851_v62 = vadd.f32 %v8063_v17, %v10803_v44 }
 0x433   :  { %v8064_v23 = vpop.f32.mrb[248].mxu1 }
 0x434   :  { %v8065_v12 = vpop.f32.mrb[249].mxu1 }
 0x435   :  { %v8066_v29 = vadd.f32 %v8065_v12, %v8064_v23  ;;  %v8067_v45 = vpop.f32.mrb[250].mxu1 }
 0x436   :  { %v8068_v22 = vpop.f32.mrb[251].mxu1 }
 0x437   :  { %v10854_v4 = vadd.f32 %v8066_v29, %v10806_v58  ;;  %v8069_v53 = vadd.f32 %v8068_v22, %v8067_v45  ;;  %v6906_v45 = vld [vmem:[#allocation11 + $0x50] sm:$0xff] }
 0x438   :  { %vm6954_vm10 = vcmp.ge.f32.partialorder %v6906_v45, 0.2 }
 0x439   :  { %v10857_v42 = vadd.f32 %v8069_v53, %v10809_v16  ;;  %v10871_v16 = vrot.slane %v10595_v39, %v9986_v6 }
 0x43b   :  { %v8070_v2 = vpop.f32.mrb[252].mxu1 }
 0x43c   :  { %v8071_v57 = vpop.f32.mrb[253].mxu1 }
 0x43d   :  { %v8072_v41 = vadd.f32 %v8071_v57, %v8070_v2  ;;  %v8073_v18 = vpop.f32.mrb[254].mxu1 }
 0x43e   :  { %v8074_v40 = vpop.f32.mrb[255].mxu1 }
 0x43f   :  { %v10860_v44 = vadd.f32 %v8072_v41, %v10812_v55  ;;  %v8075_v43 = vadd.f32 %v8074_v40, %v8073_v18 }
 0x441   :  { %v10867_v58 = vadd.f32 %v8075_v43, %v10815_v10 }
 0x443   :  { %v6235_v31 = vpop.f32.mrb[96].mxu0  ;;  %v8092_v55 = vpop.f32.mrb[0].mxu1 }
 0x444   :  { %v8332_v32 = vadd.f32 %v6235_v31, %v10864_v15  ;;  %v6237_v14 = vpop.f32.mrb[97].mxu0  ;;  %v8093_v3 = vpop.f32.mrb[1].mxu1  ;;  %v6907_v31 = vld [vmem:[#allocation11 + $0x58] sm:$0xff] }
 0x445   :  { %v8333_v27 = vadd.f32 %v6237_v14, %v10871_v16  ;;  %v8094_v10 = vadd.f32 %v8093_v3, %v8092_v55  ;;  %v6239_v60 = vpop.f32.mrb[98].mxu0  ;;  %v8095_v6 = vpop.f32.mrb[2].mxu1  ;;  %v6908_v3 = vld [vmem:[#allocation11 + $0x60] sm:$0xff]  ;;  %vm6955_vm11 = vcmp.ge.f32.partialorder %v6907_v31, 0.2 }
 0x446   :  { %v6992_v39 = vsel %vm6944_vm0, %v8332_v32, 0.0  ;;  %v8334_v19 = vadd.f32 %v6239_v60, %v10864_v15  ;;  %v6241_v56 = vpop.f32.mrb[99].mxu0  ;;  %v8096_v24 = vpop.f32.mrb[3].mxu1  ;;  %vm6956_vm12 = vcmp.ge.f32.partialorder %v6908_v3, 0.2  ;;  %v6916_v31 = vld [vmem:[#allocation11 + $0xa0] sm:$0xff] }
 0x447   :  { %v7040_v34 = vmul.f32 1.25, %v6992_v39  ;;  %v6993_v1 = vsel %vm6945_vm1, %v8333_v27, 0.0  ;;  %v6834_v52 = vadd.f32 %v8094_v10, %v10818_v5  ;;  %v8335_v11 = vadd.f32 %v6241_v56, %v10871_v16  ;;  %v6904_v5 = vld [vmem:[#allocation11 + $0x40] sm:$0xff] }
 0x448   :  { %v7041_v30 = vmul.f32 1.25, %v6993_v1  ;;  %v6995_v7 = vsel %vm6947_vm3, %v8334_v19, 0.0  ;;  %v8097_v54 = vadd.f32 %v8096_v24, %v8095_v6  ;;  %vm6952_vm9 = vcmp.ge.f32.partialorder %v6904_v5, 0.2  ;;  %v6909_v6 = vld [vmem:[#allocation11 + $0x68] sm:$0xff]  ;;  %v6911_v24 = vld [vmem:[#allocation11 + $0x78] sm:$0xff] }
 0x449   :  { %7088 = vst [vmem:[#allocation13] sm:$0xff] %v7040_v34  ;;  %v6994_v48 = vsel %vm6946_vm2, %v6834_v52, 0.0  ;;  %v7043_v35 = vmul.f32 1.25, %v6995_v7  ;;  %v6996_v61 = vsel %vm6948_vm4, %v8335_v11, 0.0  ;;  %v6910_v1 = vld [vmem:[#allocation11 + $0x70] sm:$0xff] }
 0x44a   :  { %7089 = vst [vmem:[#allocation13 + $0x8] sm:$0xff] %v7041_v30  ;;  %v7042_v50 = vmul.f32 1.25, %v6994_v48  ;;  %v7044_v17 = vmul.f32 1.25, %v6996_v61  ;;  %v6837_v23 = vadd.f32 %v8097_v54, %v10821_v9  ;;  %vm6957_vm13 = vcmp.ge.f32.partialorder %v6909_v6, 0.2 }
 0x44b   :  { %7091 = vst [vmem:[#allocation13 + $0x18] sm:$0xff] %v7043_v35  ;;  %v6245_v12 = vpop.f32.mrb[100].mxu0  ;;  %v8098_v29 = vpop.f32.mrb[4].mxu1  ;;  %vm6959_vm14 = vcmp.ge.f32.partialorder %v6911_v24, 0.2 }
 0x44c   :  { %7090 = vst [vmem:[#allocation13 + $0x10] sm:$0xff] %v7042_v50  ;;  %7092 = vst [vmem:[#allocation13 + $0x20] sm:$0xff] %v7044_v17  ;;  %v6997_v22 = vsel %vm6949_vm5, %v6837_v23, 0.0  ;;  %v8336_v53 = vadd.f32 %v6245_v12, %v10864_v15  ;;  %v6247_v2 = vpop.f32.mrb[101].mxu0  ;;  %v8099_v57 = vpop.f32.mrb[5].mxu1  ;;  %v6913_v12 = vld [vmem:[#allocation11 + $0x88] sm:$0xff] }
 0x44d   :  { %v7045_v41 = vmul.f32 1.25, %v6997_v22  ;;  %v8337_v18 = vadd.f32 %v6247_v2, %v10871_v16  ;;  %v8100_v40 = vadd.f32 %v8099_v57, %v8098_v29  ;;  %v6249_v9 = vpop.f32.mrb[102].mxu0  ;;  %v8101_v43 = vpop.f32.mrb[6].mxu1  ;;  %vm6958_vm15 = vcmp.ge.f32.partialorder %v6910_v1, 0.2  ;;  %v6914_v2 = vld [vmem:[#allocation11 + $0x90] sm:$0xff] }
 0x44e   :  { %v6998_v47 = vsel %vm6950_vm6, %v8336_v53, 0.0  ;;  %v8338_v51 = vadd.f32 %v6249_v9, %v10864_v15  ;;  %v6251_v8 = vpop.f32.mrb[103].mxu0  ;;  %v8102_v33 = vpop.f32.mrb[7].mxu1  ;;  %vm6960_vm0 = vcmp.ge.f32.partialorder %v6912_v20, 0.2 }
 0x44f   :  { %7093 = vst [vmem:[#allocation13 + $0x28] sm:$0xff] %v7045_v41  ;;  %v7046_v55 = vmul.f32 1.25, %v6998_v47  ;;  %v6999_v25 = vsel %vm6951_vm7, %v8337_v18, 0.0  ;;  %v6842_v32 = vadd.f32 %v8100_v40, %v10824_v38  ;;  %v8339_v14 = vadd.f32 %v6251_v8, %v10871_v16  ;;  %v6915_v40 = vld [vmem:[#allocation11 + $0x98] sm:$0xff] }
 0x450   :  { %v7047_v27 = vmul.f32 1.25, %v6999_v25  ;;  %v7001_v10 = vsel %vm6953_vm8, %v8338_v51, 0.0  ;;  %v8103_v60 = vadd.f32 %v8102_v33, %v8101_v43  ;;  %vm6961_vm1 = vcmp.ge.f32.partialorder %v6913_v12, 0.2  ;;  %v6917_v51 = vld [vmem:[#allocation11 + $0xa8] sm:$0xff] }
 0x451   :  { %7094 = vst [vmem:[#allocation13 + $0x30] sm:$0xff] %v7046_v55  ;;  %v7000_v39 = vsel %vm6952_vm9, %v6842_v32, 0.0  ;;  %v7049_v19 = vmul.f32 1.25, %v7001_v10  ;;  %v7002_v56 = vsel %vm6954_vm10, %v8339_v14, 0.0  ;;  %vm6962_vm2 = vcmp.ge.f32.partialorder %v6914_v2, 0.2 }
 0x452   :  { %7095 = vst [vmem:[#allocation13 + $0x38] sm:$0xff] %v7047_v27  ;;  %v7048_v26 = vmul.f32 1.25, %v7000_v39  ;;  %v7050_v34 = vmul.f32 1.25, %v7002_v56  ;;  %v6845_v38 = vadd.f32 %v8103_v60, %v10827_v37  ;;  %vm6963_vm3 = vcmp.ge.f32.partialorder %v6915_v40, 0.2  ;;  %v6918_v32 = vld [vmem:[#allocation11 + $0xb0] sm:$0xff] }
 0x453   :  { %7097 = vst [vmem:[#allocation13 + $0x48] sm:$0xff] %v7049_v19  ;;  %v6255_v52 = vpop.f32.mrb[104].mxu0  ;;  %v8104_v11 = vpop.f32.mrb[8].mxu1  ;;  %vm6965_vm4 = vcmp.ge.f32.partialorder %v6917_v51, 0.2 }
 0x454   :  { %7096 = vst [vmem:[#allocation13 + $0x40] sm:$0xff] %v7048_v26  ;;  %7098 = vst [vmem:[#allocation13 + $0x50] sm:$0xff] %v7050_v34  ;;  %v7003_v30 = vsel %vm6955_vm11, %v6845_v38, 0.0  ;;  %v8340_v7 = vadd.f32 %v6255_v52, %v10864_v15  ;;  %v6257_v54 = vpop.f32.mrb[105].mxu0  ;;  %v8105_v63 = vpop.f32.mrb[9].mxu1  ;;  %v6919_v38 = vld [vmem:[#allocation11 + $0xb8] sm:$0xff] }
 0x455   :  { %v7051_v48 = vmul.f32 1.25, %v7003_v30  ;;  %v8341_v35 = vadd.f32 %v6257_v54, %v10871_v16  ;;  %v8106_v61 = vadd.f32 %v8105_v63, %v8104_v11  ;;  %v6259_v37 = vpop.f32.mrb[106].mxu0  ;;  %v8107_v28 = vpop.f32.mrb[10].mxu1  ;;  %vm6964_vm5 = vcmp.ge.f32.partialorder %v6916_v31, 0.2  ;;  %v6920_v30 = vld [vmem:[#allocation11 + $0xc0] sm:$0xff] }
 0x456   :  { %v7004_v50 = vsel %vm6956_vm12, %v8340_v7, 0.0  ;;  %v8342_v17 = vadd.f32 %v6259_v37, %v10864_v15  ;;  %v6261_v23 = vpop.f32.mrb[107].mxu0  ;;  %v8108_v5 = vpop.f32.mrb[11].mxu1  ;;  %vm6966_vm6 = vcmp.ge.f32.partialorder %v6918_v32, 0.2 }
 0x457   :  { %7099 = vst [vmem:[#allocation13 + $0x58] sm:$0xff] %v7051_v48  ;;  %v7052_v29 = vmul.f32 1.25, %v7004_v50  ;;  %v7005_v45 = vsel %vm6957_vm13, %v8341_v35, 0.0  ;;  %v6850_v22 = vadd.f32 %v8106_v61, %v10830_v49  ;;  %v8343_v53 = vadd.f32 %v6261_v23, %v10871_v16  ;;  %v6921_v48 = vld [vmem:[#allocation11 + $0xc8] sm:$0xff]  ;;  %v6922_v23 = vld [vmem:[#allocation11 + $0xd0] sm:$0xff] }
 0x458   :  { %v7053_v57 = vmul.f32 1.25, %v7005_v45  ;;  %v7007_v41 = vsel %vm6959_vm14, %v8342_v17, 0.0  ;;  %v8109_v18 = vadd.f32 %v8108_v5, %v8107_v28  ;;  %vm6967_vm7 = vcmp.ge.f32.partialorder %v6919_v38, 0.2  ;;  %v6923_v28 = vld [vmem:[#allocation11 + $0xd8] sm:$0xff] }
 0x459   :  { %7100 = vst [vmem:[#allocation13 + $0x60] sm:$0xff] %v7052_v29  ;;  %v7006_v9 = vsel %vm6958_vm15, %v6850_v22, 0.0  ;;  %v7055_v43 = vmul.f32 1.25, %v7007_v41  ;;  %v7008_v47 = vsel %vm6960_vm0, %v8343_v53, 0.0  ;;  %vm6968_vm8 = vcmp.ge.f32.partialorder %v6920_v30, 0.2 }
 0x45a   :  { %7101 = vst [vmem:[#allocation13 + $0x68] sm:$0xff] %v7053_v57  ;;  %v7054_v8 = vmul.f32 1.25, %v7006_v9  ;;  %v7056_v33 = vmul.f32 1.25, %v7008_v47  ;;  %v6853_v49 = vadd.f32 %v8109_v18, %v10833_v36  ;;  %vm6969_vm9 = vcmp.ge.f32.partialorder %v6921_v48, 0.2  ;;  %v6924_v29 = vld [vmem:[#allocation11 + $0xe0] sm:$0xff] }
 0x45b   :  { %7103 = vst [vmem:[#allocation13 + $0x78] sm:$0xff] %v7055_v43  ;;  %v6265_v55 = vpop.f32.mrb[108].mxu0  ;;  %v8110_v25 = vpop.f32.mrb[12].mxu1  ;;  %vm6971_vm10 = vcmp.ge.f32.partialorder %v6923_v28, 0.2 }
 0x45c   :  { %7102 = vst [vmem:[#allocation13 + $0x70] sm:$0xff] %v7054_v8  ;;  %7104 = vst [vmem:[#allocation13 + $0x80] sm:$0xff] %v7056_v33  ;;  %v7009_v14 = vsel %vm6961_vm1, %v6853_v49, 0.0  ;;  %v8344_v3 = vadd.f32 %v6265_v55, %v10864_v15  ;;  %v6267_v27 = vpop.f32.mrb[109].mxu0  ;;  %v8111_v10 = vpop.f32.mrb[13].mxu1  ;;  %v6925_v8 = vld [vmem:[#allocation11 + $0xe8] sm:$0xff] }
 0x45d   :  { %v7057_v60 = vmul.f32 1.25, %v7009_v14  ;;  %v8345_v6 = vadd.f32 %v6267_v27, %v10871_v16  ;;  %v8112_v39 = vadd.f32 %v8111_v10, %v8110_v25  ;;  %v6269_v36 = vpop.f32.mrb[110].mxu0  ;;  %v8113_v19 = vpop.f32.mrb[14].mxu1  ;;  %vm6970_vm11 = vcmp.ge.f32.partialorder %v6922_v23, 0.2  ;;  %v6926_v25 = vld [vmem:[#allocation11 + $0xf0] sm:$0xff] }
 0x45e   :  { %v7010_v56 = vsel %vm6962_vm2, %v8344_v3, 0.0  ;;  %v8346_v24 = vadd.f32 %v6269_v36, %v10864_v15  ;;  %v6271_v26 = vpop.f32.mrb[111].mxu0  ;;  %v8114_v34 = vpop.f32.mrb[15].mxu1  ;;  %vm6972_vm12 = vcmp.ge.f32.partialorder %v6924_v29, 0.2  ;;  %v6927_v27 = vld [vmem:[#allocation11 + $0xf8] sm:$0xff] }
 0x45f   :  { %7105 = vst [vmem:[#allocation13 + $0x88] sm:$0xff] %v7057_v60  ;;  %v7058_v1 = vmul.f32 1.25, %v7010_v56  ;;  %v7011_v52 = vsel %vm6963_vm3, %v8345_v6, 0.0  ;;  %v6858_v11 = vadd.f32 %v8112_v39, %v10836_v21  ;;  %v8347_v20 = vadd.f32 %v6271_v26, %v10871_v16  ;;  %v6929_v39 = vld [vmem:[#allocation11 + $0x108] sm:$0xff]  ;;  %v6928_v56 = vld [vmem:[#allocation11 + $0x100] sm:$0xff] }
 0x460   :  { %v7059_v7 = vmul.f32 1.25, %v7011_v52  ;;  %v7013_v54 = vsel %vm6965_vm4, %v8346_v24, 0.0  ;;  %v8115_v63 = vadd.f32 %v8114_v34, %v8113_v19  ;;  %vm6973_vm13 = vcmp.ge.f32.partialorder %v6925_v8, 0.2  ;;  %v6930_v34 = vld [vmem:[#allocation11 + $0x110] sm:$0xff]  ;;  %v6932_v23 = vld [vmem:[#allocation11 + $0x120] sm:$0xff] }
 0x461   :  { %7106 = vst [vmem:[#allocation13 + $0x90] sm:$0xff] %v7058_v1  ;;  %v7012_v35 = vsel %vm6964_vm5, %v6858_v11, 0.0  ;;  %v7061_v61 = vmul.f32 1.25, %v7013_v54  ;;  %v7014_v37 = vsel %vm6966_vm6, %v8347_v20, 0.0  ;;  %vm6974_vm14 = vcmp.ge.f32.partialorder %v6926_v25, 0.2 }
 0x462   :  { %7107 = vst [vmem:[#allocation13 + $0x98] sm:$0xff] %v7059_v7  ;;  %v7060_v50 = vmul.f32 1.25, %v7012_v35  ;;  %v7062_v17 = vmul.f32 1.25, %v7014_v37  ;;  %v6861_v21 = vadd.f32 %v8115_v63, %v10839_v46  ;;  %vm6975_vm15 = vcmp.ge.f32.partialorder %v6927_v27, 0.2  ;;  %v6931_v37 = vld [vmem:[#allocation11 + $0x118] sm:$0xff] }
 0x463   :  { %7109 = vst [vmem:[#allocation13 + $0xa8] sm:$0xff] %v7061_v61  ;;  %v6275_v5 = vpop.f32.mrb[112].mxu0  ;;  %v8116_v12 = vpop.f32.mrb[16].mxu1  ;;  %vm6977_vm0 = vcmp.ge.f32.partialorder %v6929_v39, 0.2 }
 0x464   :  { %7108 = vst [vmem:[#allocation13 + $0xa0] sm:$0xff] %v7060_v50  ;;  %7110 = vst [vmem:[#allocation13 + $0xb0] sm:$0xff] %v7062_v17  ;;  %v7015_v45 = vsel %vm6967_vm7, %v6861_v21, 0.0  ;;  %v8348_v22 = vadd.f32 %v6275_v5, %v10864_v15  ;;  %v6277_v53 = vpop.f32.mrb[113].mxu0  ;;  %v8117_v2 = vpop.f32.mrb[17].mxu1 }
 0x465   :  { %v7063_v57 = vmul.f32 1.25, %v7015_v45  ;;  %v8349_v41 = vadd.f32 %v6277_v53, %v10871_v16  ;;  %v8118_v18 = vadd.f32 %v8117_v2, %v8116_v12  ;;  %v6279_v46 = vpop.f32.mrb[114].mxu0  ;;  %v8119_v40 = vpop.f32.mrb[18].mxu1  ;;  %vm6976_vm1 = vcmp.ge.f32.partialorder %v6928_v56, 0.2  ;;  %v6933_v45 = vld [vmem:[#allocation11 + $0x128] sm:$0xff] }
 0x466   :  { %v7016_v9 = vsel %vm6968_vm8, %v8348_v22, 0.0  ;;  %v8350_v43 = vadd.f32 %v6279_v46, %v10864_v15  ;;  %v6281_v47 = vpop.f32.mrb[115].mxu0  ;;  %v8120_v51 = vpop.f32.mrb[19].mxu1  ;;  %vm6978_vm2 = vcmp.ge.f32.partialorder %v6930_v34, 0.2  ;;  %v6934_v46 = vld [vmem:[#allocation11 + $0x130] sm:$0xff] }
 0x467   :  { %7111 = vst [vmem:[#allocation13 + $0xb8] sm:$0xff] %v7063_v57  ;;  %v7064_v33 = vmul.f32 1.25, %v7016_v9  ;;  %v7017_v49 = vsel %vm6969_vm9, %v8349_v41, 0.0  ;;  %v6866_v31 = vadd.f32 %v8118_v18, %v10842_v13  ;;  %v8351_v55 = vadd.f32 %v6281_v47, %v10871_v16  ;;  %v6935_v57 = vld [vmem:[#allocation11 + $0x138] sm:$0xff] }
 0x468   :  { %v7065_v32 = vmul.f32 1.25, %v7017_v49  ;;  %v7019_v14 = vsel %vm6971_vm10, %v8350_v43, 0.0  ;;  %v8121_v3 = vadd.f32 %v8120_v51, %v8119_v40  ;;  %vm6979_vm3 = vcmp.ge.f32.partialorder %v6931_v37, 0.2  ;;  %v6936_v43 = vld [vmem:[#allocation11 + $0x140] sm:$0xff] }
 0x469   :  { %7112 = vst [vmem:[#allocation13 + $0xc0] sm:$0xff] %v7064_v33  ;;  %v7018_v10 = vsel %vm6970_vm11, %v6866_v31, 0.0  ;;  %v7067_v60 = vmul.f32 1.25, %v7019_v14  ;;  %v7020_v6 = vsel %vm6972_vm12, %v8351_v55, 0.0  ;;  %vm6980_vm4 = vcmp.ge.f32.partialorder %v6932_v23, 0.2 }
 0x46a   :  { %7113 = vst [vmem:[#allocation13 + $0xc8] sm:$0xff] %v7065_v32  ;;  %v7066_v36 = vmul.f32 1.25, %v7018_v10  ;;  %v7068_v19 = vmul.f32 1.25, %v7020_v6  ;;  %v6869_v13 = vadd.f32 %v8121_v3, %v10845_v0  ;;  %vm6981_vm5 = vcmp.ge.f32.partialorder %v6933_v45, 0.2  ;;  %v6937_v10 = vld [vmem:[#allocation11 + $0x148] sm:$0xff] }
 0x46b   :  { %7115 = vst [vmem:[#allocation13 + $0xd8] sm:$0xff] %v7067_v60  ;;  %v6285_v24 = vpop.f32.mrb[116].mxu0  ;;  %v8122_v26 = vpop.f32.mrb[20].mxu1  ;;  %vm6983_vm6 = vcmp.ge.f32.partialorder %v6935_v57, 0.2 }
 0x46c   :  { %7114 = vst [vmem:[#allocation13 + $0xd0] sm:$0xff] %v7066_v36  ;;  %7116 = vst [vmem:[#allocation13 + $0xe0] sm:$0xff] %v7068_v19  ;;  %v7021_v38 = vsel %vm6973_vm13, %v6869_v13, 0.0  ;;  %v8352_v1 = vadd.f32 %v6285_v24, %v10864_v15  ;;  %v6287_v52 = vpop.f32.mrb[117].mxu0  ;;  %v8123_v11 = vpop.f32.mrb[21].mxu1  ;;  %v6938_v19 = vld [vmem:[#allocation11 + $0x150] sm:$0xff] }
 0x46d   :  { %v7069_v20 = vmul.f32 1.25, %v7021_v38  ;;  %v8353_v30 = vadd.f32 %v6287_v52, %v10871_v16  ;;  %v8124_v7 = vadd.f32 %v8123_v11, %v8122_v26  ;;  %v6289_v0 = vpop.f32.mrb[118].mxu0  ;;  %v8125_v54 = vpop.f32.mrb[22].mxu1  ;;  %vm6982_vm7 = vcmp.ge.f32.partialorder %v6934_v46, 0.2  ;;  %v6939_v26 = vld [vmem:[#allocation11 + $0x158] sm:$0xff] }
 0x46e   :  { %v7022_v63 = vsel %vm6974_vm14, %v8352_v1, 0.0  ;;  %v8354_v48 = vadd.f32 %v6289_v0, %v10864_v15  ;;  %v6291_v35 = vpop.f32.mrb[119].mxu0  ;;  %v8126_v61 = vpop.f32.mrb[23].mxu1  ;;  %vm6984_vm8 = vcmp.ge.f32.partialorder %v6936_v43, 0.2  ;;  %v6941_v52 = vld [vmem:[#allocation11 + $0x168] sm:$0xff] }
 0x46f   :  { %7117 = vst [vmem:[#allocation13 + $0xe8] sm:$0xff] %v7069_v20  ;;  %v7070_v28 = vmul.f32 1.25, %v7022_v63  ;;  %v7023_v50 = vsel %vm6975_vm15, %v8353_v30, 0.0  ;;  %v6874_v17 = vadd.f32 %v8124_v7, %v10848_v59  ;;  %v8355_v21 = vadd.f32 %v6291_v35, %v10871_v16  ;;  %v6940_v30 = vld [vmem:[#allocation11 + $0x160] sm:$0xff] }
 0x470   :  { %v7071_v5 = vmul.f32 1.25, %v7023_v50  ;;  %v7025_v12 = vsel %vm6977_vm0, %v8354_v48, 0.0  ;;  %v8127_v29 = vadd.f32 %v8126_v61, %v8125_v54  ;;  %vm6985_vm9 = vcmp.ge.f32.partialorder %v6937_v10, 0.2  ;;  %v6942_v54 = vld [vmem:[#allocation11 + $0x170] sm:$0xff] }
 0x471   :  { %7118 = vst [vmem:[#allocation13 + $0xf0] sm:$0xff] %v7070_v28  ;;  %v7024_v22 = vsel %vm6976_vm1, %v6874_v17, 0.0  ;;  %v7073_v53 = vmul.f32 1.25, %v7025_v12  ;;  %v7026_v2 = vsel %vm6978_vm2, %v8355_v21, 0.0  ;;  %vm6986_vm10 = vcmp.ge.f32.partialorder %v6938_v19, 0.2 }
 0x472   :  { %7119 = vst [vmem:[#allocation13 + $0xf8] sm:$0xff] %v7071_v5  ;;  %v7072_v41 = vmul.f32 1.25, %v7024_v22  ;;  %v7074_v18 = vmul.f32 1.25, %v7026_v2  ;;  %v6877_v59 = vadd.f32 %v8127_v29, %v10851_v62  ;;  %vm6987_vm11 = vcmp.ge.f32.partialorder %v6939_v26, 0.2  ;;  %v6943_v29 = vld [vmem:[#allocation11 + $0x178] sm:$0xff] }
 0x473   :  { %7121 = vst [vmem:[#allocation13 + $0x108] sm:$0xff] %v7073_v53  ;;  %v6295_v40 = vpop.f32.mrb[120].mxu0  ;;  %v8128_v9 = vpop.f32.mrb[24].mxu1  ;;  %vm6989_vm12 = vcmp.ge.f32.partialorder %v6941_v52, 0.2 }
 0x474   :  { %7120 = vst [vmem:[#allocation13 + $0x100] sm:$0xff] %v7072_v41  ;;  %7122 = vst [vmem:[#allocation13 + $0x110] sm:$0xff] %v7074_v18  ;;  %v7027_v47 = vsel %vm6979_vm3, %v6877_v59, 0.0  ;;  %v8356_v51 = vadd.f32 %v6295_v40, %v10864_v15  ;;  %v6297_v8 = vpop.f32.mrb[121].mxu0  ;;  %v8129_v33 = vpop.f32.mrb[25].mxu1 }
 0x475   :  { %v7075_v49 = vmul.f32 1.25, %v7027_v47  ;;  %v8357_v31 = vadd.f32 %v6297_v8, %v10871_v16  ;;  %v8130_v55 = vadd.f32 %v8129_v33, %v8128_v9  ;;  %v6299_v62 = vpop.f32.mrb[122].mxu0  ;;  %v8131_v25 = vpop.f32.mrb[26].mxu1  ;;  %vm6988_vm13 = vcmp.ge.f32.partialorder %v6940_v30, 0.2 }
 0x476   :  { %v7028_v32 = vsel %vm6980_vm4, %v8356_v51, 0.0  ;;  %v8358_v14 = vadd.f32 %v6299_v62, %v10864_v15  ;;  %v6301_v3 = vpop.f32.mrb[123].mxu0  ;;  %v8132_v27 = vpop.f32.mrb[27].mxu1  ;;  %vm6990_vm14 = vcmp.ge.f32.partialorder %v6942_v54, 0.2 }
 0x477   :  { %7123 = vst [vmem:[#allocation13 + $0x118] sm:$0xff] %v7075_v49  ;;  %v7076_v60 = vmul.f32 1.25, %v7028_v32  ;;  %v7029_v6 = vsel %vm6981_vm5, %v8357_v31, 0.0  ;;  %v6882_v39 = vadd.f32 %v8130_v55, %v10854_v4  ;;  %v8359_v36 = vadd.f32 %v6301_v3, %v10871_v16 }
 0x478   :  { %v7077_v13 = vmul.f32 1.25, %v7029_v6  ;;  %v7031_v56 = vsel %vm6983_vm6, %v8358_v14, 0.0  ;;  %v8133_v24 = vadd.f32 %v8132_v27, %v8131_v25  ;;  %vm6991_vm15 = vcmp.ge.f32.partialorder %v6943_v29, 0.2 }
 0x479   :  { %7124 = vst [vmem:[#allocation13 + $0x120] sm:$0xff] %v7076_v60  ;;  %v7030_v34 = vsel %vm6982_vm7, %v6882_v39, 0.0  ;;  %v7079_v38 = vmul.f32 1.25, %v7031_v56  ;;  %v7032_v1 = vsel %vm6984_vm8, %v8359_v36, 0.0 }
 0x47a   :  { %7125 = vst [vmem:[#allocation13 + $0x128] sm:$0xff] %v7077_v13  ;;  %v7078_v11 = vmul.f32 1.25, %v7030_v34  ;;  %v7080_v20 = vmul.f32 1.25, %v7032_v1  ;;  %v6885_v4 = vadd.f32 %v8133_v24, %v10857_v42 }
 0x47b   :  { %7127 = vst [vmem:[#allocation13 + $0x138] sm:$0xff] %v7079_v38  ;;  %v6305_v7 = vpop.f32.mrb[124].mxu0  ;;  %v8134_v0 = vpop.f32.mrb[28].mxu1 }
 0x47c   :  { %7126 = vst [vmem:[#allocation13 + $0x130] sm:$0xff] %v7078_v11  ;;  %7128 = vst [vmem:[#allocation13 + $0x140] sm:$0xff] %v7080_v20  ;;  %v7033_v63 = vsel %vm6985_vm9, %v6885_v4, 0.0  ;;  %v8360_v48 = vadd.f32 %v6305_v7, %v10864_v15  ;;  %v6307_v35 = vpop.f32.mrb[125].mxu0  ;;  %v8135_v61 = vpop.f32.mrb[29].mxu1 }
 0x47d   :  { %v7081_v37 = vmul.f32 1.25, %v7033_v63  ;;  %v8361_v28 = vadd.f32 %v6307_v35, %v10871_v16  ;;  %v8136_v50 = vadd.f32 %v8135_v61, %v8134_v0  ;;  %v6309_v42 = vpop.f32.mrb[126].mxu0  ;;  %v8137_v17 = vpop.f32.mrb[30].mxu1 }
 0x47e   :  { %v7034_v21 = vsel %vm6986_vm10, %v8360_v48, 0.0  ;;  %v8362_v23 = vadd.f32 %v6309_v42, %v10864_v15  ;;  %v6311_v5 = vpop.f32.mrb[127].mxu0  ;;  %v8138_v12 = vpop.f32.mrb[31].mxu1 }
 0x47f   :  { %7129 = vst [vmem:[#allocation13 + $0x148] sm:$0xff] %v7081_v37  ;;  %v7082_v45 = vmul.f32 1.25, %v7034_v21  ;;  %v7035_v22 = vsel %vm6987_vm11, %v8361_v28, 0.0  ;;  %v6890_v53 = vadd.f32 %v8136_v50, %v10860_v44  ;;  %v8363_v2 = vadd.f32 %v6311_v5, %v10871_v16 }
 0x480   :  { %v7083_v57 = vmul.f32 1.25, %v7035_v22  ;;  %v7037_v41 = vsel %vm6989_vm12, %v8362_v23, 0.0  ;;  %v8139_v18 = vadd.f32 %v8138_v12, %v8137_v17 }
 0x481   :  { %7130 = vst [vmem:[#allocation13 + $0x150] sm:$0xff] %v7082_v45  ;;  %v7036_v59 = vsel %vm6988_vm13, %v6890_v53, 0.0  ;;  %v7085_v15 = vmul.f32 1.25, %v7037_v41  ;;  %v7038_v46 = vsel %vm6990_vm14, %v8363_v2, 0.0 }
 0x482   :  { %7131 = vst [vmem:[#allocation13 + $0x158] sm:$0xff] %v7083_v57  ;;  %v7084_v40 = vmul.f32 1.25, %v7036_v59  ;;  %v7086_v9 = vmul.f32 1.25, %v7038_v46  ;;  %v6893_v43 = vadd.f32 %v8139_v18, %v10867_v58 }
 0x483   :  { %7133 = vst [vmem:[#allocation13 + $0x168] sm:$0xff] %v7085_v15 }
 0x484   :  { %7132 = vst [vmem:[#allocation13 + $0x160] sm:$0xff] %v7084_v40  ;;  %7134 = vst [vmem:[#allocation13 + $0x170] sm:$0xff] %v7086_v9  ;;  %v7039_v44 = vsel %vm6991_vm15, %v6893_v43, 0.0 }
 0x485   :  { %v7087_v16 = vmul.f32 1.25, %v7039_v44 }
 0x487   :  { %7135 = vst [vmem:[#allocation13 + $0x178] sm:$0xff] %v7087_v16 }
 0x488   :  { %9765 = shalt.err (!%p9762_p10)
}
 0x489   :  { %s9766_s23 = scalar_lea.hbm %s10977_s6, 6144 }
 0x48a   :  { %p9767_p11 = scmp.ne.s32.totalorder %s10977_s6, %s9766_s23  ;;  %p9770_p12 = scmp.lt.u32.totalorder %s9766_s23, %s10977_s6 }
 0x48c   :  { %p9772_p13 = pnand %p9770_p12, %p9767_p11 }
 0x48e   :  { %9775 = shalt.err (!%p9772_p13)
}
 0x48f   :  { %7147 = dma.vmem_to_hbm [thread:$0]  %s7142_s1, 6144, %s10977_s6, [#allocation4], %s9796_s4, %s9796_s4, %s9797_s15  }
 0x490   :  { %9784 = dma.done.wait [#allocation4], 6144  }
 0x491   :  { %9785 = vsyncadd [#allocation4], 4294961152 }
 0x492   :  { %7151 = vsyncpa [#allocation3], 1 }
 0x493   :  { %7152 = vsyncpa [#allocation6], 1 }
 0x494   :  { %7153 = vsyncpa [#allocation9], 1 }
 0x495   :  { %7154 = vsyncpa [#allocation12], 1 }
 0x496   :  { %7155 = vsyncpa [#allocation4], 1 }

</bundles_post_ra>
